<compile_context>
chip_gen: v6e
topology: v6e:2x2x1
jax: 0.10.0
libtpu: 0.0.40
codegen_flags: <defaults>
</compile_context>

<pallas_src>
import functools

import jax
import jax.numpy as jnp
import numpy as np
from jax.experimental import pallas as pl
from jax.experimental.pallas import tpu as pltpu


_VMEM_LIMIT = 32 * 1024 * 1024  # explicit scoped-VMEM budget, safe on v5e/v6e/v7x


def _round_up(x, m):
    return ((x + m - 1) // m) * m


# ----------------------------------------------------------------------------
# Kernel A: conv1 (5x5 s2 p2) + folded BN + ReLU + fused 2x2 MaxPool.
#   x_ref : (rows, 512) bf16   tap-concat rows, one row per POOLED output pixel
#   w_ref : (4, 512, 128) bf16 one K=512 weight matrix per pool candidate
#   o_ref : (rows, 128)  bf16  lane-dense
# Candidate loop is OUTER so the live accumulator is only (rows, 128) f32.
# ----------------------------------------------------------------------------
def _conv1_kernel(x_ref, w_ref, scale_ref, shift_ref, o_ref):
    x = x_ref[...]
    scale = scale_ref[...]
    shift = shift_ref[...]
    out = None
    for cand in range(4):
        y = jnp.dot(x, w_ref[cand], preferred_element_type=jnp.float32)
        y = jnp.maximum(y * scale + shift, 0.0)          # BN + ReLU per candidate
        out = y if out is None else jnp.maximum(out, y)   # fused MaxPool2d(2)
    o_ref[...] = out.astype(o_ref.dtype)


def conv1_fused(x1, w, scale, shift, *, rows_per_block=128):
    n, m, k = x1.shape                       # (N, 256, 512)
    nb = m // rows_per_block
    return pl.pallas_call(
        _conv1_kernel,
        out_shape=jax.ShapeDtypeStruct((n * m, 128), jnp.bfloat16),
        grid=(n, nb),
        in_specs=[
            pl.BlockSpec((None, rows_per_block, k), lambda i, j: (i, j, 0)),
            pl.BlockSpec((4, k, 128), lambda i, j: (0, 0, 0)),
            pl.BlockSpec((1, 128), lambda i, j: (0, 0)),
            pl.BlockSpec((1, 128), lambda i, j: (0, 0)),
        ],
        out_specs=pl.BlockSpec((rows_per_block, 128), lambda i, j: (i * nb + j, 0)),
        compiler_params=pltpu.CompilerParams(
            dimension_semantics=("parallel", "parallel"),
            vmem_limit_bytes=_VMEM_LIMIT),
    )(x1, w, scale, shift)


# ----------------------------------------------------------------------------
# Kernel B: conv2 (3x3 s2 p1) + folded BN + ReLU + fused 2x2 MaxPool.
#   x_ref : (64, 2048) bf16  rows ordered (pool-member mh, mw, pooled ph, pw)
#   w_ref : (2048, 128) bf16 single deep-K contraction
# The maxpool is 3 elementwise maxes of static 16-row slices (no relayout).
# ----------------------------------------------------------------------------
def _conv2_kernel(x_ref, w_ref, scale_ref, shift_ref, o_ref):
    y = jnp.dot(x_ref[...], w_ref[...], preferred_element_type=jnp.float32)  # (64,128)
    y = jnp.maximum(y * scale_ref[...] + shift_ref[...], 0.0)
    p = jnp.maximum(jnp.maximum(y[0:16], y[16:32]),
                    jnp.maximum(y[32:48], y[48:64]))                         # MaxPool2d(2)
    o_ref[...] = p.astype(o_ref.dtype)


def conv2_fused(x2, w, scale, shift):
    n, m, k = x2.shape                       # (N, 64, 2048)
    return pl.pallas_call(
        _conv2_kernel,
        out_shape=jax.ShapeDtypeStruct((n * 16, 128), jnp.bfloat16),
        grid=(n,),
        in_specs=[
            pl.BlockSpec((None, m, k), lambda i: (i, 0, 0)),
            pl.BlockSpec((k, 128), lambda i: (0, 0)),
            pl.BlockSpec((1, 128), lambda i: (0, 0)),
            pl.BlockSpec((1, 128), lambda i: (0, 0)),
        ],
        out_specs=pl.BlockSpec((16, 128), lambda i: (i, 0)),
        compiler_params=pltpu.CompilerParams(
            dimension_semantics=("parallel",),
            vmem_limit_bytes=_VMEM_LIMIT),
    )(x2, w, scale, shift)


# ----------------------------------------------------------------------------
# Kernel C: conv3 + BN + ReLU + [AdaptiveAvgPool folded into fc1] + fc1 + ReLU
#           + (Dropout=id) + fc2 + ReLU + head (tanh / sigmoid / sigmoid).
#   x_ref  : (4, bm, 1152) bf16  conv3 im2col, axis0 = conv3 output pixel p
#   w1_ref : (4, 128, 512) bf16  fc1 weight with the pool/flatten fold, indexed [p]
# All weights (~1 MB bf16) stay resident in VMEM; per-pixel fc1 dots accumulate so
# no in-kernel reshape is needed.
# ----------------------------------------------------------------------------
def _conv3_fc_kernel(x_ref, c3w_ref, c3s_ref, c3h_ref,
                     w1_ref, b1_ref, w2_ref, b2_ref, wh_ref, bh_ref, o_ref):
    c3s = c3s_ref[...]
    c3h = c3h_ref[...]
    acc1 = None
    for p in range(4):                                    # conv3 output pixels (2x2)
        y3 = jnp.dot(x_ref[p], c3w_ref[...], preferred_element_type=jnp.float32)
        y3 = jnp.maximum(y3 * c3s + c3h, 0.0).astype(jnp.bfloat16)
        c = jnp.dot(y3, w1_ref[p], preferred_element_type=jnp.float32)
        acc1 = c if acc1 is None else acc1 + c
    h = jnp.maximum(acc1 + b1_ref[...], 0.0)              # fc1 + ReLU (Dropout = id)
    h = jnp.dot(h.astype(jnp.bfloat16), w2_ref[...], preferred_element_type=jnp.float32)
    h = jnp.maximum(h + b2_ref[...], 0.0)                 # fc2 + ReLU (Dropout = id)
    y = jnp.dot(h.astype(jnp.bfloat16), wh_ref[...],
                preferred_element_type=jnp.float32) + bh_ref[...]
    col = jax.lax.broadcasted_iota(jnp.int32, y.shape, 1)
    o_ref[...] = jnp.where(col == 0, jnp.tanh(y), jax.nn.sigmoid(y))


def conv3_fc_head(x3, c3w, c3s, c3h, w1, b1, w2, b2, wh, bh, *, bm_max=64):
    _, n, k3 = x3.shape                      # (4, N, 1152)
    bm = min(bm_max, _round_up(n, 8))
    npad = _round_up(n, bm)
    if npad != n:
        x3 = jnp.pad(x3, ((0, 0), (0, npad - n), (0, 0)))
    out = pl.pallas_call(
        _conv3_fc_kernel,
        out_shape=jax.ShapeDtypeStruct((npad, 128), jnp.float32),
        grid=(npad // bm,),
        in_specs=[
            pl.BlockSpec((4, bm, k3), lambda i: (0, i, 0)),
            pl.BlockSpec((k3, 128), lambda i: (0, 0)),
            pl.BlockSpec((1, 128), lambda i: (0, 0)),
            pl.BlockSpec((1, 128), lambda i: (0, 0)),
            pl.BlockSpec((4, 128, 512), lambda i: (0, 0, 0)),
            pl.BlockSpec((1, 512), lambda i: (0, 0)),
            pl.BlockSpec((512, 128), lambda i: (0, 0)),
            pl.BlockSpec((1, 128), lambda i: (0, 0)),
            pl.BlockSpec((128, 128), lambda i: (0, 0)),
            pl.BlockSpec((1, 128), lambda i: (0, 0)),
        ],
        out_specs=pl.BlockSpec((bm, 128), lambda i: (i, 0)),
        compiler_params=pltpu.CompilerParams(
            dimension_semantics=("parallel",),
            vmem_limit_bytes=_VMEM_LIMIT),
    )(x3, c3w, c3s, c3h, w1, b1, w2, b2, wh, bh)
    return out[:n]


# ----------------------------------------------------------------------------
# XLA glue (pure layout plumbing; fuses into a couple of copies per layer)
# ----------------------------------------------------------------------------
def space_to_depth(x, r):
    n, h, w, c = x.shape
    x = x.reshape(n, h // r, r, w // r, r, c)
    x = jnp.transpose(x, (0, 1, 3, 2, 4, 5))
    return x.reshape(n, h // r, w // r, r * r * c)   # channel order (rh, rw, c)


def tap_concat(xs):
    """2x2-window gather over an s2d grid: (N,Hs,Ws,C) -> (N,Hs-1,Ws-1,4C)."""
    n, hs, ws, c = xs.shape
    ho, wo = hs - 1, ws - 1
    taps = [xs[:, qh:qh + ho, qw:qw + wo, :] for qh in range(2) for qw in range(2)]
    return jnp.concatenate(taps, axis=-1)


# ----------------------------------------------------------------------------
# Parameters (matches the module's _init_weights: kaiming_normal fan_out, zero
# bias, fresh BatchNorm running stats).
# ----------------------------------------------------------------------------
def init_params(key, in_ch=3):
    ks = jax.random.split(key, 6)

    def conv_w(k, cout, cin, kh, kw):
        fan_out = cout * kh * kw
        return jax.random.normal(k, (cout, cin, kh, kw), jnp.float32) * jnp.sqrt(2.0 / fan_out)

    def lin_w(k, cout, cin):
        return jax.random.normal(k, (cout, cin), jnp.float32) * jnp.sqrt(2.0 / cout)

    def bn(c):  # gamma, beta, running_mean, running_var
        return (jnp.ones((c,), jnp.float32), jnp.zeros((c,), jnp.float32),
                jnp.zeros((c,), jnp.float32), jnp.ones((c,), jnp.float32))

    return {
        "conv1": (conv_w(ks[0], 32, in_ch, 5, 5), jnp.zeros((32,), jnp.float32)) + bn(32),
        "conv2": (conv_w(ks[1], 64, 32, 3, 3), jnp.zeros((64,), jnp.float32)) + bn(64),
        "conv3": (conv_w(ks[2], 128, 64, 3, 3), jnp.zeros((128,), jnp.float32)) + bn(128),
        "fc1": (lin_w(ks[3], 512, 128 * 4 * 4), jnp.zeros((512,), jnp.float32)),
        "fc2": (lin_w(ks[4], 128, 512), jnp.zeros((128,), jnp.float32)),
        "head": (lin_w(ks[5], 3, 128), jnp.zeros((3,), jnp.float32)),
    }


# ----------------------------------------------------------------------------
# One-time weight prep: fold BN (eval), lay conv weights out for the tap-concat
# matmuls, pad channels to 128 lanes, fold AdaptiveAvgPool+flatten into fc1.
# ----------------------------------------------------------------------------
def prepare_inference_params(params, eps=1e-5):
    def fold(b, g, be, m, v):
        s = np.asarray(g) / np.sqrt(np.asarray(v) + eps)
        h = (np.asarray(b) - np.asarray(m)) * s + np.asarray(be)
        return s.astype(np.float32), h.astype(np.float32)

    def pad_row(v, nlanes):
        o = np.zeros((1, nlanes), np.float32)
        o[0, :v.shape[0]] = v
        return o

    prep = {}

    # conv1: 5x5 s2 p2 + fused maxpool (4 candidates); s2d factor 4; cin padded 3->8.
    w, b, g, be, m, v = params["conv1"]
    w = np.asarray(w)
    s, hsh = fold(b, g, be, m, v)
    cout, cin, k, _ = w.shape                      # 32, 3, 5
    cinp = 8
    weff = np.zeros((4, 2, 2, 16 * cinp, 128), np.float32)   # (cand, qh, qw, within-tap, out)
    for a in range(2):
        for bb in range(2):
            cand = a * 2 + bb
            for di in range(k):
                for dj in range(k):
                    rh_t, rw_t = 2 * a + di, 2 * bb + dj
                    qh, rh = rh_t // 4, rh_t % 4
                    qw, rw = rw_t // 4, rw_t % 4
                    base = (rh * 4 + rw) * cinp
                    weff[cand, qh, qw, base:base + cin, :cout] = w[:, :, di, dj].T
    prep["c1_w"] = jnp.asarray(weff.reshape(4, 512, 128), jnp.bfloat16)
    prep["c1_scale"] = jnp.asarray(pad_row(s, 128))
    prep["c1_shift"] = jnp.asarray(pad_row(hsh, 128))

    # conv2: 3x3 s2 p1; s2d factor 2, inputs carried 128-padded; single K=2048 matrix.
    w, b, g, be, m, v = params["conv2"]
    w = np.asarray(w)
    s, hsh = fold(b, g, be, m, v)
    cout, cin, k, _ = w.shape                      # 64, 32, 3
    cinp = 128
    weff = np.zeros((2, 2, 4, cinp, 128), np.float32)        # (qh, qw, phase, cin, out)
    for di in range(k):
        for dj in range(k):
            qh, rh = di // 2, di % 2
            qw, rw = dj // 2, dj % 2
            weff[qh, qw, rh * 2 + rw, :cin, :cout] = w[:, :, di, dj].T
    prep["c2_w"] = jnp.asarray(weff.reshape(2048, 128), jnp.bfloat16)
    prep["c2_scale"] = jnp.asarray(pad_row(s, 128))
    prep["c2_shift"] = jnp.asarray(pad_row(hsh, 128))

    # conv3: 3x3 s2 p1 via im2col; K rows ordered (kh, kw, c_padded128).
    w, b, g, be, m, v = params["conv3"]
    w = np.asarray(w)
    s, hsh = fold(b, g, be, m, v)
    cout, cin, k, _ = w.shape                      # 128, 64, 3
    cinp = 128
    wmat = np.zeros((k * k * cinp, cout), np.float32)
    for di in range(k):
        for dj in range(k):
            base = (di * k + dj) * cinp
            wmat[base:base + cin, :] = w[:, :, di, dj].T
    prep["c3_w"] = jnp.asarray(wmat, jnp.bfloat16)
    prep["c3_scale"] = jnp.asarray(pad_row(s, cout))
    prep["c3_shift"] = jnp.asarray(pad_row(hsh, cout))

    # fc1 with AdaptiveAvgPool2d((4,4)) (pure 2x2 replication of the 2x2 conv3 map)
    # and the PyTorch (C,H,W) flatten folded in.  Indexed [conv3 pixel p, channel c, :].
    w1, b1 = params["fc1"]
    w1t = np.asarray(w1).T                         # (2048, 512), rows ordered c*16 + h*4 + w
    w1f = np.zeros((4, 128, 512), np.float32)
    for c in range(128):
        for hh in range(4):
            for ww in range(4):
                p = (hh // 2) * 2 + (ww // 2)
                w1f[p, c, :] += w1t[c * 16 + hh * 4 + ww, :]
    prep["fc1_w"] = jnp.asarray(w1f, jnp.bfloat16)
    prep["fc1_b"] = jnp.asarray(np.asarray(b1).reshape(1, -1), jnp.float32)

    w2, b2 = params["fc2"]
    prep["fc2_w"] = jnp.asarray(np.asarray(w2).T, jnp.bfloat16)
    prep["fc2_b"] = jnp.asarray(np.asarray(b2).reshape(1, -1), jnp.float32)

    wh, bh = params["head"]
    whp = np.zeros((128, 128), np.float32)
    whp[:, :3] = np.asarray(wh).T
    bhp = np.zeros((1, 128), np.float32)
    bhp[0, :3] = np.asarray(bh)
    prep["head_w"] = jnp.asarray(whp, jnp.bfloat16)
    prep["head_b"] = jnp.asarray(bhp, jnp.float32)
    return prep


# ----------------------------------------------------------------------------
# Full forward pass (inference semantics of LightweightBCModel) — 3 pallas_calls.
# ----------------------------------------------------------------------------
def lightweight_bc_forward(x_nchw, prep):
    n, cin, h, w = x_nchw.shape
    assert h == 64 and w == 64, "kernelization (s2d factors + pool fold) assumes 64x64 input"
    # TODO(synk): other resolutions need different s2d plumbing and a real adaptive-pool path.

    # --- conv1 + BN + ReLU + MaxPool2 (Kernel A) ---
    x = jnp.transpose(x_nchw, (0, 2, 3, 1)).astype(jnp.bfloat16)          # NCHW -> NHWC
    x = jnp.pad(x, ((0, 0), (2, 2), (2, 2), (0, 8 - cin)))                # pad 2 spatial, 3->8 ch
    xs = space_to_depth(x, 4)                                             # (N, 17, 17, 128)
    x1 = tap_concat(xs).reshape(n, 256, 512)                              # rows: pooled (ph, pw)
    y1 = conv1_fused(x1, prep["c1_w"], prep["c1_scale"], prep["c1_shift"])
    y1 = y1.reshape(n, 16, 16, 128)

    # --- conv2 + BN + ReLU + MaxPool2 (Kernel B) ---
    y1p = jnp.pad(y1, ((0, 0), (1, 1), (1, 1), (0, 0)))
    y1s = space_to_depth(y1p, 2)                                          # (N, 9, 9, 512)
    x2 = tap_concat(y1s)                                                  # (N, 8, 8, 2048)
    # Reorder output rows to (mh, mw, ph, pw) so the in-kernel maxpool is slice-friendly.
    x2 = x2.reshape(n, 4, 2, 4, 2, 2048)
    x2 = jnp.transpose(x2, (0, 2, 4, 1, 3, 5)).reshape(n, 64, 2048)
    y2 = conv2_fused(x2, prep["c2_w"], prep["c2_scale"], prep["c2_shift"])
    y2 = y2.reshape(n, 4, 4, 128)                                         # pooled conv2 output

    # --- conv3 im2col (tiny glue) + Kernel C: conv3 + BN + ReLU + fc stack + head ---
    y2p = jnp.pad(y2, ((0, 0), (1, 1), (1, 1), (0, 0)))                   # (N, 6, 6, 128)
    patches = [y2p[:, di:di + 3:2, dj:dj + 3:2, :] for di in range(3) for dj in range(3)]
    cols3 = jnp.stack(patches, axis=3).reshape(n, 4, 9 * 128)             # rows (oh, ow)
    x3 = jnp.transpose(cols3, (1, 0, 2))                                  # (4, N, 1152)

    out = conv3_fc_head(x3, prep["c3_w"], prep["c3_scale"], prep["c3_shift"],
                        prep["fc1_w"], prep["fc1_b"], prep["fc2_w"], prep["fc2_b"],
                        prep["head_w"], prep["head_b"])
    return out[:, :3]                                                     # (N, 3)


if __name__ == "__main__":
    key = jax.random.PRNGKey(0)
    pkey, xkey = jax.random.split(key)
    params = init_params(pkey, in_ch=3)
    prep = prepare_inference_params(params)

    # Batch=2, 3-channel 64x64 image (NCHW like the PyTorch module).
    x = jax.random.normal(xkey, (2, 3, 64, 64), dtype=jnp.float32)

    fwd = jax.jit(lightweight_bc_forward)
    out = jax.block_until_ready(fwd(x, prep))

    assert out.shape == (2, 3)
    assert bool(jnp.all(jnp.isfinite(out)))
    # throttle / brake come from sigmoid -> [0, 1]; steering from tanh -> [-1, 1].
    assert bool(jnp.all((out[:, 1:] >= 0.0) & (out[:, 1:] <= 1.0)))
    assert bool(jnp.all(jnp.abs(out[:, 0]) <= 1.0))
    print("KERNEL_OK")
</pallas_src>

<mosaic_0001>
module attributes {stable_mosaic.version = 11 : i64} {
  func.func @_conv1_kernel(%arg0: i32, %arg1: i32, %arg2: memref<1x128x512xbf16, #tpu.memory_space<vmem>>, %arg3: memref<4x512x128xbf16, #tpu.memory_space<vmem>>, %arg4: memref<1x128xf32, #tpu.memory_space<vmem>>, %arg5: memref<1x128xf32, #tpu.memory_space<vmem>>, %arg6: memref<128x128xbf16, #tpu.memory_space<vmem>>) attributes {dimension_semantics = [#tpu.dimension_semantics<parallel>, #tpu.dimension_semantics<parallel>], iteration_bounds = array<i64: 2, 2>, scalar_prefetch = 0 : i64, scratch_operands = 0 : i64, tpu.core_type = #tpu.core_type<tc>, window_params = [{transform_indices = @transform_0, window_bounds = array<i64: 1, 128, 512>}, {pipeline_mode = #tpu.pipeline_mode<synchronous>, transform_indices = @transform_1, window_bounds = array<i64: 4, 512, 128>}, {pipeline_mode = #tpu.pipeline_mode<synchronous>, transform_indices = @transform_2, window_bounds = array<i64: 1, 128>}, {pipeline_mode = #tpu.pipeline_mode<synchronous>, transform_indices = @transform_3, window_bounds = array<i64: 1, 128>}, {transform_indices = @transform_4, window_bounds = array<i64: 128, 128>}]} {
    %c0 = arith.constant 0 : index
    %c0_0 = arith.constant 0 : index
    %c0_1 = arith.constant 0 : index
    %0 = vector.load %arg2[%c0, %c0_0, %c0_1] : memref<1x128x512xbf16, #tpu.memory_space<vmem>>, vector<1x128x512xbf16>
    %1 = vector.shape_cast %0 : vector<1x128x512xbf16> to vector<128x512xbf16>
    %c0_2 = arith.constant 0 : index
    %c0_3 = arith.constant 0 : index
    %2 = vector.load %arg4[%c0_2, %c0_3] : memref<1x128xf32, #tpu.memory_space<vmem>>, vector<1x128xf32>
    %c0_4 = arith.constant 0 : index
    %c0_5 = arith.constant 0 : index
    %3 = vector.load %arg5[%c0_4, %c0_5] : memref<1x128xf32, #tpu.memory_space<vmem>>, vector<1x128xf32>
    %c0_6 = arith.constant 0 : index
    %c0_7 = arith.constant 0 : index
    %c0_8 = arith.constant 0 : index
    %4 = vector.load %arg3[%c0_6, %c0_7, %c0_8] : memref<4x512x128xbf16, #tpu.memory_space<vmem>>, vector<1x512x128xbf16>
    %5 = vector.shape_cast %4 : vector<1x512x128xbf16> to vector<512x128xbf16>
    %cst = arith.constant dense<0.000000e+00> : vector<128x128xf32>
    %6 = tpu.matmul %1, %5, %cst {dimension_numbers = #tpu.dot_dimension_numbers<[1], [0], [0], [1], [0, 0, 1, 1], [], []>} : vector<128x512xbf16>, vector<512x128xbf16>, vector<128x128xf32> -> vector<128x128xf32>
    %7 = vector.broadcast %2 : vector<1x128xf32> to vector<128x128xf32>
    %8 = arith.mulf %6, %7 : vector<128x128xf32>
    %9 = vector.broadcast %3 : vector<1x128xf32> to vector<128x128xf32>
    %10 = arith.addf %8, %9 : vector<128x128xf32>
    %cst_9 = arith.constant 0.000000e+00 : f32
    %11 = vector.broadcast %cst_9 : f32 to vector<128x128xf32>
    %12 = arith.maximumf %10, %11 : vector<128x128xf32>
    %c1 = arith.constant 1 : index
    %c0_10 = arith.constant 0 : index
    %c0_11 = arith.constant 0 : index
    %13 = vector.load %arg3[%c1, %c0_10, %c0_11] : memref<4x512x128xbf16, #tpu.memory_space<vmem>>, vector<1x512x128xbf16>
    %14 = vector.shape_cast %13 : vector<1x512x128xbf16> to vector<512x128xbf16>
    %cst_12 = arith.constant dense<0.000000e+00> : vector<128x128xf32>
    %15 = tpu.matmul %1, %14, %cst_12 {dimension_numbers = #tpu.dot_dimension_numbers<[1], [0], [0], [1], [0, 0, 1, 1], [], []>} : vector<128x512xbf16>, vector<512x128xbf16>, vector<128x128xf32> -> vector<128x128xf32>
    %16 = vector.broadcast %2 : vector<1x128xf32> to vector<128x128xf32>
    %17 = arith.mulf %15, %16 : vector<128x128xf32>
    %18 = vector.broadcast %3 : vector<1x128xf32> to vector<128x128xf32>
    %19 = arith.addf %17, %18 : vector<128x128xf32>
    %cst_13 = arith.constant 0.000000e+00 : f32
    %20 = vector.broadcast %cst_13 : f32 to vector<128x128xf32>
    %21 = arith.maximumf %19, %20 : vector<128x128xf32>
    %22 = arith.maximumf %12, %21 : vector<128x128xf32>
    %c2 = arith.constant 2 : index
    %c0_14 = arith.constant 0 : index
    %c0_15 = arith.constant 0 : index
    %23 = vector.load %arg3[%c2, %c0_14, %c0_15] : memref<4x512x128xbf16, #tpu.memory_space<vmem>>, vector<1x512x128xbf16>
    %24 = vector.shape_cast %23 : vector<1x512x128xbf16> to vector<512x128xbf16>
    %cst_16 = arith.constant dense<0.000000e+00> : vector<128x128xf32>
    %25 = tpu.matmul %1, %24, %cst_16 {dimension_numbers = #tpu.dot_dimension_numbers<[1], [0], [0], [1], [0, 0, 1, 1], [], []>} : vector<128x512xbf16>, vector<512x128xbf16>, vector<128x128xf32> -> vector<128x128xf32>
    %26 = vector.broadcast %2 : vector<1x128xf32> to vector<128x128xf32>
    %27 = arith.mulf %25, %26 : vector<128x128xf32>
    %28 = vector.broadcast %3 : vector<1x128xf32> to vector<128x128xf32>
    %29 = arith.addf %27, %28 : vector<128x128xf32>
    %cst_17 = arith.constant 0.000000e+00 : f32
    %30 = vector.broadcast %cst_17 : f32 to vector<128x128xf32>
    %31 = arith.maximumf %29, %30 : vector<128x128xf32>
    %32 = arith.maximumf %22, %31 : vector<128x128xf32>
    %c3 = arith.constant 3 : index
    %c0_18 = arith.constant 0 : index
    %c0_19 = arith.constant 0 : index
    %33 = vector.load %arg3[%c3, %c0_18, %c0_19] : memref<4x512x128xbf16, #tpu.memory_space<vmem>>, vector<1x512x128xbf16>
    %34 = vector.shape_cast %33 : vector<1x512x128xbf16> to vector<512x128xbf16>
    %cst_20 = arith.constant dense<0.000000e+00> : vector<128x128xf32>
    %35 = tpu.matmul %1, %34, %cst_20 {dimension_numbers = #tpu.dot_dimension_numbers<[1], [0], [0], [1], [0, 0, 1, 1], [], []>} : vector<128x512xbf16>, vector<512x128xbf16>, vector<128x128xf32> -> vector<128x128xf32>
    %36 = vector.broadcast %2 : vector<1x128xf32> to vector<128x128xf32>
    %37 = arith.mulf %35, %36 : vector<128x128xf32>
    %38 = vector.broadcast %3 : vector<1x128xf32> to vector<128x128xf32>
    %39 = arith.addf %37, %38 : vector<128x128xf32>
    %cst_21 = arith.constant 0.000000e+00 : f32
    %40 = vector.broadcast %cst_21 : f32 to vector<128x128xf32>
    %41 = arith.maximumf %39, %40 : vector<128x128xf32>
    %42 = arith.maximumf %32, %41 : vector<128x128xf32>
    %43 = arith.truncf %42 : vector<128x128xf32> to vector<128x128xbf16>
    %c0_22 = arith.constant 0 : index
    %c0_23 = arith.constant 0 : index
    %44 = vector.load %arg6[%c0_22, %c0_23] : memref<128x128xbf16, #tpu.memory_space<vmem>>, vector<128x128xbf16>
    tpu.vector_store %arg6[%c0_22, %c0_23], %43 {strides = array<i32>} : memref<128x128xbf16, #tpu.memory_space<vmem>>, vector<128x128xbf16>,
    return
  }
  func.func @transform_0(%arg0: i32, %arg1: i32) -> (i32, i32, i32) {
    %c0_i32 = arith.constant 0 : i32
    %c0_i32_0 = arith.constant 0 : i32
    return %arg0, %arg1, %c0_i32 : i32, i32, i32
  }
  func.func @transform_1(%arg0: i32, %arg1: i32) -> (i32, i32, i32) {
    %c0_i32 = arith.constant 0 : i32
    %c0_i32_0 = arith.constant 0 : i32
    %c0_i32_1 = arith.constant 0 : i32
    %c0_i32_2 = arith.constant 0 : i32
    return %c0_i32, %c0_i32_0, %c0_i32_1 : i32, i32, i32
  }
  func.func @transform_2(%arg0: i32, %arg1: i32) -> (i32, i32) {
    %c0_i32 = arith.constant 0 : i32
    %c0_i32_0 = arith.constant 0 : i32
    %c0_i32_1 = arith.constant 0 : i32
    return %c0_i32, %c0_i32_0 : i32, i32
  }
  func.func @transform_3(%arg0: i32, %arg1: i32) -> (i32, i32) {
    %c0_i32 = arith.constant 0 : i32
    %c0_i32_0 = arith.constant 0 : i32
    %c0_i32_1 = arith.constant 0 : i32
    return %c0_i32, %c0_i32_0 : i32, i32
  }
  func.func @transform_4(%arg0: i32, %arg1: i32) -> (i32, i32) {
    %c2_i32 = arith.constant 2 : i32
    %0 = arith.muli %arg0, %c2_i32 : i32
    %1 = arith.addi %0, %arg1 : i32
    %c0_i32 = arith.constant 0 : i32
    %c0_i32_0 = arith.constant 0 : i32
    return %1, %c0_i32 : i32, i32
  }
}

module attributes {stable_mosaic.version = 11 : i64} {
  func.func @_conv2_kernel(%arg0: i32, %arg1: memref<1x64x2048xbf16, #tpu.memory_space<vmem>>, %arg2: memref<2048x128xbf16, #tpu.memory_space<vmem>>, %arg3: memref<1x128xf32, #tpu.memory_space<vmem>>, %arg4: memref<1x128xf32, #tpu.memory_space<vmem>>, %arg5: memref<16x128xbf16, #tpu.memory_space<vmem>>) attributes {dimension_semantics = [#tpu.dimension_semantics<parallel>], iteration_bounds = array<i64: 2>, scalar_prefetch = 0 : i64, scratch_operands = 0 : i64, tpu.core_type = #tpu.core_type<tc>, window_params = [{transform_indices = @transform_0, window_bounds = array<i64: 1, 64, 2048>}, {pipeline_mode = #tpu.pipeline_mode<synchronous>, transform_indices = @transform_1, window_bounds = array<i64: 2048, 128>}, {pipeline_mode = #tpu.pipeline_mode<synchronous>, transform_indices = @transform_2, window_bounds = array<i64: 1, 128>}, {pipeline_mode = #tpu.pipeline_mode<synchronous>, transform_indices = @transform_3, window_bounds = array<i64: 1, 128>}, {transform_indices = @transform_4, window_bounds = array<i64: 16, 128>}]} {
    %c0 = arith.constant 0 : index
    %c0_0 = arith.constant 0 : index
    %c0_1 = arith.constant 0 : index
    %0 = vector.load %arg1[%c0, %c0_0, %c0_1] : memref<1x64x2048xbf16, #tpu.memory_space<vmem>>, vector<1x64x2048xbf16>
    %1 = vector.shape_cast %0 : vector<1x64x2048xbf16> to vector<64x2048xbf16>
    %c0_2 = arith.constant 0 : index
    %c0_3 = arith.constant 0 : index
    %2 = vector.load %arg2[%c0_2, %c0_3] : memref<2048x128xbf16, #tpu.memory_space<vmem>>, vector<2048x128xbf16>
    %cst = arith.constant dense<0.000000e+00> : vector<64x128xf32>
    %3 = tpu.matmul %1, %2, %cst {dimension_numbers = #tpu.dot_dimension_numbers<[1], [0], [0], [1], [0, 0, 1, 1], [], []>} : vector<64x2048xbf16>, vector<2048x128xbf16>, vector<64x128xf32> -> vector<64x128xf32>
    %c0_4 = arith.constant 0 : index
    %c0_5 = arith.constant 0 : index
    %4 = vector.load %arg3[%c0_4, %c0_5] : memref<1x128xf32, #tpu.memory_space<vmem>>, vector<1x128xf32>
    %5 = vector.broadcast %4 : vector<1x128xf32> to vector<64x128xf32>
    %6 = arith.mulf %3, %5 : vector<64x128xf32>
    %c0_6 = arith.constant 0 : index
    %c0_7 = arith.constant 0 : index
    %7 = vector.load %arg4[%c0_6, %c0_7] : memref<1x128xf32, #tpu.memory_space<vmem>>, vector<1x128xf32>
    %8 = vector.broadcast %7 : vector<1x128xf32> to vector<64x128xf32>
    %9 = arith.addf %6, %8 : vector<64x128xf32>
    %cst_8 = arith.constant 0.000000e+00 : f32
    %10 = vector.broadcast %cst_8 : f32 to vector<64x128xf32>
    %11 = arith.maximumf %9, %10 : vector<64x128xf32>
    %12 = vector.extract_strided_slice %11 {offsets = [0, 0], sizes = [16, 128], strides = [1, 1]} : vector<64x128xf32> to vector<16x128xf32>
    %13 = vector.extract_strided_slice %11 {offsets = [16, 0], sizes = [16, 128], strides = [1, 1]} : vector<64x128xf32> to vector<16x128xf32>
    %14 = arith.maximumf %12, %13 : vector<16x128xf32>
    %15 = vector.extract_strided_slice %11 {offsets = [32, 0], sizes = [16, 128], strides = [1, 1]} : vector<64x128xf32> to vector<16x128xf32>
    %16 = vector.extract_strided_slice %11 {offsets = [48, 0], sizes = [16, 128], strides = [1, 1]} : vector<64x128xf32> to vector<16x128xf32>
    %17 = arith.maximumf %15, %16 : vector<16x128xf32>
    %18 = arith.maximumf %14, %17 : vector<16x128xf32>
    %19 = arith.truncf %18 : vector<16x128xf32> to vector<16x128xbf16>
    %c0_9 = arith.constant 0 : index
    %c0_10 = arith.constant 0 : index
    %20 = vector.load %arg5[%c0_9, %c0_10] : memref<16x128xbf16, #tpu.memory_space<vmem>>, vector<16x128xbf16>
    tpu.vector_store %arg5[%c0_9, %c0_10], %19 {strides = array<i32>} : memref<16x128xbf16, #tpu.memory_space<vmem>>, vector<16x128xbf16>,
    return
  }
  func.func @transform_0(%arg0: i32) -> (i32, i32, i32) {
    %c0_i32 = arith.constant 0 : i32
    %c0_i32_0 = arith.constant 0 : i32
    %c0_i32_1 = arith.constant 0 : i32
    return %arg0, %c0_i32, %c0_i32_0 : i32, i32, i32
  }
  func.func @transform_1(%arg0: i32) -> (i32, i32) {
    %c0_i32 = arith.constant 0 : i32
    %c0_i32_0 = arith.constant 0 : i32
    %c0_i32_1 = arith.constant 0 : i32
    return %c0_i32, %c0_i32_0 : i32, i32
  }
  func.func @transform_2(%arg0: i32) -> (i32, i32) {
    %c0_i32 = arith.constant 0 : i32
    %c0_i32_0 = arith.constant 0 : i32
    %c0_i32_1 = arith.constant 0 : i32
    return %c0_i32, %c0_i32_0 : i32, i32
  }
  func.func @transform_3(%arg0: i32) -> (i32, i32) {
    %c0_i32 = arith.constant 0 : i32
    %c0_i32_0 = arith.constant 0 : i32
    %c0_i32_1 = arith.constant 0 : i32
    return %c0_i32, %c0_i32_0 : i32, i32
  }
  func.func @transform_4(%arg0: i32) -> (i32, i32) {
    %c0_i32 = arith.constant 0 : i32
    %c0_i32_0 = arith.constant 0 : i32
    return %arg0, %c0_i32 : i32, i32
  }
}

module attributes {stable_mosaic.version = 11 : i64} {
  func.func @_conv3_fc_kernel(%arg0: i32, %arg1: memref<4x8x1152xbf16, #tpu.memory_space<vmem>>, %arg2: memref<1152x128xbf16, #tpu.memory_space<vmem>>, %arg3: memref<1x128xf32, #tpu.memory_space<vmem>>, %arg4: memref<1x128xf32, #tpu.memory_space<vmem>>, %arg5: memref<4x128x512xbf16, #tpu.memory_space<vmem>>, %arg6: memref<1x512xf32, #tpu.memory_space<vmem>>, %arg7: memref<512x128xbf16, #tpu.memory_space<vmem>>, %arg8: memref<1x128xf32, #tpu.memory_space<vmem>>, %arg9: memref<128x128xbf16, #tpu.memory_space<vmem>>, %arg10: memref<1x128xf32, #tpu.memory_space<vmem>>, %arg11: memref<8x128xf32, #tpu.memory_space<vmem>>) attributes {dimension_semantics = [#tpu.dimension_semantics<parallel>], iteration_bounds = array<i64: 1>, scalar_prefetch = 0 : i64, scratch_operands = 0 : i64, tpu.core_type = #tpu.core_type<tc>, window_params = [{transform_indices = @transform_0, window_bounds = array<i64: 4, 8, 1152>}, {pipeline_mode = #tpu.pipeline_mode<synchronous>, transform_indices = @transform_1, window_bounds = array<i64: 1152, 128>}, {pipeline_mode = #tpu.pipeline_mode<synchronous>, transform_indices = @transform_2, window_bounds = array<i64: 1, 128>}, {pipeline_mode = #tpu.pipeline_mode<synchronous>, transform_indices = @transform_3, window_bounds = array<i64: 1, 128>}, {pipeline_mode = #tpu.pipeline_mode<synchronous>, transform_indices = @transform_4, window_bounds = array<i64: 4, 128, 512>}, {pipeline_mode = #tpu.pipeline_mode<synchronous>, transform_indices = @transform_5, window_bounds = array<i64: 1, 512>}, {pipeline_mode = #tpu.pipeline_mode<synchronous>, transform_indices = @transform_6, window_bounds = array<i64: 512, 128>}, {pipeline_mode = #tpu.pipeline_mode<synchronous>, transform_indices = @transform_7, window_bounds = array<i64: 1, 128>}, {pipeline_mode = #tpu.pipeline_mode<synchronous>, transform_indices = @transform_8, window_bounds = array<i64: 128, 128>}, {pipeline_mode = #tpu.pipeline_mode<synchronous>, transform_indices = @transform_9, window_bounds = array<i64: 1, 128>}, {transform_indices = @transform_10, window_bounds = array<i64: 8, 128>}]} {
    %c0 = arith.constant 0 : index
    %c0_0 = arith.constant 0 : index
    %0 = vector.load %arg3[%c0, %c0_0] : memref<1x128xf32, #tpu.memory_space<vmem>>, vector<1x128xf32>
    %c0_1 = arith.constant 0 : index
    %c0_2 = arith.constant 0 : index
    %1 = vector.load %arg4[%c0_1, %c0_2] : memref<1x128xf32, #tpu.memory_space<vmem>>, vector<1x128xf32>
    %c0_3 = arith.constant 0 : index
    %c0_4 = arith.constant 0 : index
    %c0_5 = arith.constant 0 : index
    %2 = vector.load %arg1[%c0_3, %c0_4, %c0_5] : memref<4x8x1152xbf16, #tpu.memory_space<vmem>>, vector<1x8x1152xbf16>
    %3 = vector.shape_cast %2 : vector<1x8x1152xbf16> to vector<8x1152xbf16>
    %c0_6 = arith.constant 0 : index
    %c0_7 = arith.constant 0 : index
    %4 = vector.load %arg2[%c0_6, %c0_7] : memref<1152x128xbf16, #tpu.memory_space<vmem>>, vector<1152x128xbf16>
    %cst = arith.constant dense<0.000000e+00> : vector<8x128xf32>
    %5 = tpu.matmul %3, %4, %cst {dimension_numbers = #tpu.dot_dimension_numbers<[1], [0], [0], [1], [0, 0, 1, 1], [], []>} : vector<8x1152xbf16>, vector<1152x128xbf16>, vector<8x128xf32> -> vector<8x128xf32>
    %6 = vector.broadcast %0 : vector<1x128xf32> to vector<8x128xf32>
    %7 = arith.mulf %5, %6 : vector<8x128xf32>
    %8 = vector.broadcast %1 : vector<1x128xf32> to vector<8x128xf32>
    %9 = arith.addf %7, %8 : vector<8x128xf32>
    %cst_8 = arith.constant 0.000000e+00 : f32
    %10 = vector.broadcast %cst_8 : f32 to vector<8x128xf32>
    %11 = arith.maximumf %9, %10 : vector<8x128xf32>
    %12 = arith.truncf %11 : vector<8x128xf32> to vector<8x128xbf16>
    %c0_9 = arith.constant 0 : index
    %c0_10 = arith.constant 0 : index
    %c0_11 = arith.constant 0 : index
    %13 = vector.load %arg5[%c0_9, %c0_10, %c0_11] : memref<4x128x512xbf16, #tpu.memory_space<vmem>>, vector<1x128x512xbf16>
    %14 = vector.shape_cast %13 : vector<1x128x512xbf16> to vector<128x512xbf16>
    %cst_12 = arith.constant dense<0.000000e+00> : vector<8x512xf32>
    %15 = tpu.matmul %12, %14, %cst_12 {dimension_numbers = #tpu.dot_dimension_numbers<[1], [0], [0], [1], [0, 0, 1, 1], [], []>} : vector<8x128xbf16>, vector<128x512xbf16>, vector<8x512xf32> -> vector<8x512xf32>
    %c1 = arith.constant 1 : index
    %c0_13 = arith.constant 0 : index
    %c0_14 = arith.constant 0 : index
    %16 = vector.load %arg1[%c1, %c0_13, %c0_14] : memref<4x8x1152xbf16, #tpu.memory_space<vmem>>, vector<1x8x1152xbf16>
    %17 = vector.shape_cast %16 : vector<1x8x1152xbf16> to vector<8x1152xbf16>
    %c0_15 = arith.constant 0 : index
    %c0_16 = arith.constant 0 : index
    %18 = vector.load %arg2[%c0_15, %c0_16] : memref<1152x128xbf16, #tpu.memory_space<vmem>>, vector<1152x128xbf16>
    %cst_17 = arith.constant dense<0.000000e+00> : vector<8x128xf32>
    %19 = tpu.matmul %17, %18, %cst_17 {dimension_numbers = #tpu.dot_dimension_numbers<[1], [0], [0], [1], [0, 0, 1, 1], [], []>} : vector<8x1152xbf16>, vector<1152x128xbf16>, vector<8x128xf32> -> vector<8x128xf32>
    %20 = vector.broadcast %0 : vector<1x128xf32> to vector<8x128xf32>
    %21 = arith.mulf %19, %20 : vector<8x128xf32>
    %22 = vector.broadcast %1 : vector<1x128xf32> to vector<8x128xf32>
    %23 = arith.addf %21, %22 : vector<8x128xf32>
    %cst_18 = arith.constant 0.000000e+00 : f32
    %24 = vector.broadcast %cst_18 : f32 to vector<8x128xf32>
    %25 = arith.maximumf %23, %24 : vector<8x128xf32>
    %26 = arith.truncf %25 : vector<8x128xf32> to vector<8x128xbf16>
    %c1_19 = arith.constant 1 : index
    %c0_20 = arith.constant 0 : index
    %c0_21 = arith.constant 0 : index
    %27 = vector.load %arg5[%c1_19, %c0_20, %c0_21] : memref<4x128x512xbf16, #tpu.memory_space<vmem>>, vector<1x128x512xbf16>
    %28 = vector.shape_cast %27 : vector<1x128x512xbf16> to vector<128x512xbf16>
    %cst_22 = arith.constant dense<0.000000e+00> : vector<8x512xf32>
    %29 = tpu.matmul %26, %28, %cst_22 {dimension_numbers = #tpu.dot_dimension_numbers<[1], [0], [0], [1], [0, 0, 1, 1], [], []>} : vector<8x128xbf16>, vector<128x512xbf16>, vector<8x512xf32> -> vector<8x512xf32>
    %30 = arith.addf %15, %29 : vector<8x512xf32>
    %c2 = arith.constant 2 : index
    %c0_23 = arith.constant 0 : index
    %c0_24 = arith.constant 0 : index
    %31 = vector.load %arg1[%c2, %c0_23, %c0_24] : memref<4x8x1152xbf16, #tpu.memory_space<vmem>>, vector<1x8x1152xbf16>
    %32 = vector.shape_cast %31 : vector<1x8x1152xbf16> to vector<8x1152xbf16>
    %c0_25 = arith.constant 0 : index
    %c0_26 = arith.constant 0 : index
    %33 = vector.load %arg2[%c0_25, %c0_26] : memref<1152x128xbf16, #tpu.memory_space<vmem>>, vector<1152x128xbf16>
    %cst_27 = arith.constant dense<0.000000e+00> : vector<8x128xf32>
    %34 = tpu.matmul %32, %33, %cst_27 {dimension_numbers = #tpu.dot_dimension_numbers<[1], [0], [0], [1], [0, 0, 1, 1], [], []>} : vector<8x1152xbf16>, vector<1152x128xbf16>, vector<8x128xf32> -> vector<8x128xf32>
    %35 = vector.broadcast %0 : vector<1x128xf32> to vector<8x128xf32>
    %36 = arith.mulf %34, %35 : vector<8x128xf32>
    %37 = vector.broadcast %1 : vector<1x128xf32> to vector<8x128xf32>
    %38 = arith.addf %36, %37 : vector<8x128xf32>
    %cst_28 = arith.constant 0.000000e+00 : f32
    %39 = vector.broadcast %cst_28 : f32 to vector<8x128xf32>
    %40 = arith.maximumf %38, %39 : vector<8x128xf32>
    %41 = arith.truncf %40 : vector<8x128xf32> to vector<8x128xbf16>
    %c2_29 = arith.constant 2 : index
    %c0_30 = arith.constant 0 : index
    %c0_31 = arith.constant 0 : index
    %42 = vector.load %arg5[%c2_29, %c0_30, %c0_31] : memref<4x128x512xbf16, #tpu.memory_space<vmem>>, vector<1x128x512xbf16>
    %43 = vector.shape_cast %42 : vector<1x128x512xbf16> to vector<128x512xbf16>
    %cst_32 = arith.constant dense<0.000000e+00> : vector<8x512xf32>
    %44 = tpu.matmul %41, %43, %cst_32 {dimension_numbers = #tpu.dot_dimension_numbers<[1], [0], [0], [1], [0, 0, 1, 1], [], []>} : vector<8x128xbf16>, vector<128x512xbf16>, vector<8x512xf32> -> vector<8x512xf32>
    %45 = arith.addf %30, %44 : vector<8x512xf32>
    %c3 = arith.constant 3 : index
    %c0_33 = arith.constant 0 : index
    %c0_34 = arith.constant 0 : index
    %46 = vector.load %arg1[%c3, %c0_33, %c0_34] : memref<4x8x1152xbf16, #tpu.memory_space<vmem>>, vector<1x8x1152xbf16>
    %47 = vector.shape_cast %46 : vector<1x8x1152xbf16> to vector<8x1152xbf16>
    %c0_35 = arith.constant 0 : index
    %c0_36 = arith.constant 0 : index
    %48 = vector.load %arg2[%c0_35, %c0_36] : memref<1152x128xbf16, #tpu.memory_space<vmem>>, vector<1152x128xbf16>
    %cst_37 = arith.constant dense<0.000000e+00> : vector<8x128xf32>
    %49 = tpu.matmul %47, %48, %cst_37 {dimension_numbers = #tpu.dot_dimension_numbers<[1], [0], [0], [1], [0, 0, 1, 1], [], []>} : vector<8x1152xbf16>, vector<1152x128xbf16>, vector<8x128xf32> -> vector<8x128xf32>
    %50 = vector.broadcast %0 : vector<1x128xf32> to vector<8x128xf32>
    %51 = arith.mulf %49, %50 : vector<8x128xf32>
    %52 = vector.broadcast %1 : vector<1x128xf32> to vector<8x128xf32>
    %53 = arith.addf %51, %52 : vector<8x128xf32>
    %cst_38 = arith.constant 0.000000e+00 : f32
    %54 = vector.broadcast %cst_38 : f32 to vector<8x128xf32>
    %55 = arith.maximumf %53, %54 : vector<8x128xf32>
    %56 = arith.truncf %55 : vector<8x128xf32> to vector<8x128xbf16>
    %c3_39 = arith.constant 3 : index
    %c0_40 = arith.constant 0 : index
    %c0_41 = arith.constant 0 : index
    %57 = vector.load %arg5[%c3_39, %c0_40, %c0_41] : memref<4x128x512xbf16, #tpu.memory_space<vmem>>, vector<1x128x512xbf16>
    %58 = vector.shape_cast %57 : vector<1x128x512xbf16> to vector<128x512xbf16>
    %cst_42 = arith.constant dense<0.000000e+00> : vector<8x512xf32>
    %59 = tpu.matmul %56, %58, %cst_42 {dimension_numbers = #tpu.dot_dimension_numbers<[1], [0], [0], [1], [0, 0, 1, 1], [], []>} : vector<8x128xbf16>, vector<128x512xbf16>, vector<8x512xf32> -> vector<8x512xf32>
    %60 = arith.addf %45, %59 : vector<8x512xf32>
    %c0_43 = arith.constant 0 : index
    %c0_44 = arith.constant 0 : index
    %61 = vector.load %arg6[%c0_43, %c0_44] : memref<1x512xf32, #tpu.memory_space<vmem>>, vector<1x512xf32>
    %62 = vector.broadcast %61 : vector<1x512xf32> to vector<8x512xf32>
    %63 = arith.addf %60, %62 : vector<8x512xf32>
    %cst_45 = arith.constant 0.000000e+00 : f32
    %64 = vector.broadcast %cst_45 : f32 to vector<8x512xf32>
    %65 = arith.maximumf %63, %64 : vector<8x512xf32>
    %66 = arith.truncf %65 : vector<8x512xf32> to vector<8x512xbf16>
    %c0_46 = arith.constant 0 : index
    %c0_47 = arith.constant 0 : index
    %67 = vector.load %arg7[%c0_46, %c0_47] : memref<512x128xbf16, #tpu.memory_space<vmem>>, vector<512x128xbf16>
    %cst_48 = arith.constant dense<0.000000e+00> : vector<8x128xf32>
    %68 = tpu.matmul %66, %67, %cst_48 {dimension_numbers = #tpu.dot_dimension_numbers<[1], [0], [0], [1], [0, 0, 1, 1], [], []>} : vector<8x512xbf16>, vector<512x128xbf16>, vector<8x128xf32> -> vector<8x128xf32>
    %c0_49 = arith.constant 0 : index
    %c0_50 = arith.constant 0 : index
    %69 = vector.load %arg8[%c0_49, %c0_50] : memref<1x128xf32, #tpu.memory_space<vmem>>, vector<1x128xf32>
    %70 = vector.broadcast %69 : vector<1x128xf32> to vector<8x128xf32>
    %71 = arith.addf %68, %70 : vector<8x128xf32>
    %cst_51 = arith.constant 0.000000e+00 : f32
    %72 = vector.broadcast %cst_51 : f32 to vector<8x128xf32>
    %73 = arith.maximumf %71, %72 : vector<8x128xf32>
    %74 = arith.truncf %73 : vector<8x128xf32> to vector<8x128xbf16>
    %c0_52 = arith.constant 0 : index
    %c0_53 = arith.constant 0 : index
    %75 = vector.load %arg9[%c0_52, %c0_53] : memref<128x128xbf16, #tpu.memory_space<vmem>>, vector<128x128xbf16>
    %cst_54 = arith.constant dense<0.000000e+00> : vector<8x128xf32>
    %76 = tpu.matmul %74, %75, %cst_54 {dimension_numbers = #tpu.dot_dimension_numbers<[1], [0], [0], [1], [0, 0, 1, 1], [], []>} : vector<8x128xbf16>, vector<128x128xbf16>, vector<8x128xf32> -> vector<8x128xf32>
    %c0_55 = arith.constant 0 : index
    %c0_56 = arith.constant 0 : index
    %77 = vector.load %arg10[%c0_55, %c0_56] : memref<1x128xf32, #tpu.memory_space<vmem>>, vector<1x128xf32>
    %78 = vector.broadcast %77 : vector<1x128xf32> to vector<8x128xf32>
    %79 = arith.addf %76, %78 : vector<8x128xf32>
    %80 = tpu.iota {dimensions = array<i32: 1>} : vector<8x128xi32>
    %c0_i32 = arith.constant 0 : i32
    %81 = vector.broadcast %c0_i32 : i32 to vector<8x128xi32>
    %82 = arith.cmpi eq, %80, %81 : vector<8x128xi32>
    %83 = math.tanh %79 : vector<8x128xf32>
    %84 = arith.negf %79 : vector<8x128xf32>
    %85 = math.exp %84 : vector<8x128xf32>
    %cst_57 = arith.constant 1.000000e+00 : f32
    %86 = vector.broadcast %cst_57 : f32 to vector<8x128xf32>
    %87 = arith.addf %86, %85 : vector<8x128xf32>
    %88 = arith.divf %86, %87 : vector<8x128xf32>
    %89 = arith.select %82, %83, %88 : vector<8x128xi1>, vector<8x128xf32>
    %c0_58 = arith.constant 0 : index
    %c0_59 = arith.constant 0 : index
    %90 = vector.load %arg11[%c0_58, %c0_59] : memref<8x128xf32, #tpu.memory_space<vmem>>, vector<8x128xf32>
    tpu.vector_store %arg11[%c0_58, %c0_59], %89 {strides = array<i32>} : memref<8x128xf32, #tpu.memory_space<vmem>>, vector<8x128xf32>,
    return
  }
  func.func @transform_0(%arg0: i32) -> (i32, i32, i32) {
    %c0_i32 = arith.constant 0 : i32
    %c0_i32_0 = arith.constant 0 : i32
    %c0_i32_1 = arith.constant 0 : i32
    return %c0_i32, %arg0, %c0_i32_0 : i32, i32, i32
  }
  func.func @transform_1(%arg0: i32) -> (i32, i32) {
    %c0_i32 = arith.constant 0 : i32
    %c0_i32_0 = arith.constant 0 : i32
    %c0_i32_1 = arith.constant 0 : i32
    return %c0_i32, %c0_i32_0 : i32, i32
  }
  func.func @transform_2(%arg0: i32) -> (i32, i32) {
    %c0_i32 = arith.constant 0 : i32
    %c0_i32_0 = arith.constant 0 : i32
    %c0_i32_1 = arith.constant 0 : i32
    return %c0_i32, %c0_i32_0 : i32, i32
  }
  func.func @transform_3(%arg0: i32) -> (i32, i32) {
    %c0_i32 = arith.constant 0 : i32
    %c0_i32_0 = arith.constant 0 : i32
    %c0_i32_1 = arith.constant 0 : i32
    return %c0_i32, %c0_i32_0 : i32, i32
  }
  func.func @transform_4(%arg0: i32) -> (i32, i32, i32) {
    %c0_i32 = arith.constant 0 : i32
    %c0_i32_0 = arith.constant 0 : i32
    %c0_i32_1 = arith.constant 0 : i32
    %c0_i32_2 = arith.constant 0 : i32
    return %c0_i32, %c0_i32_0, %c0_i32_1 : i32, i32, i32
  }
  func.func @transform_5(%arg0: i32) -> (i32, i32) {
    %c0_i32 = arith.constant 0 : i32
    %c0_i32_0 = arith.constant 0 : i32
    %c0_i32_1 = arith.constant 0 : i32
    return %c0_i32, %c0_i32_0 : i32, i32
  }
  func.func @transform_6(%arg0: i32) -> (i32, i32) {
    %c0_i32 = arith.constant 0 : i32
    %c0_i32_0 = arith.constant 0 : i32
    %c0_i32_1 = arith.constant 0 : i32
    return %c0_i32, %c0_i32_0 : i32, i32
  }
  func.func @transform_7(%arg0: i32) -> (i32, i32) {
    %c0_i32 = arith.constant 0 : i32
    %c0_i32_0 = arith.constant 0 : i32
    %c0_i32_1 = arith.constant 0 : i32
    return %c0_i32, %c0_i32_0 : i32, i32
  }
  func.func @transform_8(%arg0: i32) -> (i32, i32) {
    %c0_i32 = arith.constant 0 : i32
    %c0_i32_0 = arith.constant 0 : i32
    %c0_i32_1 = arith.constant 0 : i32
    return %c0_i32, %c0_i32_0 : i32, i32
  }
  func.func @transform_9(%arg0: i32) -> (i32, i32) {
    %c0_i32 = arith.constant 0 : i32
    %c0_i32_0 = arith.constant 0 : i32
    %c0_i32_1 = arith.constant 0 : i32
    return %c0_i32, %c0_i32_0 : i32, i32
  }
  func.func @transform_10(%arg0: i32) -> (i32, i32) {
    %c0_i32 = arith.constant 0 : i32
    %c0_i32_0 = arith.constant 0 : i32
    return %arg0, %c0_i32 : i32, i32
  }
}

</mosaic_0001>

<bundles_post_ra>
// kernel: lightweight_bc_forward.3
= control target key start
LH: loop header
LB: loop body
LE: loop exit
PB: predicated region body
PF: predicated region fallthrough
CT: control target
= control target key end

     0   :  { %s3907_s15 = smov 0   ;;  %s3909_s16 = smov 0   ;;  %s4879_s0 = inlined_call_operand.vmem [shape: bf16[2,256,512], index: 0, kind: input, shape index: {}]   ;;  %s4880_s1 = inlined_call_operand.vmem [shape: bf16[4,512,128], index: 1, kind: input, shape index: {}]   ;;  %s4881_s2 = inlined_call_operand.vmem [shape: f32[1,128], index: 2, kind: input, shape index: {}]   ;;  %s4882_s3 = inlined_call_operand.vmem [shape: f32[1,128], index: 3, kind: input, shape index: {}]   ;;  %s4883_s4 = inlined_call_operand.vmem [shape: bf16[512,128], index: 4, kind: output, shape index: {}]  }
   0x1   :  { %s3911_s17 = smov 0   ;;  %s3913_s18 = smov 0  }
   0x2   :  { %s3915_s19 = smov 0  }
   0x3 LB: > { %s23_s20 = sadd.s32 1, %s3872_s17  ;;  %s26_s21 = sadd.s32 1, %s3876_s18  ;;  %s3880_s19 = sphi %s3915_s19, %s14_s19   ;;  %s3876_s18 = sphi %s3913_s18, %s4887_s18   ;;  %s3872_s17 = sphi %s3911_s17, %s4886_s17   ;;  %s3868_s16 = sphi %s3909_s16, %s4885_s16   ;;  %s3864_s15 = sphi %s3907_s15, %s4884_s15  }
   0x4   : > { %p24_p0 = scmp.ge.s32.totalorder %s23_s20, 2  ;;  %p2659_p1 = scmp.ge.s32.totalorder %s3880_s19, 1 }
   0x5   : > { %p186_p2 = scmp.lt.s32.totalorder %s3880_s19, 5 }
   0x6   : > { %s4889_s20 = smov (%p24_p0, %s23_s20), 0  ;;  %s4891_s21 = smov (!%p24_p0, %s26_s21), %s3876_s18 }
   0x7   : > { %p187_p3 = pnand %p2659_p1, %p186_p2  ;;  %p28_p4 = scmp.ge.s32.totalorder %s4891_s21, 2 }
   0x8   : > { %s2660_s23 = sshll.u32 (!%p187_p3), %s3864_s15, 4  ;;  %p220_p5 = scmp.lt.s32.totalorder (!%p187_p3), %s3868_s16, 1 }
   0x9   : > { %s4893_s21 = smov (%p28_p4, %s4891_s21), 0  ;;  %190 = sbr.rel (%p187_p3) target bundleno = 511 (0x1ff), region = 36 }
   0xa   : > { %p222_p6 = scmp.lt.s32.totalorder (!%p187_p3), %s2660_s23, 31  ;;  %s2664_s11 = sshll.u32 (!%p187_p3), %s3868_s16, 1 }
   0xe   : > { %v3654_v0 = vld [vmem:[%s4880_s1 + $0x78] sm:$0xff]   ;;  %v3658_v4 = vld [vmem:[%s4880_s1 + $0x70] sm:$0xff]   ;;  %v3662_v8 = vld [vmem:[%s4880_s1 + $0x68] sm:$0xff]   ;;  %s221_s10 = scalar_select %p220_p5, %s3868_s16, 1 }
   0xf   : > { %v3655_v1 = vld [vmem:[%s4880_s1 + $0xf8] sm:$0xff]   ;;  %3102 = vmatprep.subr.bf16.mxu0 %v3654_v0  ;;  %v3659_v5 = vld [vmem:[%s4880_s1 + $0xf0] sm:$0xff]   ;;  %v3663_v9 = vld [vmem:[%s4880_s1 + $0xe8] sm:$0xff]   ;;  %s4895_s23 = smov (!%p222_p6, %s2660_s23), 31 }
  0x10   : > { %v3656_v2 = vld [vmem:[%s4880_s1 + $0x38] sm:$0xff]   ;;  %3166 = vmatprep.subr.bf16.mxu1 %v3655_v1  ;;  %v3660_v6 = vld [vmem:[%s4880_s1 + $0x30] sm:$0xff]   ;;  %v3664_v10 = vld [vmem:[%s4880_s1 + $0x28] sm:$0xff]   ;;  %s2662_s27 = sshll.u32 %s221_s10, 7  ;;  %s2661_s30 = sshll.u32 %s4895_s23, 2 }
  0x11   : > { %v3657_v3 = vld [vmem:[%s4880_s1 + $0xb8] sm:$0xff]   ;;  %3103 = vmatpush3.bf16.msra.mxu0 %v3656_v2  ;;  %v3661_v7 = vld [vmem:[%s4880_s1 + $0xb0] sm:$0xff]   ;;  %v3665_v11 = vld [vmem:[%s4880_s1 + $0xa8] sm:$0xff]   ;;  %s226_s10 = sadd.s32 %s2662_s27, %s2661_s30 }
  0x12   : > { %3167 = vmatpush3.bf16.msra.mxu1 %v3657_v3  ;;  %3104 = vmatprep.subr.bf16.mxu0 %v3658_v4  ;;  %v3666_v12 = vld [vmem:[%s4880_s1 + $0x60] sm:$0xff]   ;;  %v3670_v16 = vld [vmem:[%s4880_s1 + $0x58] sm:$0xff]   ;;  %v3674_v20 = vld [vmem:[%s4880_s1 + $0x50] sm:$0xff]   ;;  %s2663_s25 = sshll.u32 %s226_s10, 2  ;;  %s231_s10 = sadd.s32 %s3864_s15, %s2664_s11 }
  0x13   : > { %3168 = vmatprep.subr.bf16.mxu1 %v3659_v5  ;;  %v3667_v13 = vld [vmem:[%s4880_s1 + $0xe0] sm:$0xff]   ;;  %v3671_v17 = vld [vmem:[%s4880_s1 + $0xd8] sm:$0xff]   ;;  %v3675_v21 = vld [vmem:[%s4880_s1 + $0xd0] sm:$0xff]   ;;  %s4037_s8 = scalar_lea.vmem %s4879_s0, %s2663_s25  ;;  %s2665_s16 = sshll.u32 %s231_s10, 4 }
  0x14   : > { %v3668_v14 = vld [vmem:[%s4880_s1 + $0x20] sm:$0xff]   ;;  %v3672_v18 = vld [vmem:[%s4880_s1 + $0x18] sm:$0xff]   ;;  %v3676_v22 = vld [vmem:[%s4880_s1 + $0x10] sm:$0xff]   ;;  %p233_p7 = scmp.lt.s32.totalorder %s2665_s16, 63 }
  0x15   : > { %3105 = vmatpush3.bf16.msra.mxu0 %v3660_v6  ;;  %v3669_v15 = vld [vmem:[%s4880_s1 + $0xa0] sm:$0xff]   ;;  %v3673_v19 = vld [vmem:[%s4880_s1 + $0x98] sm:$0xff]   ;;  %v3677_v23 = vld [vmem:[%s4880_s1 + $0x90] sm:$0xff]  }
  0x16   : > { %3169 = vmatpush3.bf16.msra.mxu1 %v3661_v7  ;;  %3106 = vmatprep.subr.bf16.mxu0 %v3662_v8  ;;  %v3678_v24 = vld [vmem:[%s4880_s1 + $0x48] sm:$0xff]   ;;  %v3682_v28 = vld [vmem:[%s4880_s1 + $0x40] sm:$0xff]   ;;  %v3692_v36 = vld [vmem:[%s4880_s1 + $0x178] sm:$0xff]   ;;  %s4897_s16 = smov (!%p233_p7, %s2665_s16), 63 }
  0x17   : > { %3170 = vmatprep.subr.bf16.mxu1 %v3663_v9  ;;  %v3679_v25 = vld [vmem:[%s4880_s1 + $0xc8] sm:$0xff]   ;;  %v3683_v29 = vld [vmem:[%s4880_s1 + $0xc0] sm:$0xff]   ;;  %v3693_v37 = vld [vmem:[%s4880_s1 + $0x1f8] sm:$0xff]   ;;  %s2666_s15 = sshll.u32 %s4897_s16, 2 }
  0x18   : > { %v3680_v26 = vld [vmem:[%s4880_s1 + $0x8] sm:$0xff]   ;;  %v3684_v30 = vld [vmem:[%s4880_s1] sm:$0xff]   ;;  %v3694_v38 = vld [vmem:[%s4880_s1 + $0x138] sm:$0xff]   ;;  %s4804_s23 = scalar_lea.vmem %s4883_s4, %s2666_s15 }
  0x19   : > { %3107 = vmatpush3.bf16.msra.mxu0 %v3664_v10  ;;  %v3681_v27 = vld [vmem:[%s4880_s1 + $0x88] sm:$0xff]   ;;  %v3685_v31 = vld [vmem:[%s4880_s1 + $0x80] sm:$0xff]   ;;  %v3695_v39 = vld [vmem:[%s4880_s1 + $0x1b8] sm:$0xff]  }
  0x1a   : > { %3171 = vmatpush3.bf16.msra.mxu1 %v3665_v11  ;;  %3108 = vmatprep.subr.bf16.mxu0 %v3666_v12  ;;  %v4046_v32 = vld [vmem:[%s4037_s8 + $0x4] ss:$16 sps:$4 sm:$0xff]   ;;  %v4049_v33 = vld [vmem:[%s4037_s8 + $0xc] ss:$16 sps:$4 sm:$0xff]   ;;  %v4053_v34 = vld [vmem:[%s4037_s8] ss:$16 sps:$4 sm:$0xff]  }
  0x1b   : > { %3172 = vmatprep.subr.bf16.mxu1 %v3667_v13  ;;  %723 = vmatprep.mubr.bf16.mxu0 %v4046_v32  ;;  %v4056_v35 = vld [vmem:[%s4037_s8 + $0x8] ss:$16 sps:$4 sm:$0xff]   ;;  %v4074_v40 = vld [vmem:[%s4037_s8 + $0x24] ss:$16 sps:$4 sm:$0xff]   ;;  %v4077_v41 = vld [vmem:[%s4037_s8 + $0x2c] ss:$16 sps:$4 sm:$0xff]  }
  0x1c   : > { %820 = vmatprep.mubr.bf16.mxu1 %v4049_v33  ;;  %v4080_v42 = vld [vmem:[%s4037_s8 + $0x20] ss:$16 sps:$4 sm:$0xff]   ;;  %v4084_v43 = vld [vmem:[%s4037_s8 + $0x28] ss:$16 sps:$4 sm:$0xff]   ;;  %v4102_v48 = vld [vmem:[%s4037_s8 + $0x44] ss:$16 sps:$4 sm:$0xff]  }
  0x1d   : > { %3109 = vmatpush3.bf16.msra.mxu0 %v3668_v14  ;;  %v3702_v44 = vld [vmem:[%s4880_s1 + $0x170] sm:$0xff]   ;;  %v4105_v49 = vld [vmem:[%s4037_s8 + $0x4c] ss:$16 sps:$4 sm:$0xff]   ;;  %v4111_v51 = vld [vmem:[%s4037_s8 + $0x48] ss:$16 sps:$4 sm:$0xff]  }
  0x1e   : > { %3173 = vmatpush3.bf16.msra.mxu1 %v3669_v15  ;;  %3110 = vmatprep.subr.bf16.mxu0 %v3670_v16  ;;  %v3703_v45 = vld [vmem:[%s4880_s1 + $0x1f0] sm:$0xff]   ;;  %v3712_v52 = vld [vmem:[%s4880_s1 + $0x168] sm:$0xff]   ;;  %v3722_v60 = vld [vmem:[%s4880_s1 + $0x160] sm:$0xff]  }
  0x1f   : > { %3174 = vmatprep.subr.bf16.mxu1 %v3671_v17  ;;  %v3704_v46 = vld [vmem:[%s4880_s1 + $0x130] sm:$0xff]   ;;  %v3713_v53 = vld [vmem:[%s4880_s1 + $0x1e8] sm:$0xff]   ;;  %v3723_v61 = vld [vmem:[%s4880_s1 + $0x1e0] sm:$0xff]  }
  0x20   : > { %v3705_v47 = vld [vmem:[%s4880_s1 + $0x1b0] sm:$0xff]   ;;  %v3714_v54 = vld [vmem:[%s4880_s1 + $0x128] sm:$0xff]   ;;  %v3724_v62 = vld [vmem:[%s4880_s1 + $0x120] sm:$0xff]  }
  0x21   : > { %3111 = vmatpush3.bf16.msra.mxu0 %v3672_v18  ;;  %v4108_v50 = vld [vmem:[%s4037_s8 + $0x40] ss:$16 sps:$4 sm:$0xff]   ;;  %v3715_v55 = vld [vmem:[%s4880_s1 + $0x1a8] sm:$0xff]   ;;  %v4130_v56 = vld [vmem:[%s4037_s8 + $0x64] ss:$16 sps:$4 sm:$0xff]  }
  0x22   : > { %3175 = vmatpush3.bf16.msra.mxu1 %v3673_v19  ;;  %3112 = vmatprep.subr.bf16.mxu0 %v3674_v20  ;;  %v4133_v57 = vld [vmem:[%s4037_s8 + $0x6c] ss:$16 sps:$4 sm:$0xff]   ;;  %v4137_v58 = vld [vmem:[%s4037_s8 + $0x60] ss:$16 sps:$4 sm:$0xff]   ;;  %v4140_v59 = vld [vmem:[%s4037_s8 + $0x68] ss:$16 sps:$4 sm:$0xff]  }
  0x23   : > { %3176 = vmatprep.subr.bf16.mxu1 %v3675_v21  ;;  %v3725_v63 = vld [vmem:[%s4880_s1 + $0x1a0] sm:$0xff]   ;;  %v4161_v1 = vld [vmem:[%s4037_s8 + $0x8c] ss:$16 sps:$4 sm:$0xff]   ;;  %v4169_v3 = vld [vmem:[%s4037_s8 + $0x88] ss:$16 sps:$4 sm:$0xff]  }
  0x24   : > { %v4156_v0 = vld [vmem:[%s4037_s8 + $0x84] ss:$16 sps:$4 sm:$0xff]   ;;  %v4166_v2 = vld [vmem:[%s4037_s8 + $0x80] ss:$16 sps:$4 sm:$0xff]   ;;  %v3732_v4 = vld [vmem:[%s4880_s1 + $0x158] sm:$0xff]  }
  0x25   : > { %3113 = vmatpush3.bf16.msra.mxu0 %v3676_v22  ;;  %v3733_v5 = vld [vmem:[%s4880_s1 + $0x1d8] sm:$0xff]   ;;  %v4184_v8 = vld [vmem:[%s4037_s8 + $0xa4] ss:$16 sps:$4 sm:$0xff]   ;;  %v4200_v12 = vld [vmem:[%s4037_s8 + $0xa0] ss:$16 sps:$4 sm:$0xff]  }
  0x26   : > { %3177 = vmatpush3.bf16.msra.mxu1 %v3677_v23  ;;  %3114 = vmatprep.subr.bf16.mxu0 %v3678_v24  ;;  %v3734_v6 = vld [vmem:[%s4880_s1 + $0x118] sm:$0xff]   ;;  %v3742_v10 = vld [vmem:[%s4880_s1 + $0x150] sm:$0xff]   ;;  %v3752_v18 = vld [vmem:[%s4880_s1 + $0x148] sm:$0xff]  }
  0x27   : > { %3178 = vmatprep.subr.bf16.mxu1 %v3679_v25  ;;  %v3735_v7 = vld [vmem:[%s4880_s1 + $0x198] sm:$0xff]   ;;  %v3743_v11 = vld [vmem:[%s4880_s1 + $0x1d0] sm:$0xff]   ;;  %v3753_v19 = vld [vmem:[%s4880_s1 + $0x1c8] sm:$0xff]  }
  0x28   : > { %v4187_v9 = vld [vmem:[%s4037_s8 + $0xac] ss:$16 sps:$4 sm:$0xff]   ;;  %v4203_v13 = vld [vmem:[%s4037_s8 + $0xa8] ss:$16 sps:$4 sm:$0xff]   ;;  %v3744_v14 = vld [vmem:[%s4880_s1 + $0x110] sm:$0xff]  }
  0x29   : > { %3115 = vmatpush3.bf16.msra.mxu0 %v3680_v26  ;;  %v3745_v15 = vld [vmem:[%s4880_s1 + $0x190] sm:$0xff]   ;;  %v4215_v17 = vld [vmem:[%s4037_s8 + $0xcc] ss:$16 sps:$4 sm:$0xff]   ;;  %v4237_v23 = vld [vmem:[%s4037_s8 + $0xc8] ss:$16 sps:$4 sm:$0xff]  }
  0x2a   : > { %3179 = vmatpush3.bf16.msra.mxu1 %v3681_v27  ;;  %3116 = vmatprep.subr.bf16.mxu0 %v3682_v28  ;;  %v4212_v16 = vld [vmem:[%s4037_s8 + $0xc4] ss:$16 sps:$4 sm:$0xff]   ;;  %v3754_v20 = vld [vmem:[%s4880_s1 + $0x108] sm:$0xff]   ;;  %v4234_v22 = vld [vmem:[%s4037_s8 + $0xc0] ss:$16 sps:$4 sm:$0xff]  }
  0x2b   : > { %3180 = vmatprep.subr.bf16.mxu1 %v3683_v29  ;;  %v3755_v21 = vld [vmem:[%s4880_s1 + $0x188] sm:$0xff]   ;;  %v4240_v24 = vld [vmem:[%s4037_s8 + $0xe4] ss:$16 sps:$4 sm:$0xff]  }
  0x2c   : > { %v4243_v25 = vld [vmem:[%s4037_s8 + $0xec] ss:$16 sps:$4 sm:$0xff]   ;;  %v3762_v26 = vld [vmem:[%s4880_s1 + $0x140] sm:$0xff]  }
  0x2d   : > { %3117 = vmatpush3.bf16.msra.mxu0 %v3684_v30  ;;  %v3763_v27 = vld [vmem:[%s4880_s1 + $0x1c0] sm:$0xff]  }
  0x2e   : > { %3181 = vmatpush3.bf16.msra.mxu1 %v3685_v31  ;;  %3230 = vmatprep.subr.bf16.mxu0 %v3692_v36  ;;  %v3764_v28 = vld [vmem:[%s4880_s1 + $0x100] sm:$0xff]   ;;  %v3766_v31 = vld [vmem:[%s4880_s1 + $0x278] sm:$0xff]  }
  0x2f   : > { %3294 = vmatprep.subr.bf16.mxu1 %v3693_v37  ;;  %v3765_v29 = vld [vmem:[%s4880_s1 + $0x180] sm:$0xff]   ;;  %v3767_v36 = vld [vmem:[%s4880_s1 + $0x2f8] sm:$0xff]  }
  0x30   : > { %724 = vmatmul.mubr.bf16.vlgmr.msra.gmra.mxu0 %v4053_v34  ;;  %v4262_v30 = vld [vmem:[%s4037_s8 + $0xe0] ss:$16 sps:$4 sm:$0xff]   ;;  %v4271_v37 = vld [vmem:[%s4037_s8 + $0xe8] ss:$16 sps:$4 sm:$0xff]  }
  0x31   : > { %821 = vmatmul.mubr.bf16.vlgmr.msra.gmra.mxu1 %v4056_v35  ;;  %3231 = vmatpush3.bf16.msra.mxu0 %v3694_v38  ;;  %v3768_v38 = vld [vmem:[%s4880_s1 + $0x238] sm:$0xff]  }
  0x32   : > { %3295 = vmatpush3.bf16.msra.mxu1 %v3695_v39  ;;  %731 = vmatprep.mubr.bf16.mxu0 %v4074_v40  ;;  %v3769_v39 = vld [vmem:[%s4880_s1 + $0x2b8] sm:$0xff]  }
  0x33   : > { %828 = vmatprep.mubr.bf16.mxu1 %v4077_v41  ;;  %3232 = vmatprep.subr.bf16.mxu0 %v3702_v44  ;;  %v3770_v44 = vld [vmem:[%s4880_s1 + $0x270] sm:$0xff]  }
  0x34   : > { %3296 = vmatprep.subr.bf16.mxu1 %v3703_v45  ;;  %v3771_v45 = vld [vmem:[%s4880_s1 + $0x2f0] sm:$0xff]  }
  0x35   : > { %3233 = vmatpush3.bf16.msra.mxu0 %v3704_v46  ;;  %v3772_v46 = vld [vmem:[%s4880_s1 + $0x230] sm:$0xff]  }
  0x36   : > { %3297 = vmatpush3.bf16.msra.mxu1 %v3705_v47  ;;  %3234 = vmatprep.subr.bf16.mxu0 %v3712_v52  ;;  %v3773_v47 = vld [vmem:[%s4880_s1 + $0x2b0] sm:$0xff]   ;;  %v3774_v52 = vld [vmem:[%s4880_s1 + $0x268] sm:$0xff]  }
  0x37   : > { %3298 = vmatprep.subr.bf16.mxu1 %v3713_v53  ;;  %v3775_v53 = vld [vmem:[%s4880_s1 + $0x2e8] sm:$0xff]  }
  0x38   : > { %732 = vmatmul.mubr.bf16.gmra.mxu0 %v4080_v42 }
  0x39   : > { %829 = vmatmul.mubr.bf16.gmra.mxu1 %v4084_v43  ;;  %739 = vmatprep.mubr.bf16.mxu0 %v4102_v48 }
  0x3a   : > { %836 = vmatprep.mubr.bf16.mxu1 %v4105_v49  ;;  %3235 = vmatpush3.bf16.msra.mxu0 %v3714_v54  ;;  %v3776_v54 = vld [vmem:[%s4880_s1 + $0x228] sm:$0xff]  }
  0x3b   : > { %3299 = vmatpush3.bf16.msra.mxu1 %v3715_v55  ;;  %3236 = vmatprep.subr.bf16.mxu0 %v3722_v60  ;;  %v3777_v55 = vld [vmem:[%s4880_s1 + $0x2a8] sm:$0xff]   ;;  %v3778_v60 = vld [vmem:[%s4880_s1 + $0x260] sm:$0xff]  }
  0x3c   : > { %3300 = vmatprep.subr.bf16.mxu1 %v3723_v61  ;;  %v3779_v61 = vld [vmem:[%s4880_s1 + $0x2e0] sm:$0xff]  }
  0x3e   : > { %3237 = vmatpush3.bf16.msra.mxu0 %v3724_v62  ;;  %v3780_v62 = vld [vmem:[%s4880_s1 + $0x220] sm:$0xff]  }
  0x3f   : > { %3301 = vmatpush3.bf16.msra.mxu1 %v3725_v63  ;;  %3238 = vmatprep.subr.bf16.mxu0 %v3732_v4  ;;  %v3781_v63 = vld [vmem:[%s4880_s1 + $0x2a0] sm:$0xff]   ;;  %v3782_v4 = vld [vmem:[%s4880_s1 + $0x258] sm:$0xff]  }
  0x40   : > { %740 = vmatmul.mubr.bf16.gmra.mxu0 %v4108_v50  ;;  %3302 = vmatprep.subr.bf16.mxu1 %v3733_v5  ;;  %v3783_v5 = vld [vmem:[%s4880_s1 + $0x2d8] sm:$0xff]  }
  0x41   : > { %837 = vmatmul.mubr.bf16.gmra.mxu1 %v4111_v51  ;;  %747 = vmatprep.mubr.bf16.mxu0 %v4130_v56 }
  0x42   : > { %844 = vmatprep.mubr.bf16.mxu1 %v4133_v57  ;;  %3239 = vmatpush3.bf16.msra.mxu0 %v3734_v6  ;;  %v3784_v6 = vld [vmem:[%s4880_s1 + $0x218] sm:$0xff]  }
  0x43   : > { %3303 = vmatpush3.bf16.msra.mxu1 %v3735_v7  ;;  %3240 = vmatprep.subr.bf16.mxu0 %v3742_v10  ;;  %v3785_v7 = vld [vmem:[%s4880_s1 + $0x298] sm:$0xff]   ;;  %v3786_v10 = vld [vmem:[%s4880_s1 + $0x250] sm:$0xff]  }
  0x44   : > { %3304 = vmatprep.subr.bf16.mxu1 %v3743_v11  ;;  %v3787_v11 = vld [vmem:[%s4880_s1 + $0x2d0] sm:$0xff]  }
  0x46   : > { %3241 = vmatpush3.bf16.msra.mxu0 %v3744_v14  ;;  %v3788_v14 = vld [vmem:[%s4880_s1 + $0x210] sm:$0xff]  }
  0x47   : > { %3305 = vmatpush3.bf16.msra.mxu1 %v3745_v15  ;;  %3242 = vmatprep.subr.bf16.mxu0 %v3752_v18  ;;  %v3789_v15 = vld [vmem:[%s4880_s1 + $0x290] sm:$0xff]   ;;  %v3790_v18 = vld [vmem:[%s4880_s1 + $0x248] sm:$0xff]  }
  0x48   : > { %748 = vmatmul.mubr.bf16.gmra.mxu0 %v4137_v58  ;;  %3306 = vmatprep.subr.bf16.mxu1 %v3753_v19  ;;  %v3791_v19 = vld [vmem:[%s4880_s1 + $0x2c8] sm:$0xff]  }
  0x49   : > { %845 = vmatmul.mubr.bf16.gmra.mxu1 %v4140_v59  ;;  %755 = vmatprep.mubr.bf16.mxu0 %v4156_v0 }
  0x4a   : > { %852 = vmatprep.mubr.bf16.mxu1 %v4161_v1  ;;  %3243 = vmatpush3.bf16.msra.mxu0 %v3754_v20  ;;  %v3792_v20 = vld [vmem:[%s4880_s1 + $0x208] sm:$0xff]  }
  0x4b   : > { %3307 = vmatpush3.bf16.msra.mxu1 %v3755_v21  ;;  %3244 = vmatprep.subr.bf16.mxu0 %v3762_v26  ;;  %v3793_v21 = vld [vmem:[%s4880_s1 + $0x288] sm:$0xff]   ;;  %v3794_v26 = vld [vmem:[%s4880_s1 + $0x240] sm:$0xff]  }
  0x4c   : > { %3308 = vmatprep.subr.bf16.mxu1 %v3763_v27  ;;  %v3795_v27 = vld [vmem:[%s4880_s1 + $0x2c0] sm:$0xff]  }
  0x4e   : > { %3245 = vmatpush3.bf16.msra.mxu0 %v3764_v28  ;;  %v3796_v28 = vld [vmem:[%s4880_s1 + $0x200] sm:$0xff]  }
  0x4f   : > { %3309 = vmatpush3.bf16.msra.mxu1 %v3765_v29  ;;  %3358 = vmatprep.subr.bf16.mxu0 %v3766_v31  ;;  %v3797_v29 = vld [vmem:[%s4880_s1 + $0x280] sm:$0xff]   ;;  %v3798_v31 = vld [vmem:[%s4880_s1 + $0x378] sm:$0xff]  }
  0x50   : > { %756 = vmatmul.mubr.bf16.gmra.mxu0 %v4166_v2  ;;  %3422 = vmatprep.subr.bf16.mxu1 %v3767_v36  ;;  %v3799_v36 = vld [vmem:[%s4880_s1 + $0x3f8] sm:$0xff]  }
  0x51   : > { %853 = vmatmul.mubr.bf16.gmra.mxu1 %v4169_v3  ;;  %763 = vmatprep.mubr.bf16.mxu0 %v4184_v8 }
  0x52   : > { %860 = vmatprep.mubr.bf16.mxu1 %v4187_v9 }
  0x58   : > { %764 = vmatmul.mubr.bf16.gmra.mxu0 %v4200_v12 }
  0x59   : > { %861 = vmatmul.mubr.bf16.gmra.mxu1 %v4203_v13  ;;  %771 = vmatprep.mubr.bf16.mxu0 %v4212_v16 }
  0x5a   : > { %868 = vmatprep.mubr.bf16.mxu1 %v4215_v17 }
  0x60   : > { %772 = vmatmul.mubr.bf16.gmra.mxu0 %v4234_v22 }
  0x61   : > { %869 = vmatmul.mubr.bf16.gmra.mxu1 %v4237_v23  ;;  %779 = vmatprep.mubr.bf16.mxu0 %v4240_v24 }
  0x62   : > { %876 = vmatprep.mubr.bf16.mxu1 %v4243_v25 }
  0x68   : > { %780 = vmatmul.mubr.bf16.gmra.mxu0 %v4262_v30 }
  0x69   : > { %877 = vmatmul.mubr.bf16.gmra.mxu1 %v4271_v37  ;;  %1234 = vmatprep.mubr.bf16.mxu0 %v4046_v32 }
  0x6a   : > { %1331 = vmatprep.mubr.bf16.mxu1 %v4049_v33 }
  0x70   : > { %1235 = vmatmul.mubr.bf16.vlgmr.msra.gmra.mxu0 %v4053_v34 }
  0x71   : > { %1332 = vmatmul.mubr.bf16.vlgmr.msra.gmra.mxu1 %v4056_v35  ;;  %3359 = vmatpush3.bf16.msra.mxu0 %v3768_v38  ;;  %v3800_v38 = vld [vmem:[%s4880_s1 + $0x338] sm:$0xff]  }
  0x72   : > { %3423 = vmatpush3.bf16.msra.mxu1 %v3769_v39  ;;  %1242 = vmatprep.mubr.bf16.mxu0 %v4074_v40  ;;  %v3801_v39 = vld [vmem:[%s4880_s1 + $0x3b8] sm:$0xff]  }
  0x73   : > { %1339 = vmatprep.mubr.bf16.mxu1 %v4077_v41  ;;  %3360 = vmatprep.subr.bf16.mxu0 %v3770_v44  ;;  %v3802_v44 = vld [vmem:[%s4880_s1 + $0x370] sm:$0xff]  }
  0x74   : > { %3424 = vmatprep.subr.bf16.mxu1 %v3771_v45  ;;  %v3803_v45 = vld [vmem:[%s4880_s1 + $0x3f0] sm:$0xff]  }
  0x75   : > { %3361 = vmatpush3.bf16.msra.mxu0 %v3772_v46  ;;  %v3810_v46 = vld [vmem:[%s4880_s1 + $0x360] sm:$0xff]  }
  0x76   : > { %3425 = vmatpush3.bf16.msra.mxu1 %v3773_v47  ;;  %3362 = vmatprep.subr.bf16.mxu0 %v3774_v52  ;;  %v3811_v47 = vld [vmem:[%s4880_s1 + $0x3e0] sm:$0xff]  }
  0x77   : > { %3426 = vmatprep.subr.bf16.mxu1 %v3775_v53  ;;  %v3812_v52 = vld [vmem:[%s4880_s1 + $0x320] sm:$0xff]  }
  0x78   : > { %1243 = vmatmul.mubr.bf16.gmra.mxu0 %v4080_v42  ;;  %v3813_v53 = vld [vmem:[%s4880_s1 + $0x3a0] sm:$0xff]  }
  0x79   : > { %1340 = vmatmul.mubr.bf16.gmra.mxu1 %v4084_v43  ;;  %1250 = vmatprep.mubr.bf16.mxu0 %v4102_v48 }
  0x7a   : > { %1347 = vmatprep.mubr.bf16.mxu1 %v4105_v49  ;;  %3363 = vmatpush3.bf16.msra.mxu0 %v3776_v54  ;;  %v3816_v54 = vld [vmem:[%s4880_s1 + $0x318] sm:$0xff]  }
  0x7b   : > { %3427 = vmatpush3.bf16.msra.mxu1 %v3777_v55  ;;  %3364 = vmatprep.subr.bf16.mxu0 %v3778_v60  ;;  %v3817_v55 = vld [vmem:[%s4880_s1 + $0x398] sm:$0xff]   ;;  %v3818_v60 = vld [vmem:[%s4880_s1 + $0x350] sm:$0xff]  }
  0x7c   : > { %3428 = vmatprep.subr.bf16.mxu1 %v3779_v61  ;;  %v3819_v61 = vld [vmem:[%s4880_s1 + $0x3d0] sm:$0xff]  }
  0x7e   : > { %3365 = vmatpush3.bf16.msra.mxu0 %v3780_v62  ;;  %v3820_v62 = vld [vmem:[%s4880_s1 + $0x310] sm:$0xff]  }
  0x7f   : > { %3429 = vmatpush3.bf16.msra.mxu1 %v3781_v63  ;;  %3366 = vmatprep.subr.bf16.mxu0 %v3782_v4  ;;  %v3821_v63 = vld [vmem:[%s4880_s1 + $0x390] sm:$0xff]   ;;  %v3824_v4 = vld [vmem:[%s4880_s1 + $0x308] sm:$0xff]  }
  0x80   : > { %3430 = vmatprep.subr.bf16.mxu1 %v3783_v5  ;;  %1251 = vmatmul.mubr.bf16.gmra.mxu0 %v4108_v50  ;;  %v3825_v5 = vld [vmem:[%s4880_s1 + $0x388] sm:$0xff]  }
  0x81   : > { %1348 = vmatmul.mubr.bf16.gmra.mxu1 %v4111_v51  ;;  %1258 = vmatprep.mubr.bf16.mxu0 %v4130_v56 }
  0x82   : > { %1355 = vmatprep.mubr.bf16.mxu1 %v4133_v57  ;;  %3367 = vmatpush3.bf16.msra.mxu0 %v3784_v6  ;;  %v3826_v6 = vld [vmem:[%s4880_s1 + $0x340] sm:$0xff]  }
  0x83   : > { %3431 = vmatpush3.bf16.msra.mxu1 %v3785_v7  ;;  %3368 = vmatprep.subr.bf16.mxu0 %v3786_v10  ;;  %v3827_v7 = vld [vmem:[%s4880_s1 + $0x3c0] sm:$0xff]  }
  0x84   : > { %3432 = vmatprep.subr.bf16.mxu1 %v3787_v11  ;;  %v3828_v10 = vld [vmem:[%s4880_s1 + $0x300] sm:$0xff]  }
  0x85   : > { %v3829_v11 = vld [vmem:[%s4880_s1 + $0x380] sm:$0xff]  }
  0x86   : > { %3369 = vmatpush3.bf16.msra.mxu0 %v3788_v14  ;;  %v3830_v14 = vld [vmem:[%s4037_s8 + $0x4] ss:$16 sps:$4 sm:$0xff]  }
  0x87   : > { %3433 = vmatpush3.bf16.msra.mxu1 %v3789_v15  ;;  %3370 = vmatprep.subr.bf16.mxu0 %v3790_v18  ;;  %v3831_v15 = vld [vmem:[%s4037_s8 + $0xc] ss:$16 sps:$4 sm:$0xff]  }
  0x88   : > { %3434 = vmatprep.subr.bf16.mxu1 %v3791_v19  ;;  %1259 = vmatmul.mubr.bf16.gmra.mxu0 %v4137_v58 }
  0x89   : > { %1356 = vmatmul.mubr.bf16.gmra.mxu1 %v4140_v59  ;;  %1266 = vmatprep.mubr.bf16.mxu0 %v4156_v0 }
  0x8a   : > { %1363 = vmatprep.mubr.bf16.mxu1 %v4161_v1  ;;  %3371 = vmatpush3.bf16.msra.mxu0 %v3792_v20  ;;  %v3832_v20 = vld [vmem:[%s4037_s8] ss:$16 sps:$4 sm:$0xff]  }
  0x8b   : > { %3435 = vmatpush3.bf16.msra.mxu1 %v3793_v21  ;;  %3372 = vmatprep.subr.bf16.mxu0 %v3794_v26  ;;  %v3833_v21 = vld [vmem:[%s4037_s8 + $0x8] ss:$16 sps:$4 sm:$0xff]   ;;  %v3834_v26 = vld [vmem:[%s4037_s8 + $0x24] ss:$16 sps:$4 sm:$0xff]  }
  0x8c   : > { %3436 = vmatprep.subr.bf16.mxu1 %v3795_v27  ;;  %v3835_v27 = vld [vmem:[%s4037_s8 + $0x2c] ss:$16 sps:$4 sm:$0xff]  }
  0x8e   : > { %3373 = vmatpush3.bf16.msra.mxu0 %v3796_v28 }
  0x8f   : > { %3437 = vmatpush3.bf16.msra.mxu1 %v3797_v29  ;;  %3486 = vmatprep.subr.bf16.mxu0 %v3798_v31 }
  0x90   : > { %3550 = vmatprep.subr.bf16.mxu1 %v3799_v36  ;;  %1267 = vmatmul.mubr.bf16.gmra.mxu0 %v4166_v2 }
  0x91   : > { %1364 = vmatmul.mubr.bf16.gmra.mxu1 %v4169_v3  ;;  %1274 = vmatprep.mubr.bf16.mxu0 %v4184_v8 }
  0x92   : > { %1371 = vmatprep.mubr.bf16.mxu1 %v4187_v9 }
  0x98   : > { %1275 = vmatmul.mubr.bf16.gmra.mxu0 %v4200_v12 }
  0x99   : > { %1372 = vmatmul.mubr.bf16.gmra.mxu1 %v4203_v13  ;;  %1282 = vmatprep.mubr.bf16.mxu0 %v4212_v16 }
  0x9a   : > { %1379 = vmatprep.mubr.bf16.mxu1 %v4215_v17 }
  0xa0   : > { %1283 = vmatmul.mubr.bf16.gmra.mxu0 %v4234_v22 }
  0xa1   : > { %1380 = vmatmul.mubr.bf16.gmra.mxu1 %v4237_v23  ;;  %1290 = vmatprep.mubr.bf16.mxu0 %v4240_v24 }
  0xa2   : > { %1387 = vmatprep.mubr.bf16.mxu1 %v4243_v25 }
  0xa8   : > { %1291 = vmatmul.mubr.bf16.gmra.mxu0 %v4262_v30 }
  0xa9   : > { %1388 = vmatmul.mubr.bf16.gmra.mxu1 %v4271_v37  ;;  %1749 = vmatprep.mubr.bf16.mxu0 %v4046_v32  ;;  %v3804_v32 = vld [vmem:[%s4880_s1 + $0x330] sm:$0xff]  }
  0xaa   : > { %1846 = vmatprep.mubr.bf16.mxu1 %v4049_v33  ;;  %v3805_v33 = vld [vmem:[%s4880_s1 + $0x3b0] sm:$0xff]  }
  0xb0   : > { %1750 = vmatmul.mubr.bf16.vlgmr.msra.gmra.mxu0 %v4053_v34  ;;  %v3806_v34 = vld [vmem:[%s4880_s1 + $0x368] sm:$0xff]  }
  0xb1   : > { %1847 = vmatmul.mubr.bf16.vlgmr.msra.gmra.mxu1 %v4056_v35  ;;  %3487 = vmatpush3.bf16.msra.mxu0 %v3800_v38  ;;  %v3807_v35 = vld [vmem:[%s4880_s1 + $0x3e8] sm:$0xff]  }
  0xb2   : > { %3551 = vmatpush3.bf16.msra.mxu1 %v3801_v39  ;;  %1757 = vmatprep.mubr.bf16.mxu0 %v4074_v40  ;;  %v3808_v40 = vld [vmem:[%s4880_s1 + $0x328] sm:$0xff]  }
  0xb3   : > { %1854 = vmatprep.mubr.bf16.mxu1 %v4077_v41  ;;  %3488 = vmatprep.subr.bf16.mxu0 %v3802_v44  ;;  %v3809_v41 = vld [vmem:[%s4880_s1 + $0x3a8] sm:$0xff]  }
  0xb4   : > { %3552 = vmatprep.subr.bf16.mxu1 %v3803_v45 }
  0xb5   : > { %3489 = vmatpush3.bf16.msra.mxu0 %v3804_v32 }
  0xb6   : > { %3553 = vmatpush3.bf16.msra.mxu1 %v3805_v33  ;;  %3490 = vmatprep.subr.bf16.mxu0 %v3806_v34 }
  0xb7   : > { %3554 = vmatprep.subr.bf16.mxu1 %v3807_v35 }
  0xb8   : > { %1758 = vmatmul.mubr.bf16.gmra.mxu0 %v4080_v42  ;;  %v3814_v42 = vld [vmem:[%s4880_s1 + $0x358] sm:$0xff]  }
  0xb9   : > { %1855 = vmatmul.mubr.bf16.gmra.mxu1 %v4084_v43  ;;  %1765 = vmatprep.mubr.bf16.mxu0 %v4102_v48  ;;  %v3815_v43 = vld [vmem:[%s4880_s1 + $0x3d8] sm:$0xff]  }
  0xba   : > { %1862 = vmatprep.mubr.bf16.mxu1 %v4105_v49  ;;  %3491 = vmatpush3.bf16.msra.mxu0 %v3808_v40 }
  0xbb   : > { %3555 = vmatpush3.bf16.msra.mxu1 %v3809_v41  ;;  %3492 = vmatprep.subr.bf16.mxu0 %v3810_v46  ;;  %v3836_v41 = vld [vmem:[%s4037_s8 + $0x20] ss:$16 sps:$4 sm:$0xff]   ;;  %v3837_v46 = vld [vmem:[%s4037_s8 + $0x28] ss:$16 sps:$4 sm:$0xff]  }
  0xbc   : > { %3556 = vmatprep.subr.bf16.mxu1 %v3811_v47 }
  0xbe   : > { %3493 = vmatpush3.bf16.msra.mxu0 %v3812_v52 }
  0xbf   : > { %3557 = vmatpush3.bf16.msra.mxu1 %v3813_v53  ;;  %3494 = vmatprep.subr.bf16.mxu0 %v3814_v42 }
  0xc0   : > { %3558 = vmatprep.subr.bf16.mxu1 %v3815_v43  ;;  %1766 = vmatmul.mubr.bf16.gmra.mxu0 %v4108_v50  ;;  %v3822_v50 = vld [vmem:[%s4880_s1 + $0x348] sm:$0xff]  }
  0xc1   : > { %1863 = vmatmul.mubr.bf16.gmra.mxu1 %v4111_v51  ;;  %1773 = vmatprep.mubr.bf16.mxu0 %v4130_v56  ;;  %v3823_v51 = vld [vmem:[%s4880_s1 + $0x3c8] sm:$0xff]  }
  0xc2   : > { %1870 = vmatprep.mubr.bf16.mxu1 %v4133_v57  ;;  %3495 = vmatpush3.bf16.msra.mxu0 %v3816_v54 }
  0xc3   : > { %3559 = vmatpush3.bf16.msra.mxu1 %v3817_v55  ;;  %3496 = vmatprep.subr.bf16.mxu0 %v3818_v60 }
  0xc4   : > { %3560 = vmatprep.subr.bf16.mxu1 %v3819_v61 }
  0xc6   : > { %3497 = vmatpush3.bf16.msra.mxu0 %v3820_v62 }
  0xc7   : > { %3561 = vmatpush3.bf16.msra.mxu1 %v3821_v63  ;;  %3498 = vmatprep.subr.bf16.mxu0 %v3822_v50 }
  0xc8   : > { %3562 = vmatprep.subr.bf16.mxu1 %v3823_v51  ;;  %1774 = vmatmul.mubr.bf16.gmra.mxu0 %v4137_v58 }
  0xc9   : > { %1871 = vmatmul.mubr.bf16.gmra.mxu1 %v4140_v59  ;;  %1781 = vmatprep.mubr.bf16.mxu0 %v4156_v0 }
  0xca   : > { %1878 = vmatprep.mubr.bf16.mxu1 %v4161_v1  ;;  %3499 = vmatpush3.bf16.msra.mxu0 %v3824_v4 }
  0xcb   : > { %3563 = vmatpush3.bf16.msra.mxu1 %v3825_v5  ;;  %3500 = vmatprep.subr.bf16.mxu0 %v3826_v6  ;;  %v3838_v5 = vld [vmem:[%s4037_s8 + $0x40] ss:$16 sps:$4 sm:$0xff]  }
  0xcc   : > { %3564 = vmatprep.subr.bf16.mxu1 %v3827_v7 }
  0xce   : > { %3501 = vmatpush3.bf16.msra.mxu0 %v3828_v10 }
  0xcf   : > { %3565 = vmatpush3.bf16.msra.mxu1 %v3829_v11 }
  0xd0   : > { %1782 = vmatmul.mubr.bf16.gmra.mxu0 %v4166_v2 }
  0xd1   : > { %1879 = vmatmul.mubr.bf16.gmra.mxu1 %v4169_v3  ;;  %1789 = vmatprep.mubr.bf16.mxu0 %v4184_v8 }
  0xd2   : > { %1886 = vmatprep.mubr.bf16.mxu1 %v4187_v9 }
  0xd8   : > { %1790 = vmatmul.mubr.bf16.gmra.mxu0 %v4200_v12 }
  0xd9   : > { %1887 = vmatmul.mubr.bf16.gmra.mxu1 %v4203_v13  ;;  %1797 = vmatprep.mubr.bf16.mxu0 %v4212_v16 }
  0xda   : > { %1894 = vmatprep.mubr.bf16.mxu1 %v4215_v17 }
  0xe0   : > { %1798 = vmatmul.mubr.bf16.gmra.mxu0 %v4234_v22 }
  0xe1   : > { %1895 = vmatmul.mubr.bf16.gmra.mxu1 %v4237_v23  ;;  %1805 = vmatprep.mubr.bf16.mxu0 %v4240_v24 }
  0xe2   : > { %1902 = vmatprep.mubr.bf16.mxu1 %v4243_v25 }
  0xe8   : > { %1806 = vmatmul.mubr.bf16.gmra.mxu0 %v4262_v30 }
  0xe9   : > { %1903 = vmatmul.mubr.bf16.gmra.mxu1 %v4271_v37  ;;  %2264 = vmatprep.mubr.bf16.mxu0 %v3830_v14 }
  0xea   : > { %2361 = vmatprep.mubr.bf16.mxu1 %v3831_v15 }
  0xf0   : > { %v3118_v18 = vpop.f32.mrf.mxu0  ;;  %2265 = vmatmul.mubr.bf16.vlgmr.msra.gmra.mxu0 %v3832_v20 }
  0xf1   : > { %v3182_v19 = vpop.f32.mrf.mxu1  ;;  %2362 = vmatmul.mubr.bf16.vlgmr.msra.gmra.mxu1 %v3833_v21  ;;  %2272 = vmatprep.mubr.bf16.mxu0 %v3834_v26 }
  0xf2   : > { %2369 = vmatprep.mubr.bf16.mxu1 %v3835_v27  ;;  %v3119_v28 = vpop.f32.mrf.mxu0 }
  0xf3   : > { %v3183_v29 = vpop.f32.mrf.mxu1  ;;  %v3120_v31 = vadd.f32 %v3119_v28, %v3118_v18 }
  0xf4   : > { %v3184_v36 = vadd.f32 %v3183_v29, %v3182_v19  ;;  %v3121_v38 = vpop.f32.mrf.mxu0 }
  0xf5   : > { %v3185_v39 = vpop.f32.mrf.mxu1 }
  0xf6   : > { %v4531_v44 = vadd.f32 %v3184_v36, %v3120_v31  ;;  %v3122_v45 = vpop.f32.mrf.mxu0 }
  0xf7   : > { %v3186_v32 = vpop.f32.mrf.mxu1  ;;  %v3123_v33 = vadd.f32 %v3122_v45, %v3121_v38 }
  0xf8   : > { %v3187_v34 = vadd.f32 %v3186_v32, %v3185_v39  ;;  %v3124_v35 = vpop.f32.mrf.mxu0  ;;  %2273 = vmatmul.mubr.bf16.gmra.mxu0 %v3836_v41 }
  0xf9   : > { %v3188_v40 = vpop.f32.mrf.mxu1  ;;  %2370 = vmatmul.mubr.bf16.gmra.mxu1 %v3837_v46  ;;  %2280 = vmatprep.mubr.bf16.mxu0 %v4102_v48  ;;  %v3839_v48 = vld [vmem:[%s4037_s8 + $0x48] ss:$16 sps:$4 sm:$0xff]  }
  0xfa   : > { %v4535_v47 = vadd.f32 %v3187_v34, %v3123_v33  ;;  %2377 = vmatprep.mubr.bf16.mxu1 %v4105_v49  ;;  %v3125_v52 = vpop.f32.mrf.mxu0 }
  0xfb   : > { %v3189_v53 = vpop.f32.mrf.mxu1  ;;  %v3126_v42 = vadd.f32 %v3125_v52, %v3124_v35 }
  0xfc   : > { %v3190_v43 = vadd.f32 %v3189_v53, %v3188_v40  ;;  %v3127_v54 = vpop.f32.mrf.mxu0 }
  0xfd   : > { %v3191_v55 = vpop.f32.mrf.mxu1 }
  0xfe   : > { %v4539_v60 = vadd.f32 %v3190_v43, %v3126_v42  ;;  %v3128_v61 = vpop.f32.mrf.mxu0 }
  0xff   : > { %v3192_v62 = vpop.f32.mrf.mxu1  ;;  %v3129_v63 = vadd.f32 %v3128_v61, %v3127_v54 }
 0x100   : > { %v3193_v50 = vadd.f32 %v3192_v62, %v3191_v55  ;;  %v3130_v51 = vpop.f32.mrf.mxu0  ;;  %2281 = vmatmul.mubr.bf16.gmra.mxu0 %v3838_v5 }
 0x101   : > { %v3194_v4 = vpop.f32.mrf.mxu1  ;;  %2378 = vmatmul.mubr.bf16.gmra.mxu1 %v3839_v48  ;;  %2288 = vmatprep.mubr.bf16.mxu0 %v4130_v56 }
 0x102   : > { %v4543_v49 = vadd.f32 %v3193_v50, %v3129_v63  ;;  %2385 = vmatprep.mubr.bf16.mxu1 %v4133_v57  ;;  %v3131_v6 = vpop.f32.mrf.mxu0 }
 0x103   : > { %v3195_v7 = vpop.f32.mrf.mxu1  ;;  %v3132_v10 = vadd.f32 %v3131_v6, %v3130_v51 }
 0x104   : > { %v3196_v11 = vadd.f32 %v3195_v7, %v3194_v4  ;;  %v3133_v14 = vpop.f32.mrf.mxu0 }
 0x105   : > { %v3197_v15 = vpop.f32.mrf.mxu1 }
 0x106   : > { %v4547_v18 = vadd.f32 %v3196_v11, %v3132_v10  ;;  %v3134_v19 = vpop.f32.mrf.mxu0 }
 0x107   : > { %v3198_v20 = vpop.f32.mrf.mxu1  ;;  %v3135_v21 = vadd.f32 %v3134_v19, %v3133_v14 }
 0x108   : > { %v3199_v26 = vadd.f32 %v3198_v20, %v3197_v15  ;;  %v3136_v27 = vpop.f32.mrf.mxu0  ;;  %2289 = vmatmul.mubr.bf16.gmra.mxu0 %v4137_v58 }
 0x109   : > { %v3200_v28 = vpop.f32.mrf.mxu1  ;;  %2386 = vmatmul.mubr.bf16.gmra.mxu1 %v4140_v59  ;;  %2296 = vmatprep.mubr.bf16.mxu0 %v4156_v0 }
 0x10a   : > { %v4551_v56 = vadd.f32 %v3199_v26, %v3135_v21  ;;  %2393 = vmatprep.mubr.bf16.mxu1 %v4161_v1  ;;  %v3137_v57 = vpop.f32.mrf.mxu0 }
 0x10b   : > { %v3201_v29 = vpop.f32.mrf.mxu1  ;;  %v3138_v31 = vadd.f32 %v3137_v57, %v3136_v27 }
 0x10c   : > { %v3202_v36 = vadd.f32 %v3201_v29, %v3200_v28  ;;  %v3139_v38 = vpop.f32.mrf.mxu0 }
 0x10d   : > { %v3203_v39 = vpop.f32.mrf.mxu1 }
 0x10e   : > { %v4555_v45 = vadd.f32 %v3202_v36, %v3138_v31  ;;  %v3140_v32 = vpop.f32.mrf.mxu0 }
 0x10f   : > { %v3204_v33 = vpop.f32.mrf.mxu1  ;;  %v3141_v34 = vadd.f32 %v3140_v32, %v3139_v38 }
 0x110   : > { %v3205_v58 = vadd.f32 %v3204_v33, %v3203_v39  ;;  %v3142_v35 = vpop.f32.mrf.mxu0  ;;  %2297 = vmatmul.mubr.bf16.gmra.mxu0 %v4166_v2 }
 0x111   : > { %v3206_v59 = vpop.f32.mrf.mxu1  ;;  %2394 = vmatmul.mubr.bf16.gmra.mxu1 %v4169_v3  ;;  %2304 = vmatprep.mubr.bf16.mxu0 %v4184_v8 }
 0x112   : > { %v4559_v0 = vadd.f32 %v3205_v58, %v3141_v34  ;;  %2401 = vmatprep.mubr.bf16.mxu1 %v4187_v9  ;;  %v3143_v1 = vpop.f32.mrf.mxu0  ;;  %v4590_v58 = vld [vmem:[%s4881_s2] ss:$0 sm:$0xff] }
 0x113   : > { %v3207_v40 = vpop.f32.mrf.mxu1  ;;  %v3144_v41 = vadd.f32 %v3143_v1, %v3142_v35 }
 0x114   : > { %v3208_v46 = vadd.f32 %v3207_v40, %v3206_v59  ;;  %v3145_v52 = vpop.f32.mrf.mxu0  ;;  %v891_v40 = vmul.f32 %v4590_v58, %v4531_v44 }
 0x115   : > { %v3209_v53 = vpop.f32.mrf.mxu1 }
 0x116   : > { %v4563_v42 = vadd.f32 %v3208_v46, %v3144_v41  ;;  %v3146_v43 = vpop.f32.mrf.mxu0 }
 0x117   : > { %v3210_v54 = vpop.f32.mrf.mxu1  ;;  %v3147_v55 = vadd.f32 %v3146_v43, %v3145_v52  ;;  %v4599_v52 = vld [vmem:[%s4882_s3] ss:$0 sm:$0xff] }
 0x118   : > { %v3211_v2 = vadd.f32 %v3210_v54, %v3209_v53  ;;  %v3148_v61 = vpop.f32.mrf.mxu0  ;;  %2305 = vmatmul.mubr.bf16.gmra.mxu0 %v4200_v12 }
 0x119   : > { %v3212_v3 = vpop.f32.mrf.mxu1  ;;  %2402 = vmatmul.mubr.bf16.gmra.mxu1 %v4203_v13  ;;  %2312 = vmatprep.mubr.bf16.mxu0 %v4212_v16 }
 0x11a   : > { %v4567_v8 = vadd.f32 %v3211_v2, %v3147_v55  ;;  %2409 = vmatprep.mubr.bf16.mxu1 %v4215_v17  ;;  %v3149_v9 = vpop.f32.mrf.mxu0 }
 0x11b   : > { %v3213_v62 = vpop.f32.mrf.mxu1  ;;  %v3150_v63 = vadd.f32 %v3149_v9, %v3148_v61  ;;  %v913_v61 = vadd.f32 %v4599_v52, %v891_v40 }
 0x11c   : > { %v3214_v50 = vadd.f32 %v3213_v62, %v3212_v3  ;;  %v3151_v51 = vpop.f32.mrf.mxu0  ;;  %v892_v3 = vmul.f32 %v4590_v58, %v4535_v47 }
 0x11d   : > { %v3215_v4 = vpop.f32.mrf.mxu1 }
 0x11e   : > { %v4571_v5 = vadd.f32 %v3214_v50, %v3150_v63  ;;  %v3152_v48 = vpop.f32.mrf.mxu0 }
 0x11f   : > { %v3216_v6 = vpop.f32.mrf.mxu1  ;;  %v3153_v7 = vadd.f32 %v3152_v48, %v3151_v51 }
 0x120   : > { %v3217_v12 = vadd.f32 %v3216_v6, %v3215_v4  ;;  %v3154_v10 = vpop.f32.mrf.mxu0  ;;  %2313 = vmatmul.mubr.bf16.gmra.mxu0 %v4234_v22 }
 0x121   : > { %v3218_v13 = vpop.f32.mrf.mxu1  ;;  %2410 = vmatmul.mubr.bf16.gmra.mxu1 %v4237_v23  ;;  %2320 = vmatprep.mubr.bf16.mxu0 %v4240_v24 }
 0x122   : > { %v4575_v16 = vadd.f32 %v3217_v12, %v3153_v7  ;;  %2417 = vmatprep.mubr.bf16.mxu1 %v4243_v25  ;;  %v3155_v17 = vpop.f32.mrf.mxu0  ;;  %v929_v7 = vmax.f32 %v913_v61, 0.0  ;;  %v914_v12 = vadd.f32 %v4599_v52, %v892_v3 }
 0x123   : > { %v3219_v11 = vpop.f32.mrf.mxu1  ;;  %v3156_v14 = vadd.f32 %v3155_v17, %v3154_v10  ;;  %v893_v10 = vmul.f32 %v4590_v58, %v4539_v60  ;;  %v894_v60 = vmul.f32 %v4590_v58, %v4543_v49  ;;  %v895_v49 = vmul.f32 %v4590_v58, %v4547_v18 }
 0x124   : > { %v3220_v15 = vadd.f32 %v3219_v11, %v3218_v13  ;;  %v3157_v19 = vpop.f32.mrf.mxu0  ;;  %v896_v18 = vmul.f32 %v4590_v58, %v4551_v56  ;;  %v897_v56 = vmul.f32 %v4590_v58, %v4555_v45  ;;  %v898_v45 = vmul.f32 %v4590_v58, %v4559_v0 }
 0x125   : > { %v3221_v20 = vpop.f32.mrf.mxu1  ;;  %v899_v0 = vmul.f32 %v4590_v58, %v4563_v42  ;;  %v900_v42 = vmul.f32 %v4590_v58, %v4567_v8  ;;  %v901_v8 = vmul.f32 %v4590_v58, %v4571_v5  ;;  %v902_v5 = vmul.f32 %v4590_v58, %v4575_v16 }
 0x126   : > { %v4579_v21 = vadd.f32 %v3220_v15, %v3156_v14  ;;  %v3158_v26 = vpop.f32.mrf.mxu0 }
 0x127   : > { %v3222_v27 = vpop.f32.mrf.mxu1  ;;  %v3159_v28 = vadd.f32 %v3158_v26, %v3157_v19 }
 0x128   : > { %v3223_v22 = vadd.f32 %v3222_v27, %v3221_v20  ;;  %v3160_v57 = vpop.f32.mrf.mxu0  ;;  %2321 = vmatmul.mubr.bf16.gmra.mxu0 %v4262_v30  ;;  %v903_v16 = vmul.f32 %v4590_v58, %v4579_v21 }
 0x129   : > { %v3224_v23 = vpop.f32.mrf.mxu1  ;;  %2418 = vmatmul.mubr.bf16.gmra.mxu1 %v4271_v37 }
 0x12a   : > { %v4583_v24 = vadd.f32 %v3223_v22, %v3159_v28  ;;  %v3161_v25 = vpop.f32.mrf.mxu0  ;;  %v930_v22 = vmax.f32 %v914_v12, 0.0 }
 0x12b   : > { %v3225_v29 = vpop.f32.mrf.mxu1  ;;  %v3162_v31 = vadd.f32 %v3161_v25, %v3160_v57  ;;  %v915_v57 = vadd.f32 %v4599_v52, %v893_v10 }
 0x12c   : > { %v3226_v36 = vadd.f32 %v3225_v29, %v3224_v23  ;;  %v3163_v38 = vpop.f32.mrf.mxu0  ;;  %v904_v21 = vmul.f32 %v4590_v58, %v4583_v24 }
 0x12d   : > { %v3227_v39 = vpop.f32.mrf.mxu1 }
 0x12e   : > { %v4585_v32 = vadd.f32 %v3226_v36, %v3162_v31  ;;  %v3164_v33 = vpop.f32.mrf.mxu0 }
 0x12f   : > { %v3228_v34 = vpop.f32.mrf.mxu1  ;;  %v3165_v30 = vadd.f32 %v3164_v33, %v3163_v38 }
 0x130   : > { %v3229_v35 = vadd.f32 %v3228_v34, %v3227_v39  ;;  %v3246_v37 = vpop.f32.mrf.mxu0  ;;  %v905_v24 = vmul.f32 %v4590_v58, %v4585_v32 }
 0x131   : > { %v3310_v59 = vpop.f32.mrf.mxu1 }
 0x132   : > { %v4592_v1 = vadd.f32 %v3229_v35, %v3165_v30  ;;  %v3247_v41 = vpop.f32.mrf.mxu0 }
 0x133   : > { %v3311_v46 = vpop.f32.mrf.mxu1  ;;  %v3248_v53 = vadd.f32 %v3247_v41, %v3246_v37  ;;  %v931_v37 = vmax.f32 %v915_v57, 0.0 }
 0x134   : > { %v3312_v43 = vadd.f32 %v3311_v46, %v3310_v59  ;;  %v3249_v54 = vpop.f32.mrf.mxu0  ;;  %v916_v59 = vadd.f32 %v4599_v52, %v894_v60  ;;  %v906_v32 = vmul.f32 %v4590_v58, %v4592_v1 }
 0x135   : > { %v3313_v55 = vpop.f32.mrf.mxu1 }
 0x136   : > { %v1334_v2 = vadd.f32 %v3312_v43, %v3248_v53  ;;  %v3250_v9 = vpop.f32.mrf.mxu0 }
 0x137   : > { %v3314_v62 = vpop.f32.mrf.mxu1  ;;  %v3251_v63 = vadd.f32 %v3250_v9, %v3249_v54 }
 0x138   : > { %v1396_v44 = vmul.f32 %v4590_v58, %v1334_v2  ;;  %v3315_v50 = vadd.f32 %v3314_v62, %v3313_v55  ;;  %v3252_v51 = vpop.f32.mrf.mxu0  ;;  %v932_v62 = vmax.f32 %v916_v59, 0.0 }
 0x139   : > { %v3316_v4 = vpop.f32.mrf.mxu1 }
 0x13a   : > { %v1412_v48 = vadd.f32 %v4599_v52, %v1396_v44  ;;  %v1337_v6 = vadd.f32 %v3315_v50, %v3251_v63  ;;  %v3253_v13 = vpop.f32.mrf.mxu0  ;;  %v917_v44 = vadd.f32 %v4599_v52, %v895_v49 }
 0x13b   : > { %v3317_v17 = vpop.f32.mrf.mxu1  ;;  %v3254_v14 = vadd.f32 %v3253_v13, %v3252_v51 }
 0x13c   : > { %v1428_v47 = vmax.f32 %v1412_v48, 0.0  ;;  %v1397_v11 = vmul.f32 %v4590_v58, %v1337_v6  ;;  %v3318_v15 = vadd.f32 %v3317_v17, %v3316_v4  ;;  %v3255_v19 = vpop.f32.mrf.mxu0 }
 0x13d   : > { %v3319_v20 = vpop.f32.mrf.mxu1 }
 0x13e   : > { %v4610_v26 = vmax.f32 %v929_v7, %v1428_v47  ;;  %v1413_v27 = vadd.f32 %v4599_v52, %v1397_v11  ;;  %v1342_v28 = vadd.f32 %v3318_v15, %v3254_v14  ;;  %v3256_v23 = vpop.f32.mrf.mxu0  ;;  %v933_v47 = vmax.f32 %v917_v44, 0.0 }
 0x13f   : > { %v3320_v25 = vpop.f32.mrf.mxu1  ;;  %v3257_v36 = vadd.f32 %v3256_v23, %v3255_v19  ;;  %v918_v11 = vadd.f32 %v4599_v52, %v896_v18 }
 0x140   : > { %v1429_v29 = vmax.f32 %v1413_v27, 0.0  ;;  %v1398_v31 = vmul.f32 %v4590_v58, %v1342_v28  ;;  %v3321_v38 = vadd.f32 %v3320_v25, %v3319_v20  ;;  %v3258_v39 = vpop.f32.mrf.mxu0 }
 0x141   : > { %v3322_v33 = vpop.f32.mrf.mxu1 }
 0x142   : > { %v4617_v34 = vmax.f32 %v930_v22, %v1429_v29  ;;  %v1414_v30 = vadd.f32 %v4599_v52, %v1398_v31  ;;  %v1345_v35 = vadd.f32 %v3321_v38, %v3257_v36  ;;  %v3259_v40 = vpop.f32.mrf.mxu0  ;;  %v934_v29 = vmax.f32 %v918_v11, 0.0 }
 0x143   : > { %v3323_v41 = vpop.f32.mrf.mxu1  ;;  %v3260_v43 = vadd.f32 %v3259_v40, %v3258_v39  ;;  %v919_v31 = vadd.f32 %v4599_v52, %v897_v56 }
 0x144   : > { %v1430_v46 = vmax.f32 %v1414_v30, 0.0  ;;  %v1399_v53 = vmul.f32 %v4590_v58, %v1345_v35  ;;  %v3324_v54 = vadd.f32 %v3323_v41, %v3322_v33  ;;  %v3261_v55 = vpop.f32.mrf.mxu0 }
 0x145   : > { %v3325_v2 = vpop.f32.mrf.mxu1 }
 0x146   : > { %v4624_v61 = vmax.f32 %v931_v37, %v1430_v46  ;;  %v1415_v3 = vadd.f32 %v4599_v52, %v1399_v53  ;;  %v1350_v9 = vadd.f32 %v3324_v54, %v3260_v43  ;;  %v3262_v63 = vpop.f32.mrf.mxu0  ;;  %v935_v46 = vmax.f32 %v919_v31, 0.0 }
 0x147   : > { %v3326_v50 = vpop.f32.mrf.mxu1  ;;  %v3263_v48 = vadd.f32 %v3262_v63, %v3261_v55  ;;  %v920_v53 = vadd.f32 %v4599_v52, %v898_v45 }
 0x148   : > { %v1431_v51 = vmax.f32 %v1415_v3, 0.0  ;;  %v1400_v4 = vmul.f32 %v4590_v58, %v1350_v9  ;;  %v3327_v6 = vadd.f32 %v3326_v50, %v3325_v2  ;;  %v3264_v7 = vpop.f32.mrf.mxu0 }
 0x149   : > { %v3328_v12 = vpop.f32.mrf.mxu1 }
 0x14a   : > { %v4631_v10 = vmax.f32 %v932_v62, %v1431_v51  ;;  %v1416_v13 = vadd.f32 %v4599_v52, %v1400_v4  ;;  %v1353_v17 = vadd.f32 %v3327_v6, %v3263_v48  ;;  %v3265_v14 = vpop.f32.mrf.mxu0  ;;  %v936_v51 = vmax.f32 %v920_v53, 0.0 }
 0x14b   : > { %v3329_v15 = vpop.f32.mrf.mxu1  ;;  %v3266_v27 = vadd.f32 %v3265_v14, %v3264_v7  ;;  %v921_v4 = vadd.f32 %v4599_v52, %v899_v0 }
 0x14c   : > { %v1432_v19 = vmax.f32 %v1416_v13, 0.0  ;;  %v1401_v20 = vmul.f32 %v4590_v58, %v1353_v17  ;;  %v3330_v28 = vadd.f32 %v3329_v15, %v3328_v12  ;;  %v3267_v22 = vpop.f32.mrf.mxu0 }
 0x14d   : > { %v3331_v57 = vpop.f32.mrf.mxu1 }
 0x14e   : > { %v4638_v60 = vmax.f32 %v933_v47, %v1432_v19  ;;  %v1417_v23 = vadd.f32 %v4599_v52, %v1401_v20  ;;  %v1358_v25 = vadd.f32 %v3330_v28, %v3266_v27  ;;  %v3268_v36 = vpop.f32.mrf.mxu0  ;;  %v937_v19 = vmax.f32 %v921_v4, 0.0 }
 0x14f   : > { %v3332_v38 = vpop.f32.mrf.mxu1  ;;  %v3269_v30 = vadd.f32 %v3268_v36, %v3267_v22  ;;  %v922_v20 = vadd.f32 %v4599_v52, %v900_v42 }
 0x150   : > { %v1433_v39 = vmax.f32 %v1417_v23, 0.0  ;;  %v1402_v33 = vmul.f32 %v4590_v58, %v1358_v25  ;;  %v3333_v35 = vadd.f32 %v3332_v38, %v3331_v57  ;;  %v3270_v37 = vpop.f32.mrf.mxu0 }
 0x151   : > { %v3334_v59 = vpop.f32.mrf.mxu1 }
 0x152   : > { %v4645_v49 = vmax.f32 %v934_v29, %v1433_v39  ;;  %v1418_v40 = vadd.f32 %v4599_v52, %v1402_v33  ;;  %v1361_v41 = vadd.f32 %v3333_v35, %v3269_v30  ;;  %v3271_v43 = vpop.f32.mrf.mxu0  ;;  %v938_v39 = vmax.f32 %v922_v20, 0.0 }
 0x153   : > { %v3335_v54 = vpop.f32.mrf.mxu1  ;;  %v3272_v3 = vadd.f32 %v3271_v43, %v3270_v37  ;;  %v923_v33 = vadd.f32 %v4599_v52, %v901_v8 }
 0x154   : > { %v1434_v55 = vmax.f32 %v1418_v40, 0.0  ;;  %v1403_v2 = vmul.f32 %v4590_v58, %v1361_v41  ;;  %v3336_v9 = vadd.f32 %v3335_v54, %v3334_v59  ;;  %v3273_v62 = vpop.f32.mrf.mxu0 }
 0x155   : > { %v3337_v44 = vpop.f32.mrf.mxu1 }
 0x156   : > { %v4652_v18 = vmax.f32 %v935_v46, %v1434_v55  ;;  %v1419_v63 = vadd.f32 %v4599_v52, %v1403_v2  ;;  %v1366_v50 = vadd.f32 %v3336_v9, %v3272_v3  ;;  %v3274_v48 = vpop.f32.mrf.mxu0  ;;  %v939_v55 = vmax.f32 %v923_v33, 0.0 }
 0x157   : > { %v3338_v6 = vpop.f32.mrf.mxu1  ;;  %v3275_v13 = vadd.f32 %v3274_v48, %v3273_v62  ;;  %v924_v2 = vadd.f32 %v4599_v52, %v902_v5 }
 0x158   : > { %v1435_v7 = vmax.f32 %v1419_v63, 0.0  ;;  %v1404_v12 = vmul.f32 %v4590_v58, %v1366_v50  ;;  %v3339_v17 = vadd.f32 %v3338_v6, %v3337_v44  ;;  %v3276_v47 = vpop.f32.mrf.mxu0 }
 0x159   : > { %v3340_v11 = vpop.f32.mrf.mxu1 }
 0x15a   : > { %v4659_v56 = vmax.f32 %v936_v51, %v1435_v7  ;;  %v1420_v14 = vadd.f32 %v4599_v52, %v1404_v12  ;;  %v1369_v15 = vadd.f32 %v3339_v17, %v3275_v13  ;;  %v3277_v27 = vpop.f32.mrf.mxu0  ;;  %v940_v7 = vmax.f32 %v924_v2, 0.0 }
 0x15b   : > { %v3341_v28 = vpop.f32.mrf.mxu1  ;;  %v3278_v23 = vadd.f32 %v3277_v27, %v3276_v47  ;;  %v925_v12 = vadd.f32 %v4599_v52, %v903_v16 }
 0x15c   : > { %v1436_v22 = vmax.f32 %v1420_v14, 0.0  ;;  %v1405_v57 = vmul.f32 %v4590_v58, %v1369_v15  ;;  %v3342_v25 = vadd.f32 %v3341_v28, %v3340_v11  ;;  %v3279_v29 = vpop.f32.mrf.mxu0 }
 0x15d   : > { %v3343_v31 = vpop.f32.mrf.mxu1 }
 0x15e   : > { %v4666_v45 = vmax.f32 %v937_v19, %v1436_v22  ;;  %v1421_v36 = vadd.f32 %v4599_v52, %v1405_v57  ;;  %v1374_v38 = vadd.f32 %v3342_v25, %v3278_v23  ;;  %v3280_v30 = vpop.f32.mrf.mxu0  ;;  %v941_v22 = vmax.f32 %v925_v12, 0.0 }
 0x15f   : > { %v3344_v35 = vpop.f32.mrf.mxu1  ;;  %v3281_v40 = vadd.f32 %v3280_v30, %v3279_v29  ;;  %v926_v57 = vadd.f32 %v4599_v52, %v904_v21 }
 0x160   : > { %v1437_v37 = vmax.f32 %v1421_v36, 0.0  ;;  %v1406_v59 = vmul.f32 %v4590_v58, %v1374_v38  ;;  %v3345_v41 = vadd.f32 %v3344_v35, %v3343_v31  ;;  %v3282_v46 = vpop.f32.mrf.mxu0 }
 0x161   : > { %v3346_v53 = vpop.f32.mrf.mxu1 }
 0x162   : > { %v4673_v0 = vmax.f32 %v938_v39, %v1437_v37  ;;  %v1422_v43 = vadd.f32 %v4599_v52, %v1406_v59  ;;  %v1377_v54 = vadd.f32 %v3345_v41, %v3281_v40  ;;  %v3283_v3 = vpop.f32.mrf.mxu0  ;;  %v942_v37 = vmax.f32 %v926_v57, 0.0 }
 0x163   : > { %v3347_v9 = vpop.f32.mrf.mxu1  ;;  %v3284_v63 = vadd.f32 %v3283_v3, %v3282_v46  ;;  %v927_v59 = vadd.f32 %v4599_v52, %v905_v24 }
 0x164   : > { %v1438_v62 = vmax.f32 %v1422_v43, 0.0  ;;  %v1407_v44 = vmul.f32 %v4590_v58, %v1377_v54  ;;  %v3348_v50 = vadd.f32 %v3347_v9, %v3346_v53  ;;  %v3285_v51 = vpop.f32.mrf.mxu0 }
 0x165   : > { %v3349_v4 = vpop.f32.mrf.mxu1 }
 0x166   : > { %v4680_v42 = vmax.f32 %v939_v55, %v1438_v62  ;;  %v1423_v48 = vadd.f32 %v4599_v52, %v1407_v44  ;;  %v1382_v6 = vadd.f32 %v3348_v50, %v3284_v63  ;;  %v3286_v13 = vpop.f32.mrf.mxu0  ;;  %v943_v62 = vmax.f32 %v927_v59, 0.0 }
 0x167   : > { %v3350_v17 = vpop.f32.mrf.mxu1  ;;  %v3287_v14 = vadd.f32 %v3286_v13, %v3285_v51  ;;  %v928_v44 = vadd.f32 %v4599_v52, %v906_v32 }
 0x168   : > { %v1439_v47 = vmax.f32 %v1423_v48, 0.0  ;;  %v1408_v11 = vmul.f32 %v4590_v58, %v1382_v6  ;;  %v3351_v15 = vadd.f32 %v3350_v17, %v3349_v4  ;;  %v3288_v19 = vpop.f32.mrf.mxu0 }
 0x169   : > { %v3352_v20 = vpop.f32.mrf.mxu1  ;;  %v944_v17 = vmax.f32 %v928_v44, 0.0 }
 0x16a   : > { %v4687_v8 = vmax.f32 %v940_v7, %v1439_v47  ;;  %v1424_v27 = vadd.f32 %v4599_v52, %v1408_v11  ;;  %v1385_v28 = vadd.f32 %v3351_v15, %v3287_v14  ;;  %v3289_v23 = vpop.f32.mrf.mxu0 }
 0x16b   : > { %v3353_v25 = vpop.f32.mrf.mxu1  ;;  %v3290_v36 = vadd.f32 %v3289_v23, %v3288_v19 }
 0x16c   : > { %v1440_v29 = vmax.f32 %v1424_v27, 0.0  ;;  %v1409_v31 = vmul.f32 %v4590_v58, %v1385_v28  ;;  %v3354_v38 = vadd.f32 %v3353_v25, %v3352_v20  ;;  %v3291_v39 = vpop.f32.mrf.mxu0 }
 0x16d   : > { %v3355_v33 = vpop.f32.mrf.mxu1 }
 0x16e   : > { %v4694_v5 = vmax.f32 %v941_v22, %v1440_v29  ;;  %v1425_v30 = vadd.f32 %v4599_v52, %v1409_v31  ;;  %v1390_v35 = vadd.f32 %v3354_v38, %v3290_v36  ;;  %v3292_v40 = vpop.f32.mrf.mxu0 }
 0x16f   : > { %v3356_v41 = vpop.f32.mrf.mxu1  ;;  %v3293_v43 = vadd.f32 %v3292_v40, %v3291_v39 }
 0x170   : > { %v1441_v46 = vmax.f32 %v1425_v30, 0.0  ;;  %v1410_v53 = vmul.f32 %v4590_v58, %v1390_v35  ;;  %v3357_v54 = vadd.f32 %v3356_v41, %v3355_v33  ;;  %v3374_v55 = vpop.f32.mrf.mxu0 }
 0x171   : > { %v3438_v2 = vpop.f32.mrf.mxu1 }
 0x172   : > { %v4701_v16 = vmax.f32 %v942_v37, %v1441_v46  ;;  %v1426_v3 = vadd.f32 %v4599_v52, %v1410_v53  ;;  %v1393_v9 = vadd.f32 %v3357_v54, %v3293_v43  ;;  %v3375_v63 = vpop.f32.mrf.mxu0 }
 0x173   : > { %v3439_v50 = vpop.f32.mrf.mxu1  ;;  %v3376_v4 = vadd.f32 %v3375_v63, %v3374_v55 }
 0x174   : > { %v1442_v1 = vmax.f32 %v1426_v3, 0.0  ;;  %v1411_v51 = vmul.f32 %v4590_v58, %v1393_v9  ;;  %v3440_v48 = vadd.f32 %v3439_v50, %v3438_v2  ;;  %v3377_v6 = vpop.f32.mrf.mxu0 }
 0x175   : > { %v3441_v7 = vpop.f32.mrf.mxu1 }
 0x176   : > { %v4706_v12 = vmax.f32 %v943_v62, %v1442_v1  ;;  %v1427_v21 = vadd.f32 %v4599_v52, %v1411_v51  ;;  %v1849_v13 = vadd.f32 %v3440_v48, %v3376_v4  ;;  %v3378_v47 = vpop.f32.mrf.mxu0 }
 0x177   : > { %v3442_v11 = vpop.f32.mrf.mxu1  ;;  %v3379_v19 = vadd.f32 %v3378_v47, %v3377_v6 }
 0x178   : > { %v1443_v14 = vmax.f32 %v1427_v21, 0.0  ;;  %v1911_v15 = vmul.f32 %v4590_v58, %v1849_v13  ;;  %v3443_v20 = vadd.f32 %v3442_v11, %v3441_v7  ;;  %v3380_v27 = vpop.f32.mrf.mxu0 }
 0x179   : > { %v3444_v28 = vpop.f32.mrf.mxu1 }
 0x17a   : > { %v4710_v22 = vmax.f32 %v944_v17, %v1443_v14  ;;  %v1927_v57 = vadd.f32 %v4599_v52, %v1911_v15  ;;  %v1852_v24 = vadd.f32 %v3443_v20, %v3379_v19  ;;  %v3381_v23 = vpop.f32.mrf.mxu0 }
 0x17b   : > { %v3445_v25 = vpop.f32.mrf.mxu1  ;;  %v3382_v36 = vadd.f32 %v3381_v23, %v3380_v27 }
 0x17c   : > { %v1943_v29 = vmax.f32 %v1927_v57, 0.0  ;;  %v1912_v31 = vmul.f32 %v4590_v58, %v1852_v24  ;;  %v3446_v38 = vadd.f32 %v3445_v25, %v3444_v28  ;;  %v3383_v39 = vpop.f32.mrf.mxu0 }
 0x17d   : > { %v3447_v33 = vpop.f32.mrf.mxu1 }
 0x17e   : > { %v4715_v30 = vmax.f32 %v4610_v26, %v1943_v29  ;;  %v1928_v35 = vadd.f32 %v4599_v52, %v1912_v31  ;;  %v1857_v37 = vadd.f32 %v3446_v38, %v3382_v36  ;;  %v3384_v59 = vpop.f32.mrf.mxu0 }
 0x17f   : > { %v3448_v32 = vpop.f32.mrf.mxu1  ;;  %v3385_v46 = vadd.f32 %v3384_v59, %v3383_v39 }
 0x180   : > { %v1944_v40 = vmax.f32 %v1928_v35, 0.0  ;;  %v1913_v41 = vmul.f32 %v4590_v58, %v1857_v37  ;;  %v3449_v53 = vadd.f32 %v3448_v32, %v3447_v33  ;;  %v3386_v43 = vpop.f32.mrf.mxu0 }
 0x181   : > { %v3450_v54 = vpop.f32.mrf.mxu1 }
 0x182   : > { %v4720_v55 = vmax.f32 %v4617_v34, %v1944_v40  ;;  %v1929_v2 = vadd.f32 %v4599_v52, %v1913_v41  ;;  %v1860_v3 = vadd.f32 %v3449_v53, %v3385_v46  ;;  %v3387_v26 = vpop.f32.mrf.mxu0 }
 0x183   : > { %v3451_v9 = vpop.f32.mrf.mxu1  ;;  %v3388_v63 = vadd.f32 %v3387_v26, %v3386_v43 }
 0x184   : > { %v1945_v62 = vmax.f32 %v1929_v2, 0.0  ;;  %v1914_v44 = vmul.f32 %v4590_v58, %v1860_v3  ;;  %v3452_v50 = vadd.f32 %v3451_v9, %v3450_v54  ;;  %v3389_v1 = vpop.f32.mrf.mxu0 }
 0x185   : > { %v3453_v51 = vpop.f32.mrf.mxu1 }
 0x186   : > { %v4725_v4 = vmax.f32 %v4624_v61, %v1945_v62  ;;  %v1930_v48 = vadd.f32 %v4599_v52, %v1914_v44  ;;  %v1865_v6 = vadd.f32 %v3452_v50, %v3388_v63  ;;  %v3390_v34 = vpop.f32.mrf.mxu0 }
 0x187   : > { %v3454_v7 = vpop.f32.mrf.mxu1  ;;  %v3391_v17 = vadd.f32 %v3390_v34, %v3389_v1 }
 0x188   : > { %v1946_v21 = vmax.f32 %v1930_v48, 0.0  ;;  %v1915_v13 = vmul.f32 %v4590_v58, %v1865_v6  ;;  %v3455_v47 = vadd.f32 %v3454_v7, %v3453_v51  ;;  %v3392_v11 = vpop.f32.mrf.mxu0 }
 0x189   : > { %v3456_v14 = vpop.f32.mrf.mxu1 }
 0x18a   : > { %v4730_v15 = vmax.f32 %v4631_v10, %v1946_v21  ;;  %v1931_v19 = vadd.f32 %v4599_v52, %v1915_v13  ;;  %v1868_v20 = vadd.f32 %v3455_v47, %v3391_v17  ;;  %v3393_v61 = vpop.f32.mrf.mxu0 }
 0x18b   : > { %v3457_v27 = vpop.f32.mrf.mxu1  ;;  %v3394_v24 = vadd.f32 %v3393_v61, %v3392_v11 }
 0x18c   : > { %v1947_v28 = vmax.f32 %v1931_v19, 0.0  ;;  %v1916_v57 = vmul.f32 %v4590_v58, %v1868_v20  ;;  %v3458_v23 = vadd.f32 %v3457_v27, %v3456_v14  ;;  %v3395_v25 = vpop.f32.mrf.mxu0 }
 0x18d   : > { %v3459_v29 = vpop.f32.mrf.mxu1 }
 0x18e   : > { %v4735_v31 = vmax.f32 %v4638_v60, %v1947_v28  ;;  %v1932_v36 = vadd.f32 %v4599_v52, %v1916_v57  ;;  %v1873_v38 = vadd.f32 %v3458_v23, %v3394_v24  ;;  %v3396_v10 = vpop.f32.mrf.mxu0 }
 0x18f   : > { %v3460_v39 = vpop.f32.mrf.mxu1  ;;  %v3397_v37 = vadd.f32 %v3396_v10, %v3395_v25 }
 0x190   : > { %v1948_v33 = vmax.f32 %v1932_v36, 0.0  ;;  %v1917_v35 = vmul.f32 %v4590_v58, %v1873_v38  ;;  %v3461_v59 = vadd.f32 %v3460_v39, %v3459_v29  ;;  %v3398_v32 = vpop.f32.mrf.mxu0 }
 0x191   : > { %v3462_v40 = vpop.f32.mrf.mxu1 }
 0x192   : > { %v4740_v41 = vmax.f32 %v4645_v49, %v1948_v33  ;;  %v1933_v46 = vadd.f32 %v4599_v52, %v1917_v35  ;;  %v1876_v53 = vadd.f32 %v3461_v59, %v3397_v37  ;;  %v3399_v60 = vpop.f32.mrf.mxu0 }
 0x193   : > { %v3463_v43 = vpop.f32.mrf.mxu1  ;;  %v3400_v3 = vadd.f32 %v3399_v60, %v3398_v32 }
 0x194   : > { %v1949_v54 = vmax.f32 %v1933_v46, 0.0  ;;  %v1918_v2 = vmul.f32 %v4590_v58, %v1876_v53  ;;  %v3464_v26 = vadd.f32 %v3463_v43, %v3462_v40  ;;  %v3401_v9 = vpop.f32.mrf.mxu0 }
 0x195   : > { %v3465_v62 = vpop.f32.mrf.mxu1 }
 0x196   : > { %v4745_v44 = vmax.f32 %v4652_v18, %v1949_v54  ;;  %v1934_v63 = vadd.f32 %v4599_v52, %v1918_v2  ;;  %v1881_v50 = vadd.f32 %v3464_v26, %v3400_v3  ;;  %v3402_v49 = vpop.f32.mrf.mxu0 }
 0x197   : > { %v3466_v1 = vpop.f32.mrf.mxu1  ;;  %v3403_v6 = vadd.f32 %v3402_v49, %v3401_v9 }
 0x198   : > { %v1950_v51 = vmax.f32 %v1934_v63, 0.0  ;;  %v1919_v48 = vmul.f32 %v4590_v58, %v1881_v50  ;;  %v3467_v34 = vadd.f32 %v3466_v1, %v3465_v62  ;;  %v3404_v7 = vpop.f32.mrf.mxu0 }
 0x199   : > { %v3468_v21 = vpop.f32.mrf.mxu1 }
 0x19a   : > { %v4750_v13 = vmax.f32 %v4659_v56, %v1950_v51  ;;  %v1935_v17 = vadd.f32 %v4599_v52, %v1919_v48  ;;  %v1884_v47 = vadd.f32 %v3467_v34, %v3403_v6  ;;  %v3405_v18 = vpop.f32.mrf.mxu0 }
 0x19b   : > { %v3469_v11 = vpop.f32.mrf.mxu1  ;;  %v3406_v20 = vadd.f32 %v3405_v18, %v3404_v7 }
 0x19c   : > { %v1951_v14 = vmax.f32 %v1935_v17, 0.0  ;;  %v1920_v19 = vmul.f32 %v4590_v58, %v1884_v47  ;;  %v3470_v61 = vadd.f32 %v3469_v11, %v3468_v21  ;;  %v3407_v27 = vpop.f32.mrf.mxu0 }
 0x19d   : > { %v3471_v28 = vpop.f32.mrf.mxu1 }
 0x19e   : > { %v4755_v57 = vmax.f32 %v4666_v45, %v1951_v14  ;;  %v1936_v24 = vadd.f32 %v4599_v52, %v1920_v19  ;;  %v1889_v23 = vadd.f32 %v3470_v61, %v3406_v20  ;;  %v3408_v56 = vpop.f32.mrf.mxu0 }
 0x19f   : > { %v3472_v25 = vpop.f32.mrf.mxu1  ;;  %v3409_v38 = vadd.f32 %v3408_v56, %v3407_v27 }
 0x1a0   : > { %v1952_v29 = vmax.f32 %v1936_v24, 0.0  ;;  %v1921_v36 = vmul.f32 %v4590_v58, %v1889_v23  ;;  %v3473_v10 = vadd.f32 %v3472_v25, %v3471_v28  ;;  %v3410_v39 = vpop.f32.mrf.mxu0 }
 0x1a1   : > { %v3474_v33 = vpop.f32.mrf.mxu1 }
 0x1a2   : > { %v4760_v35 = vmax.f32 %v4673_v0, %v1952_v29  ;;  %v1937_v37 = vadd.f32 %v4599_v52, %v1921_v36  ;;  %v1892_v59 = vadd.f32 %v3473_v10, %v3409_v38  ;;  %v3411_v45 = vpop.f32.mrf.mxu0 }
 0x1a3   : > { %v3475_v32 = vpop.f32.mrf.mxu1  ;;  %v3412_v53 = vadd.f32 %v3411_v45, %v3410_v39 }
 0x1a4   : > { %v1953_v40 = vmax.f32 %v1937_v37, 0.0  ;;  %v1922_v46 = vmul.f32 %v4590_v58, %v1892_v59  ;;  %v3476_v60 = vadd.f32 %v3475_v32, %v3474_v33  ;;  %v3413_v43 = vpop.f32.mrf.mxu0 }
 0x1a5   : > { %v3477_v54 = vpop.f32.mrf.mxu1 }
 0x1a6   : > { %v4765_v2 = vmax.f32 %v4680_v42, %v1953_v40  ;;  %v1938_v3 = vadd.f32 %v4599_v52, %v1922_v46  ;;  %v1897_v26 = vadd.f32 %v3476_v60, %v3412_v53  ;;  %v3414_v0 = vpop.f32.mrf.mxu0 }
 0x1a7   : > { %v3478_v9 = vpop.f32.mrf.mxu1  ;;  %v3415_v50 = vadd.f32 %v3414_v0, %v3413_v43 }
 0x1a8   : > { %v1954_v62 = vmax.f32 %v1938_v3, 0.0  ;;  %v1923_v63 = vmul.f32 %v4590_v58, %v1897_v26  ;;  %v3479_v49 = vadd.f32 %v3478_v9, %v3477_v54  ;;  %v3416_v1 = vpop.f32.mrf.mxu0 }
 0x1a9   : > { %v3480_v51 = vpop.f32.mrf.mxu1 }
 0x1aa   : > { %v4770_v48 = vmax.f32 %v4687_v8, %v1954_v62  ;;  %v1939_v6 = vadd.f32 %v4599_v52, %v1923_v63  ;;  %v1900_v42 = vadd.f32 %v3479_v49, %v3415_v50  ;;  %v3417_v34 = vpop.f32.mrf.mxu0 }
 0x1ab   : > { %v3481_v7 = vpop.f32.mrf.mxu1  ;;  %v3418_v47 = vadd.f32 %v3417_v34, %v3416_v1 }
 0x1ac   : > { %v1955_v21 = vmax.f32 %v1939_v6, 0.0  ;;  %v1924_v17 = vmul.f32 %v4590_v58, %v1900_v42  ;;  %v3482_v18 = vadd.f32 %v3481_v7, %v3480_v51  ;;  %v3419_v11 = vpop.f32.mrf.mxu0 }
 0x1ad   : > { %v3483_v14 = vpop.f32.mrf.mxu1 }
 0x1ae   : > { %v4775_v19 = vmax.f32 %v4694_v5, %v1955_v21  ;;  %v1940_v8 = vadd.f32 %v4599_v52, %v1924_v17  ;;  %v1905_v20 = vadd.f32 %v3482_v18, %v3418_v47  ;;  %v3420_v61 = vpop.f32.mrf.mxu0 }
 0x1af   : > { %v3484_v27 = vpop.f32.mrf.mxu1  ;;  %v3421_v23 = vadd.f32 %v3420_v61, %v3419_v11 }
 0x1b0   : > { %v1956_v28 = vmax.f32 %v1940_v8, 0.0  ;;  %v1925_v24 = vmul.f32 %v4590_v58, %v1905_v20  ;;  %v3485_v56 = vadd.f32 %v3484_v27, %v3483_v14  ;;  %v3502_v25 = vpop.f32.mrf.mxu0 }
 0x1b1   : > { %v3566_v29 = vpop.f32.mrf.mxu1 }
 0x1b2   : > { %v4781_v36 = vmax.f32 %v4701_v16, %v1956_v28  ;;  %v1941_v38 = vadd.f32 %v4599_v52, %v1925_v24  ;;  %v1908_v5 = vadd.f32 %v3485_v56, %v3421_v23  ;;  %v3503_v10 = vpop.f32.mrf.mxu0 }
 0x1b3   : > { %v3567_v39 = vpop.f32.mrf.mxu1  ;;  %v3504_v59 = vadd.f32 %v3503_v10, %v3502_v25 }
 0x1b4   : > { %v1957_v33 = vmax.f32 %v1941_v38, 0.0  ;;  %v1926_v37 = vmul.f32 %v4590_v58, %v1908_v5  ;;  %v3568_v45 = vadd.f32 %v3567_v39, %v3566_v29  ;;  %v3505_v32 = vpop.f32.mrf.mxu0 }
 0x1b5   : > { %v3569_v40 = vpop.f32.mrf.mxu1 }
 0x1b6   : > { %v4787_v46 = vmax.f32 %v4706_v12, %v1957_v33  ;;  %v1942_v16 = vadd.f32 %v4599_v52, %v1926_v37  ;;  %v2364_v53 = vadd.f32 %v3568_v45, %v3504_v59  ;;  %v3506_v60 = vpop.f32.mrf.mxu0 }
 0x1b7   : > { %v3570_v43 = vpop.f32.mrf.mxu1  ;;  %v3507_v26 = vadd.f32 %v3506_v60, %v3505_v32 }
 0x1b8   : > { %v1958_v54 = vmax.f32 %v1942_v16, 0.0  ;;  %v2426_v3 = vmul.f32 %v4590_v58, %v2364_v53  ;;  %v3571_v0 = vadd.f32 %v3570_v43, %v3569_v40  ;;  %v3508_v9 = vpop.f32.mrf.mxu0 }
 0x1b9   : > { %v3572_v62 = vpop.f32.mrf.mxu1 }
 0x1ba   : > { %v4792_v63 = vmax.f32 %v4710_v22, %v1958_v54  ;;  %v2442_v50 = vadd.f32 %v4599_v52, %v2426_v3  ;;  %v2367_v12 = vadd.f32 %v3571_v0, %v3507_v26  ;;  %v3509_v49 = vpop.f32.mrf.mxu0 }
 0x1bb   : > { %v3573_v1 = vpop.f32.mrf.mxu1  ;;  %v3510_v6 = vadd.f32 %v3509_v49, %v3508_v9 }
 0x1bc   : > { %v2427_v51 = vmul.f32 %v4590_v58, %v2367_v12  ;;  %v3574_v42 = vadd.f32 %v3573_v1, %v3572_v62  ;;  %v3511_v34 = vpop.f32.mrf.mxu0  ;;  %v2458_v21 = vmax.f32 %v2442_v50, 0.0 }
 0x1bd   : > { %v3575_v7 = vpop.f32.mrf.mxu1 }
 0x1be   : > { %v2443_v17 = vadd.f32 %v4599_v52, %v2427_v51  ;;  %v2372_v47 = vadd.f32 %v3574_v42, %v3510_v6  ;;  %v3512_v18 = vpop.f32.mrf.mxu0  ;;  %v2474_v28 = vmax.f32 %v4715_v30, %v2458_v21 }
 0x1bf   : > { %v3576_v11 = vpop.f32.mrf.mxu1  ;;  %v3513_v8 = vadd.f32 %v3512_v18, %v3511_v34 }
 0x1c0   : > { %v2459_v22 = vmax.f32 %v2443_v17, 0.0  ;;  %v2428_v14 = vmul.f32 %v4590_v58, %v2372_v47  ;;  %v3577_v20 = vadd.f32 %v3576_v11, %v3575_v7  ;;  %v3514_v61 = vpop.f32.mrf.mxu0 }
 0x1c1   : > { %v3578_v27 = vpop.f32.mrf.mxu1 }
 0x1c2   : > { %v2475_v24 = vmax.f32 %v4720_v55, %v2459_v22  ;;  %v2444_v23 = vadd.f32 %v4599_v52, %v2428_v14  ;;  %v2375_v56 = vadd.f32 %v3577_v20, %v3513_v8  ;;  %v3515_v25 = vpop.f32.mrf.mxu0 }
 0x1c3   : > { %v3579_v29 = vpop.f32.mrf.mxu1  ;;  %v3516_v10 = vadd.f32 %v3515_v25, %v3514_v61 }
 0x1c4   : > { %v3058_v38 = vpack.c.bf16 %v2475_v24, %v2474_v28  ;;  %v2429_v5 = vmul.f32 %v4590_v58, %v2375_v56  ;;  %v3580_v39 = vadd.f32 %v3579_v29, %v3578_v27  ;;  %v3517_v33 = vpop.f32.mrf.mxu0  ;;  %v2460_v55 = vmax.f32 %v2444_v23, 0.0 }
 0x1c5   : > { %v3581_v30 = vpop.f32.mrf.mxu1 }
 0x1c6   : > { %3059 = vst [vmem:[%s4804_s23] sm:$0xff] %v3058_v38   ;;  %v2445_v37 = vadd.f32 %v4599_v52, %v2429_v5  ;;  %v2380_v59 = vadd.f32 %v3580_v39, %v3516_v10  ;;  %v3518_v45 = vpop.f32.mrf.mxu0  ;;  %v2476_v3 = vmax.f32 %v4725_v4, %v2460_v55 }
 0x1c7   : > { %v3582_v32 = vpop.f32.mrf.mxu1  ;;  %v3519_v16 = vadd.f32 %v3518_v45, %v3517_v33 }
 0x1c8   : > { %v2461_v40 = vmax.f32 %v2445_v37, 0.0  ;;  %v3583_v53 = vadd.f32 %v3582_v32, %v3581_v30  ;;  %v2430_v60 = vmul.f32 %v4590_v58, %v2380_v59  ;;  %v3520_v43 = vpop.f32.mrf.mxu0  ;;  %v4826_v59 = vld [vmem:[%s4881_s2] ss:$0 sm:$0xff] }
 0x1c9   : > { %v3584_v54 = vpop.f32.mrf.mxu1 }
 0x1ca   : > { %v2477_v26 = vmax.f32 %v4730_v15, %v2461_v40  ;;  %v2383_v0 = vadd.f32 %v3583_v53, %v3519_v16  ;;  %v2446_v9 = vadd.f32 %v4599_v52, %v2430_v60  ;;  %v3521_v62 = vpop.f32.mrf.mxu0  ;;  %v4834_v53 = vld [vmem:[%s4882_s3] ss:$0 sm:$0xff] }
 0x1cb   : > { %v3585_v50 = vpop.f32.mrf.mxu1  ;;  %v3522_v1 = vadd.f32 %v3521_v62, %v3520_v43 }
 0x1cc   : > { %v3063_v12 = vpack.c.bf16 %v2477_v26, %v2476_v3  ;;  %v2431_v49 = vmul.f32 %v4590_v58, %v2383_v0  ;;  %v3586_v51 = vadd.f32 %v3585_v50, %v3584_v54  ;;  %v3523_v6 = vpop.f32.mrf.mxu0  ;;  %v2462_v34 = vmax.f32 %v2446_v9, 0.0 }
 0x1cd   : > { %v3587_v42 = vpop.f32.mrf.mxu1 }
 0x1ce   : > { %3095 = vst [vmem:[%s4804_s23 + $0x8] sm:$0xff] %v3063_v12   ;;  %v2447_v7 = vadd.f32 %v4599_v52, %v2431_v49  ;;  %v2388_v21 = vadd.f32 %v3586_v51, %v3522_v1  ;;  %v3524_v4 = vpop.f32.mrf.mxu0  ;;  %v2478_v8 = vmax.f32 %v4735_v31, %v2462_v34 }
 0x1cf   : > { %v3588_v17 = vpop.f32.mrf.mxu1  ;;  %v3525_v18 = vadd.f32 %v3524_v4, %v3523_v6 }
 0x1d0   : > { %v2463_v15 = vmax.f32 %v2447_v7, 0.0  ;;  %v2432_v47 = vmul.f32 %v4590_v58, %v2388_v21  ;;  %v3589_v11 = vadd.f32 %v3588_v17, %v3587_v42  ;;  %v3526_v22 = vpop.f32.mrf.mxu0 }
 0x1d1   : > { %v3590_v14 = vpop.f32.mrf.mxu1 }
 0x1d2   : > { %v2479_v20 = vmax.f32 %v4740_v41, %v2463_v15  ;;  %v2448_v61 = vadd.f32 %v4599_v52, %v2432_v47  ;;  %v2391_v27 = vadd.f32 %v3589_v11, %v3525_v18  ;;  %v3527_v28 = vpop.f32.mrf.mxu0 }
 0x1d3   : > { %v3591_v24 = vpop.f32.mrf.mxu1  ;;  %v3528_v25 = vadd.f32 %v3527_v28, %v3526_v22 }
 0x1d4   : > { %v3068_v23 = vpack.c.bf16 %v2479_v20, %v2478_v8  ;;  %v2433_v56 = vmul.f32 %v4590_v58, %v2391_v27  ;;  %v3592_v29 = vadd.f32 %v3591_v24, %v3590_v14  ;;  %v3529_v38 = vpop.f32.mrf.mxu0  ;;  %v2464_v10 = vmax.f32 %v2448_v61, 0.0 }
 0x1d5   : > { %v3593_v5 = vpop.f32.mrf.mxu1 }
 0x1d6   : > { %3096 = vst [vmem:[%s4804_s23 + $0x10] sm:$0xff] %v3068_v23   ;;  %v2449_v39 = vadd.f32 %v4599_v52, %v2433_v56  ;;  %v2396_v33 = vadd.f32 %v3592_v29, %v3528_v25  ;;  %v3530_v31 = vpop.f32.mrf.mxu0  ;;  %v2480_v40 = vmax.f32 %v4745_v44, %v2464_v10 }
 0x1d7   : > { %v3594_v30 = vpop.f32.mrf.mxu1  ;;  %v3531_v55 = vadd.f32 %v3530_v31, %v3529_v38 }
 0x1d8   : > { %v2465_v41 = vmax.f32 %v2449_v39, 0.0  ;;  %v3595_v37 = vadd.f32 %v3594_v30, %v3593_v5  ;;  %v2434_v58 = vmul.f32 %v4826_v59, %v2396_v33  ;;  %v3532_v45 = vpop.f32.mrf.mxu0 }
 0x1d9   : > { %v3596_v32 = vpop.f32.mrf.mxu1 }
 0x1da   : > { %v2481_v52 = vmax.f32 %v4750_v13, %v2465_v41  ;;  %v2399_v16 = vadd.f32 %v3595_v37, %v3531_v55  ;;  %v2450_v60 = vadd.f32 %v4834_v53, %v2434_v58  ;;  %v3533_v43 = vpop.f32.mrf.mxu0 }
 0x1db   : > { %v3597_v54 = vpop.f32.mrf.mxu1  ;;  %v3534_v0 = vadd.f32 %v3533_v43, %v3532_v45 }
 0x1dc   : > { %v3073_v3 = vpack.c.bf16 %v2481_v52, %v2480_v40  ;;  %v2435_v26 = vmul.f32 %v4826_v59, %v2399_v16  ;;  %v3598_v9 = vadd.f32 %v3597_v54, %v3596_v32  ;;  %v3535_v62 = vpop.f32.mrf.mxu0  ;;  %v2466_v44 = vmax.f32 %v2450_v60, 0.0 }
 0x1dd   : > { %v3599_v50 = vpop.f32.mrf.mxu1 }
 0x1de   : > { %3097 = vst [vmem:[%s4804_s23 + $0x18] sm:$0xff] %v3073_v3   ;;  %v2451_v13 = vadd.f32 %v4834_v53, %v2435_v26  ;;  %v2404_v12 = vadd.f32 %v3598_v9, %v3534_v0  ;;  %v3536_v49 = vpop.f32.mrf.mxu0  ;;  %v2482_v4 = vmax.f32 %v4755_v57, %v2466_v44 }
 0x1df   : > { %v3600_v1 = vpop.f32.mrf.mxu1  ;;  %v3537_v42 = vadd.f32 %v3536_v49, %v3535_v62 }
 0x1e0   : > { %v2467_v51 = vmax.f32 %v2451_v13, 0.0  ;;  %v2436_v6 = vmul.f32 %v4826_v59, %v2404_v12  ;;  %v3601_v34 = vadd.f32 %v3600_v1, %v3599_v50  ;;  %v3538_v7 = vpop.f32.mrf.mxu0 }
 0x1e1   : > { %v3602_v21 = vpop.f32.mrf.mxu1 }
 0x1e2   : > { %v2483_v17 = vmax.f32 %v4760_v35, %v2467_v51  ;;  %v2452_v15 = vadd.f32 %v4834_v53, %v2436_v6  ;;  %v2407_v47 = vadd.f32 %v3601_v34, %v3537_v42  ;;  %v3539_v18 = vpop.f32.mrf.mxu0 }
 0x1e3   : > { %v3603_v11 = vpop.f32.mrf.mxu1  ;;  %v3540_v8 = vadd.f32 %v3539_v18, %v3538_v7 }
 0x1e4   : > { %v3078_v22 = vpack.c.bf16 %v2483_v17, %v2482_v4  ;;  %v2437_v14 = vmul.f32 %v4826_v59, %v2407_v47  ;;  %v3604_v20 = vadd.f32 %v3603_v11, %v3602_v21  ;;  %v3541_v61 = vpop.f32.mrf.mxu0  ;;  %v2468_v28 = vmax.f32 %v2452_v15, 0.0 }
 0x1e5   : > { %v3605_v27 = vpop.f32.mrf.mxu1 }
 0x1e6   : > { %3098 = vst [vmem:[%s4804_s23 + $0x20] sm:$0xff] %v3078_v22   ;;  %v2453_v24 = vadd.f32 %v4834_v53, %v2437_v14  ;;  %v2412_v23 = vadd.f32 %v3604_v20, %v3540_v8  ;;  %v3542_v57 = vpop.f32.mrf.mxu0  ;;  %v2484_v39 = vmax.f32 %v4765_v2, %v2468_v28 }
 0x1e7   : > { %v3606_v56 = vpop.f32.mrf.mxu1  ;;  %v3543_v25 = vadd.f32 %v3542_v57, %v3541_v61 }
 0x1e8   : > { %v2469_v35 = vmax.f32 %v2453_v24, 0.0  ;;  %v3607_v29 = vadd.f32 %v3606_v56, %v3605_v27  ;;  %v2438_v38 = vmul.f32 %v4826_v59, %v2412_v23  ;;  %v3544_v5 = vpop.f32.mrf.mxu0 }
 0x1e9   : > { %v3608_v10 = vpop.f32.mrf.mxu1 }
 0x1ea   : > { %v2485_v33 = vmax.f32 %v4770_v48, %v2469_v35  ;;  %v2415_v31 = vadd.f32 %v3607_v29, %v3543_v25  ;;  %v2454_v30 = vadd.f32 %v4834_v53, %v2438_v38  ;;  %v3545_v41 = vpop.f32.mrf.mxu0 }
 0x1eb   : > { %v3609_v55 = vpop.f32.mrf.mxu1  ;;  %v3546_v45 = vadd.f32 %v3545_v41, %v3544_v5 }
 0x1ec   : > { %v3083_v37 = vpack.c.bf16 %v2485_v33, %v2484_v39  ;;  %v2439_v58 = vmul.f32 %v4826_v59, %v2415_v31  ;;  %v3610_v32 = vadd.f32 %v3609_v55, %v3608_v10  ;;  %v3547_v40 = vpop.f32.mrf.mxu0  ;;  %v2470_v16 = vmax.f32 %v2454_v30, 0.0 }
 0x1ed   : > { %v3611_v52 = vpop.f32.mrf.mxu1 }
 0x1ee   : > { %3099 = vst [vmem:[%s4804_s23 + $0x28] sm:$0xff] %v3083_v37   ;;  %v2455_v60 = vadd.f32 %v4834_v53, %v2439_v58  ;;  %v2420_v2 = vadd.f32 %v3610_v32, %v3546_v45  ;;  %v3548_v43 = vpop.f32.mrf.mxu0  ;;  %v2486_v9 = vmax.f32 %v4775_v19, %v2470_v16 }
 0x1ef   : > { %v3612_v48 = vpop.f32.mrf.mxu1  ;;  %v3549_v26 = vadd.f32 %v3548_v43, %v3547_v40 }
 0x1f0   : > { %v2471_v54 = vmax.f32 %v2455_v60, 0.0  ;;  %v2440_v3 = vmul.f32 %v4826_v59, %v2420_v2  ;;  %v3613_v0 = vadd.f32 %v3612_v48, %v3611_v52 }
 0x1f2   : > { %v2487_v62 = vmax.f32 %v4781_v36, %v2471_v54  ;;  %v2456_v50 = vadd.f32 %v4834_v53, %v2440_v3  ;;  %v2423_v44 = vadd.f32 %v3613_v0, %v3549_v26 }
 0x1f4   : > { %v3088_v13 = vpack.c.bf16 %v2487_v62, %v2486_v9  ;;  %v2441_v12 = vmul.f32 %v4826_v59, %v2423_v44  ;;  %v2472_v49 = vmax.f32 %v2456_v50, 0.0 }
 0x1f6   : > { %3100 = vst [vmem:[%s4804_s23 + $0x30] sm:$0xff] %v3088_v13   ;;  %v2457_v1 = vadd.f32 %v4834_v53, %v2441_v12  ;;  %v2488_v6 = vmax.f32 %v4787_v46, %v2472_v49 }
 0x1f8   : > { %v2473_v51 = vmax.f32 %v2457_v1, 0.0 }
 0x1fa   : > { %v2489_v42 = vmax.f32 %v4792_v63, %v2473_v51 }
 0x1fc   : > { %v3093_v34 = vpack.c.bf16 %v2489_v42, %v2488_v6 }
 0x1fe   : > { %3101 = vst [vmem:[%s4804_s23 + $0x38] sm:$0xff] %v3093_v34  }
 0x1ff PF: > { %s14_s19 = sadd.s32 1, %s3880_s19   ;;  %s4884_s15 = smov %s3872_s17 }
 0x200   : > { %p11_p8 = scmp.ge.s32.totalorder %s14_s19, 6   ;;  %s4885_s16 = smov %s3876_s18 }
 0x201   : > { %s4886_s17 = smov %s4889_s20  ;;  %s4887_s18 = smov %s4893_s21 }
 0x202   :  { %13 = sbr.rel (!%p11_p8) target bundleno = 3 (0x3), region = 69 }

// kernel: lightweight_bc_forward.4
= control target key start
LH: loop header
LB: loop body
LE: loop exit
PB: predicated region body
PF: predicated region fallthrough
CT: control target
= control target key end

     0   :  { %s2942_s15 = smov 0   ;;  %s3524_s0 = inlined_call_operand.vmem [shape: bf16[2,64,2048], index: 0, kind: input, shape index: {}]   ;;  %s3525_s1 = inlined_call_operand.vmem [shape: bf16[2048,128], index: 1, kind: input, shape index: {}]   ;;  %s3526_s2 = inlined_call_operand.vmem [shape: f32[1,128], index: 2, kind: input, shape index: {}]   ;;  %s3527_s3 = inlined_call_operand.vmem [shape: f32[1,128], index: 3, kind: input, shape index: {}]   ;;  %s3528_s4 = inlined_call_operand.vmem [shape: bf16[32,128], index: 4, kind: output, shape index: {}]  }
   0x1 LB: > { %s2948_s16 = sadd.s32 4294967295, %s2915_s15   ;;  %p2242_p0 = scmp.ge.s32.totalorder %s2915_s15, 1  ;;  %s2915_s15 = sphi %s2942_s15, %s14_s15  }
   0x2   : > { %p162_p1 = scmp.lt.s32.totalorder %s2915_s15, 3 }
   0x4   : > { %p163_p2 = pnand %p2242_p0, %p162_p1 }
   0x6   : > { %166 = sbr.rel (%p163_p2) target bundleno = 383 (0x17f), region = 36 }
   0xb   : > { %v2781_v0 = vld [vmem:[%s3525_s1 + $0x78] sm:$0xff]   ;;  %v2785_v4 = vld [vmem:[%s3525_s1 + $0x70] sm:$0xff]   ;;  %v2789_v8 = vld [vmem:[%s3525_s1 + $0x68] sm:$0xff]   ;;  %p188_p3 = scmp.lt.s32.totalorder %s2948_s16, 1  ;;  %s2245_s25 = sshll.u32 %s2948_s16, 1 }
   0xc   : > { %v2782_v1 = vld [vmem:[%s3525_s1 + $0xf8] sm:$0xff]   ;;  %2453 = vmatprep.subr.bf16.mxu0 %v2781_v0  ;;  %v2786_v5 = vld [vmem:[%s3525_s1 + $0xf0] sm:$0xff]   ;;  %v2790_v9 = vld [vmem:[%s3525_s1 + $0xe8] sm:$0xff]   ;;  %p194_p4 = scmp.lt.s32.totalorder %s2245_s25, 3 }
   0xd   : > { %v2783_v2 = vld [vmem:[%s3525_s1 + $0x38] sm:$0xff]   ;;  %2493 = vmatprep.subr.bf16.mxu1 %v2782_v1  ;;  %v2787_v6 = vld [vmem:[%s3525_s1 + $0x30] sm:$0xff]   ;;  %v2791_v10 = vld [vmem:[%s3525_s1 + $0x28] sm:$0xff]   ;;  %s189_s13 = scalar_select %p188_p3, %s2948_s16, 1 }
   0xe   : > { %v2784_v3 = vld [vmem:[%s3525_s1 + $0xb8] sm:$0xff]   ;;  %2454 = vmatpush3.bf16.msra.mxu0 %v2783_v2  ;;  %v2788_v7 = vld [vmem:[%s3525_s1 + $0xb0] sm:$0xff]   ;;  %v2792_v11 = vld [vmem:[%s3525_s1 + $0xa8] sm:$0xff]   ;;  %s3532_s25 = smov (!%p194_p4, %s2245_s25), 3 }
   0xf   : > { %2494 = vmatpush3.bf16.msra.mxu1 %v2784_v3  ;;  %2455 = vmatprep.subr.bf16.mxu0 %v2785_v4  ;;  %v2793_v12 = vld [vmem:[%s3525_s1 + $0x60] sm:$0xff]   ;;  %v2797_v16 = vld [vmem:[%s3525_s1 + $0x58] sm:$0xff]   ;;  %v2801_v20 = vld [vmem:[%s3525_s1 + $0x50] sm:$0xff]   ;;  %s2445_s24 = sshll.u32 %s189_s13, 9  ;;  %s2246_s16 = sshll.u32 %s3532_s25, 2 }
  0x10   : > { %2495 = vmatprep.subr.bf16.mxu1 %v2786_v5  ;;  %v2794_v13 = vld [vmem:[%s3525_s1 + $0xe0] sm:$0xff]   ;;  %v2798_v17 = vld [vmem:[%s3525_s1 + $0xd8] sm:$0xff]   ;;  %v2802_v21 = vld [vmem:[%s3525_s1 + $0xd0] sm:$0xff]   ;;  %s3047_s7 = scalar_lea.vmem %s3524_s0, %s2445_s24  ;;  %s197_s28 = scalar_lea.vmem %s3528_s4, %s2246_s16 }
  0x11   : > { %v2795_v14 = vld [vmem:[%s3525_s1 + $0x20] sm:$0xff]   ;;  %v2799_v18 = vld [vmem:[%s3525_s1 + $0x18] sm:$0xff]   ;;  %v2803_v22 = vld [vmem:[%s3525_s1 + $0x10] sm:$0xff]  }
  0x12   : > { %2456 = vmatpush3.bf16.msra.mxu0 %v2787_v6  ;;  %v2796_v15 = vld [vmem:[%s3525_s1 + $0xa0] sm:$0xff]   ;;  %v2800_v19 = vld [vmem:[%s3525_s1 + $0x98] sm:$0xff]   ;;  %v2804_v23 = vld [vmem:[%s3525_s1 + $0x90] sm:$0xff]  }
  0x13   : > { %2496 = vmatpush3.bf16.msra.mxu1 %v2788_v7  ;;  %2457 = vmatprep.subr.bf16.mxu0 %v2789_v8  ;;  %v2805_v24 = vld [vmem:[%s3525_s1 + $0x48] sm:$0xff]   ;;  %v2809_v28 = vld [vmem:[%s3525_s1 + $0x40] sm:$0xff]   ;;  %v2813_v40 = vld [vmem:[%s3525_s1 + $0x178] sm:$0xff]  }
  0x14   : > { %2497 = vmatprep.subr.bf16.mxu1 %v2790_v9  ;;  %v2806_v25 = vld [vmem:[%s3525_s1 + $0xc8] sm:$0xff]   ;;  %v2810_v29 = vld [vmem:[%s3525_s1 + $0xc0] sm:$0xff]   ;;  %v2814_v41 = vld [vmem:[%s3525_s1 + $0x1f8] sm:$0xff]  }
  0x15   : > { %v2807_v26 = vld [vmem:[%s3525_s1 + $0x8] sm:$0xff]   ;;  %v2811_v30 = vld [vmem:[%s3525_s1] sm:$0xff]   ;;  %v2815_v42 = vld [vmem:[%s3525_s1 + $0x138] sm:$0xff]  }
  0x16   : > { %2458 = vmatpush3.bf16.msra.mxu0 %v2791_v10  ;;  %v2808_v27 = vld [vmem:[%s3525_s1 + $0x88] sm:$0xff]   ;;  %v2812_v31 = vld [vmem:[%s3525_s1 + $0x80] sm:$0xff]   ;;  %v2816_v43 = vld [vmem:[%s3525_s1 + $0x1b8] sm:$0xff]  }
  0x17   : > { %2498 = vmatpush3.bf16.msra.mxu1 %v2792_v11  ;;  %2459 = vmatprep.subr.bf16.mxu0 %v2793_v12  ;;  %v200_v32 = vld [vmem:[%s3047_s7] sm:$0xff]  ;;  %v201_v34 = vld [vmem:[%s3047_s7 + $0x8] sm:$0xff]  ;;  %v2817_v44 = vld [vmem:[%s3525_s1 + $0x170] sm:$0xff]  }
  0x18   : > { %2499 = vmatprep.subr.bf16.mxu1 %v2794_v13  ;;  %v208_v33 = vld [vmem:[%s3047_s7 + $0x40] sm:$0xff]  ;;  %v209_v37 = vld [vmem:[%s3047_s7 + $0x48] sm:$0xff]  ;;  %v2818_v45 = vld [vmem:[%s3525_s1 + $0x1f0] sm:$0xff]  }
  0x19   : > { %v2247_v35 = vcombine.low %v200_v32, %v208_v33  ;;  %v2248_v36 = vcombine.high %v200_v32, %v208_v33  ;;  %v2249_v38 = vcombine.low %v201_v34, %v209_v37  ;;  %v2250_v39 = vcombine.high %v201_v34, %v209_v37  ;;  %v2819_v46 = vld [vmem:[%s3525_s1 + $0x130] sm:$0xff]   ;;  %v216_v48 = vld [vmem:[%s3047_s7 + $0x80] sm:$0xff]  ;;  %v217_v51 = vld [vmem:[%s3047_s7 + $0x88] sm:$0xff] }
  0x1a   : > { %2460 = vmatpush3.bf16.msra.mxu0 %v2795_v14  ;;  %v2820_v47 = vld [vmem:[%s3525_s1 + $0x1b0] sm:$0xff]   ;;  %v224_v49 = vld [vmem:[%s3047_s7 + $0xc0] sm:$0xff]  ;;  %v225_v52 = vld [vmem:[%s3047_s7 + $0xc8] sm:$0xff] }
  0x1b   : > { %2500 = vmatpush3.bf16.msra.mxu1 %v2796_v15  ;;  %2461 = vmatprep.subr.bf16.mxu0 %v2797_v16  ;;  %v2264_v50 = vcombine.high %v216_v48, %v224_v49  ;;  %v2263_v53 = vcombine.low %v216_v48, %v224_v49  ;;  %v2266_v54 = vcombine.high %v217_v51, %v225_v52  ;;  %v2821_v56 = vld [vmem:[%s3525_s1 + $0x168] sm:$0xff]   ;;  %v2825_v60 = vld [vmem:[%s3525_s1 + $0x160] sm:$0xff]   ;;  %v2829_v8 = vld [vmem:[%s3525_s1 + $0x158] sm:$0xff]  }
  0x1c   : > { %2501 = vmatprep.subr.bf16.mxu1 %v2798_v17  ;;  %1640 = vmatprep.mubr.bf16.mxu0 %v2248_v36  ;;  %v2265_v55 = vcombine.low %v217_v51, %v225_v52  ;;  %v2822_v57 = vld [vmem:[%s3525_s1 + $0x1e8] sm:$0xff]   ;;  %v2826_v61 = vld [vmem:[%s3525_s1 + $0x1e0] sm:$0xff]   ;;  %v2830_v9 = vld [vmem:[%s3525_s1 + $0x1d8] sm:$0xff]  }
  0x1d   : > { %1705 = vmatprep.mubr.bf16.mxu1 %v2250_v39  ;;  %v2823_v58 = vld [vmem:[%s3525_s1 + $0x128] sm:$0xff]   ;;  %v2827_v62 = vld [vmem:[%s3525_s1 + $0x120] sm:$0xff]   ;;  %v2831_v10 = vld [vmem:[%s3525_s1 + $0x118] sm:$0xff]  }
  0x1e   : > { %2462 = vmatpush3.bf16.msra.mxu0 %v2799_v18  ;;  %v2824_v59 = vld [vmem:[%s3525_s1 + $0x1a8] sm:$0xff]   ;;  %v2828_v63 = vld [vmem:[%s3525_s1 + $0x1a0] sm:$0xff]   ;;  %v2832_v11 = vld [vmem:[%s3525_s1 + $0x198] sm:$0xff]  }
  0x1f   : > { %2502 = vmatpush3.bf16.msra.mxu1 %v2800_v19  ;;  %2463 = vmatprep.subr.bf16.mxu0 %v2801_v20  ;;  %v232_v0 = vld [vmem:[%s3047_s7 + $0x100] sm:$0xff]  ;;  %v233_v2 = vld [vmem:[%s3047_s7 + $0x108] sm:$0xff]  ;;  %v2833_v12 = vld [vmem:[%s3525_s1 + $0x150] sm:$0xff]  }
  0x20   : > { %2503 = vmatprep.subr.bf16.mxu1 %v2802_v21  ;;  %v240_v1 = vld [vmem:[%s3047_s7 + $0x140] sm:$0xff]  ;;  %v241_v3 = vld [vmem:[%s3047_s7 + $0x148] sm:$0xff]  ;;  %v2834_v13 = vld [vmem:[%s3525_s1 + $0x1d0] sm:$0xff]  }
  0x21   : > { %v2280_v4 = vcombine.high %v232_v0, %v240_v1  ;;  %v2282_v5 = vcombine.high %v233_v2, %v241_v3  ;;  %v2279_v6 = vcombine.low %v232_v0, %v240_v1  ;;  %v2281_v7 = vcombine.low %v233_v2, %v241_v3  ;;  %v2835_v14 = vld [vmem:[%s3525_s1 + $0x110] sm:$0xff]   ;;  %v248_v16 = vld [vmem:[%s3047_s7 + $0x180] sm:$0xff]  ;;  %v249_v18 = vld [vmem:[%s3047_s7 + $0x188] sm:$0xff] }
  0x22   : > { %2464 = vmatpush3.bf16.msra.mxu0 %v2803_v22  ;;  %v2836_v15 = vld [vmem:[%s3525_s1 + $0x190] sm:$0xff]   ;;  %v256_v17 = vld [vmem:[%s3047_s7 + $0x1c0] sm:$0xff]  ;;  %v257_v20 = vld [vmem:[%s3047_s7 + $0x1c8] sm:$0xff] }
  0x23   : > { %2504 = vmatpush3.bf16.msra.mxu1 %v2804_v23  ;;  %2465 = vmatprep.subr.bf16.mxu0 %v2805_v24  ;;  %v2296_v19 = vcombine.high %v248_v16, %v256_v17  ;;  %v2295_v21 = vcombine.low %v248_v16, %v256_v17  ;;  %v2298_v22 = vcombine.high %v249_v18, %v257_v20  ;;  %v2837_v24 = vld [vmem:[%s3525_s1 + $0x148] sm:$0xff]   ;;  %v202_v32 = vld [vmem:[%s3047_s7 + $0x10] sm:$0xff]  ;;  %v203_v36 = vld [vmem:[%s3047_s7 + $0x18] sm:$0xff] }
  0x24   : > { %2505 = vmatprep.subr.bf16.mxu1 %v2806_v25  ;;  %v2297_v23 = vcombine.low %v249_v18, %v257_v20  ;;  %v2838_v25 = vld [vmem:[%s3525_s1 + $0x1c8] sm:$0xff]   ;;  %v210_v33 = vld [vmem:[%s3047_s7 + $0x50] sm:$0xff]  ;;  %v211_v37 = vld [vmem:[%s3047_s7 + $0x58] sm:$0xff] }
  0x25   : > { %v2251_v34 = vcombine.low %v202_v32, %v210_v33  ;;  %v2254_v39 = vcombine.high %v203_v36, %v211_v37  ;;  %v218_v48 = vld [vmem:[%s3047_s7 + $0x90] sm:$0xff]  ;;  %v227_v51 = vld [vmem:[%s3047_s7 + $0xd8] sm:$0xff] }
  0x26   : > { %2466 = vmatpush3.bf16.msra.mxu0 %v2807_v26  ;;  %v2839_v26 = vld [vmem:[%s3525_s1 + $0x108] sm:$0xff]   ;;  %v226_v49 = vld [vmem:[%s3047_s7 + $0xd0] sm:$0xff]  ;;  %v235_v2 = vld [vmem:[%s3047_s7 + $0x118] sm:$0xff] }
  0x27   : > { %2506 = vmatpush3.bf16.msra.mxu1 %v2808_v27  ;;  %2467 = vmatprep.subr.bf16.mxu0 %v2809_v28  ;;  %v2840_v27 = vld [vmem:[%s3525_s1 + $0x188] sm:$0xff]   ;;  %v2841_v28 = vld [vmem:[%s3525_s1 + $0x140] sm:$0xff]   ;;  %v2268_v52 = vcombine.high %v218_v48, %v226_v49  ;;  %v234_v0 = vld [vmem:[%s3047_s7 + $0x110] sm:$0xff] }
  0x28   : > { %2507 = vmatprep.subr.bf16.mxu1 %v2810_v29  ;;  %v2842_v29 = vld [vmem:[%s3525_s1 + $0x1c0] sm:$0xff]   ;;  %v242_v1 = vld [vmem:[%s3047_s7 + $0x150] sm:$0xff]  ;;  %v259_v20 = vld [vmem:[%s3047_s7 + $0x1d8] sm:$0xff] }
  0x29   : > { %v2284_v3 = vcombine.high %v234_v0, %v242_v1  ;;  %v250_v16 = vld [vmem:[%s3047_s7 + $0x190] sm:$0xff] }
  0x2a   : > { %2468 = vmatpush3.bf16.msra.mxu0 %v2811_v30  ;;  %v2843_v30 = vld [vmem:[%s3525_s1 + $0x100] sm:$0xff]   ;;  %v258_v17 = vld [vmem:[%s3047_s7 + $0x1d0] sm:$0xff] }
  0x2b   : > { %2508 = vmatpush3.bf16.msra.mxu1 %v2812_v31  ;;  %2533 = vmatprep.subr.bf16.mxu0 %v2813_v40  ;;  %v2844_v31 = vld [vmem:[%s3525_s1 + $0x180] sm:$0xff]   ;;  %v2845_v40 = vld [vmem:[%s3525_s1 + $0x278] sm:$0xff]   ;;  %v2300_v18 = vcombine.high %v250_v16, %v258_v17 }
  0x2c   : > { %2573 = vmatprep.subr.bf16.mxu1 %v2814_v41  ;;  %v2846_v41 = vld [vmem:[%s3525_s1 + $0x2f8] sm:$0xff]  }
  0x2d   : > { %1641 = vmatmul.mubr.bf16.vlgmr.msra.gmra.mxu0 %v2247_v35  ;;  %v2252_v35 = vcombine.high %v202_v32, %v210_v33  ;;  %v204_v32 = vld [vmem:[%s3047_s7 + $0x20] sm:$0xff] }
  0x2e   : > { %1706 = vmatmul.mubr.bf16.vlgmr.msra.gmra.mxu1 %v2249_v38  ;;  %2534 = vmatpush3.bf16.msra.mxu0 %v2815_v42  ;;  %v2253_v38 = vcombine.low %v203_v36, %v211_v37  ;;  %v2847_v42 = vld [vmem:[%s3525_s1 + $0x238] sm:$0xff]   ;;  %v212_v33 = vld [vmem:[%s3047_s7 + $0x60] sm:$0xff] }
  0x2f   : > { %2574 = vmatpush3.bf16.msra.mxu1 %v2816_v43  ;;  %2535 = vmatprep.subr.bf16.mxu0 %v2817_v44  ;;  %v2848_v43 = vld [vmem:[%s3525_s1 + $0x2b8] sm:$0xff]   ;;  %v2849_v44 = vld [vmem:[%s3525_s1 + $0x270] sm:$0xff]   ;;  %v2255_v36 = vcombine.low %v204_v32, %v212_v33  ;;  %v2256_v37 = vcombine.high %v204_v32, %v212_v33 }
  0x30   : > { %2575 = vmatprep.subr.bf16.mxu1 %v2818_v45  ;;  %1648 = vmatprep.mubr.bf16.mxu0 %v2264_v50  ;;  %v2850_v45 = vld [vmem:[%s3525_s1 + $0x2f0] sm:$0xff]   ;;  %v219_v50 = vld [vmem:[%s3047_s7 + $0x98] sm:$0xff] }
  0x31   : > { %1713 = vmatprep.mubr.bf16.mxu1 %v2266_v54  ;;  %v2267_v54 = vcombine.low %v218_v48, %v226_v49  ;;  %v220_v48 = vld [vmem:[%s3047_s7 + $0xa0] sm:$0xff]  ;;  %v206_v32 = vld [vmem:[%s3047_s7 + $0x30] sm:$0xff] }
  0x32   : > { %2536 = vmatpush3.bf16.msra.mxu0 %v2819_v46  ;;  %v2851_v46 = vld [vmem:[%s3525_s1 + $0x230] sm:$0xff]   ;;  %v228_v49 = vld [vmem:[%s3047_s7 + $0xe0] sm:$0xff] }
  0x33   : > { %2576 = vmatpush3.bf16.msra.mxu1 %v2820_v47  ;;  %2537 = vmatprep.subr.bf16.mxu0 %v2821_v56  ;;  %v2852_v47 = vld [vmem:[%s3525_s1 + $0x2b0] sm:$0xff]   ;;  %v2853_v56 = vld [vmem:[%s3525_s1 + $0x268] sm:$0xff]  }
  0x34   : > { %2577 = vmatprep.subr.bf16.mxu1 %v2822_v57  ;;  %v2854_v57 = vld [vmem:[%s3525_s1 + $0x2e8] sm:$0xff]   ;;  %v214_v33 = vld [vmem:[%s3047_s7 + $0x70] sm:$0xff] }
  0x35   : > { %1649 = vmatmul.mubr.bf16.gmra.mxu0 %v2263_v53  ;;  %v2270_v53 = vcombine.high %v219_v50, %v227_v51 }
  0x36   : > { %1714 = vmatmul.mubr.bf16.gmra.mxu1 %v2265_v55  ;;  %2538 = vmatpush3.bf16.msra.mxu0 %v2823_v58  ;;  %v2269_v55 = vcombine.low %v219_v50, %v227_v51  ;;  %v2855_v58 = vld [vmem:[%s3525_s1 + $0x228] sm:$0xff]   ;;  %v2272_v51 = vcombine.high %v220_v48, %v228_v49 }
  0x37   : > { %2578 = vmatpush3.bf16.msra.mxu1 %v2824_v59  ;;  %2539 = vmatprep.subr.bf16.mxu0 %v2825_v60  ;;  %v2856_v59 = vld [vmem:[%s3525_s1 + $0x2a8] sm:$0xff]   ;;  %v2857_v60 = vld [vmem:[%s3525_s1 + $0x260] sm:$0xff]  }
  0x38   : > { %2579 = vmatprep.subr.bf16.mxu1 %v2826_v61  ;;  %1656 = vmatprep.mubr.bf16.mxu0 %v2280_v4  ;;  %v2858_v61 = vld [vmem:[%s3525_s1 + $0x2e0] sm:$0xff]   ;;  %v243_v4 = vld [vmem:[%s3047_s7 + $0x158] sm:$0xff]  ;;  %v221_v50 = vld [vmem:[%s3047_s7 + $0xa8] sm:$0xff] }
  0x39   : > { %1721 = vmatprep.mubr.bf16.mxu1 %v2282_v5  ;;  %v2283_v5 = vcombine.low %v234_v0, %v242_v1  ;;  %v236_v0 = vld [vmem:[%s3047_s7 + $0x120] sm:$0xff] }
  0x3a   : > { %2540 = vmatpush3.bf16.msra.mxu0 %v2827_v62  ;;  %v2859_v62 = vld [vmem:[%s3525_s1 + $0x220] sm:$0xff]  }
  0x3b   : > { %2580 = vmatpush3.bf16.msra.mxu1 %v2828_v63  ;;  %2541 = vmatprep.subr.bf16.mxu0 %v2829_v8  ;;  %v2860_v63 = vld [vmem:[%s3525_s1 + $0x2a0] sm:$0xff]   ;;  %v2861_v8 = vld [vmem:[%s3525_s1 + $0x258] sm:$0xff]  }
  0x3c   : > { %2581 = vmatprep.subr.bf16.mxu1 %v2830_v9  ;;  %v2862_v9 = vld [vmem:[%s3525_s1 + $0x2d8] sm:$0xff]   ;;  %v244_v1 = vld [vmem:[%s3047_s7 + $0x160] sm:$0xff] }
  0x3d   : > { %1657 = vmatmul.mubr.bf16.gmra.mxu0 %v2279_v6  ;;  %v2286_v6 = vcombine.high %v235_v2, %v243_v4 }
  0x3e   : > { %1722 = vmatmul.mubr.bf16.gmra.mxu1 %v2281_v7  ;;  %2542 = vmatpush3.bf16.msra.mxu0 %v2831_v10  ;;  %v2285_v7 = vcombine.low %v235_v2, %v243_v4  ;;  %v2863_v10 = vld [vmem:[%s3525_s1 + $0x218] sm:$0xff]   ;;  %v2288_v2 = vcombine.high %v236_v0, %v244_v1  ;;  %v245_v4 = vld [vmem:[%s3047_s7 + $0x168] sm:$0xff] }
  0x3f   : > { %2582 = vmatpush3.bf16.msra.mxu1 %v2832_v11  ;;  %2543 = vmatprep.subr.bf16.mxu0 %v2833_v12  ;;  %v2864_v11 = vld [vmem:[%s3525_s1 + $0x298] sm:$0xff]   ;;  %v2865_v12 = vld [vmem:[%s3525_s1 + $0x250] sm:$0xff]  }
  0x40   : > { %2583 = vmatprep.subr.bf16.mxu1 %v2834_v13  ;;  %1664 = vmatprep.mubr.bf16.mxu0 %v2296_v19  ;;  %v2866_v13 = vld [vmem:[%s3525_s1 + $0x2d0] sm:$0xff]   ;;  %v251_v19 = vld [vmem:[%s3047_s7 + $0x198] sm:$0xff] }
  0x41   : > { %1729 = vmatprep.mubr.bf16.mxu1 %v2298_v22  ;;  %v2302_v22 = vcombine.high %v251_v19, %v259_v20 }
  0x42   : > { %2544 = vmatpush3.bf16.msra.mxu0 %v2835_v14  ;;  %v2867_v14 = vld [vmem:[%s3525_s1 + $0x210] sm:$0xff]  }
  0x43   : > { %2584 = vmatpush3.bf16.msra.mxu1 %v2836_v15  ;;  %2545 = vmatprep.subr.bf16.mxu0 %v2837_v24  ;;  %v2868_v15 = vld [vmem:[%s3525_s1 + $0x290] sm:$0xff]   ;;  %v2869_v24 = vld [vmem:[%s3525_s1 + $0x248] sm:$0xff]  }
  0x44   : > { %2585 = vmatprep.subr.bf16.mxu1 %v2838_v25  ;;  %v2870_v25 = vld [vmem:[%s3525_s1 + $0x2c8] sm:$0xff]  }
  0x45   : > { %1665 = vmatmul.mubr.bf16.gmra.mxu0 %v2295_v21  ;;  %v2299_v21 = vcombine.low %v250_v16, %v258_v17  ;;  %v252_v16 = vld [vmem:[%s3047_s7 + $0x1a0] sm:$0xff] }
  0x46   : > { %1730 = vmatmul.mubr.bf16.gmra.mxu1 %v2297_v23  ;;  %2546 = vmatpush3.bf16.msra.mxu0 %v2839_v26  ;;  %v2301_v23 = vcombine.low %v251_v19, %v259_v20  ;;  %v2871_v26 = vld [vmem:[%s3525_s1 + $0x208] sm:$0xff]   ;;  %v260_v17 = vld [vmem:[%s3047_s7 + $0x1e0] sm:$0xff] }
  0x47   : > { %2586 = vmatpush3.bf16.msra.mxu1 %v2840_v27  ;;  %2547 = vmatprep.subr.bf16.mxu0 %v2841_v28  ;;  %v2872_v27 = vld [vmem:[%s3525_s1 + $0x288] sm:$0xff]   ;;  %v2873_v28 = vld [vmem:[%s3525_s1 + $0x240] sm:$0xff]   ;;  %v2304_v20 = vcombine.high %v252_v16, %v260_v17 }
  0x48   : > { %2587 = vmatprep.subr.bf16.mxu1 %v2842_v29  ;;  %1770 = vmatprep.mubr.bf16.mxu0 %v2252_v35  ;;  %v2874_v29 = vld [vmem:[%s3525_s1 + $0x2c0] sm:$0xff]   ;;  %v213_v35 = vld [vmem:[%s3047_s7 + $0x68] sm:$0xff] }
  0x49   : > { %1835 = vmatprep.mubr.bf16.mxu1 %v2254_v39  ;;  %v261_v19 = vld [vmem:[%s3047_s7 + $0x1e8] sm:$0xff] }
  0x4a   : > { %2548 = vmatpush3.bf16.msra.mxu0 %v2843_v30  ;;  %v2875_v30 = vld [vmem:[%s3525_s1 + $0x200] sm:$0xff]  }
  0x4b   : > { %2588 = vmatpush3.bf16.msra.mxu1 %v2844_v31  ;;  %2613 = vmatprep.subr.bf16.mxu0 %v2845_v40  ;;  %v2876_v31 = vld [vmem:[%s3525_s1 + $0x280] sm:$0xff]   ;;  %v2877_v40 = vld [vmem:[%s3525_s1 + $0x378] sm:$0xff]  }
  0x4c   : > { %2653 = vmatprep.subr.bf16.mxu1 %v2846_v41  ;;  %v2878_v41 = vld [vmem:[%s3525_s1 + $0x3f8] sm:$0xff]  }
  0x4d   : > { %1771 = vmatmul.mubr.bf16.vlgmr.msra.gmra.mxu0 %v2251_v34  ;;  %v205_v34 = vld [vmem:[%s3047_s7 + $0x28] sm:$0xff] }
  0x4e   : > { %1836 = vmatmul.mubr.bf16.vlgmr.msra.gmra.mxu1 %v2253_v38  ;;  %2614 = vmatpush3.bf16.msra.mxu0 %v2847_v42  ;;  %v2257_v38 = vcombine.low %v205_v34, %v213_v35  ;;  %v2258_v39 = vcombine.high %v205_v34, %v213_v35  ;;  %v2879_v42 = vld [vmem:[%s3525_s1 + $0x338] sm:$0xff]   ;;  %v2259_v35 = vcombine.low %v206_v32, %v214_v33 }
  0x4f   : > { %2654 = vmatpush3.bf16.msra.mxu1 %v2848_v43  ;;  %2615 = vmatprep.subr.bf16.mxu0 %v2849_v44  ;;  %v2880_v43 = vld [vmem:[%s3525_s1 + $0x3b8] sm:$0xff]   ;;  %v2881_v44 = vld [vmem:[%s3525_s1 + $0x370] sm:$0xff]  }
  0x50   : > { %2655 = vmatprep.subr.bf16.mxu1 %v2850_v45  ;;  %1778 = vmatprep.mubr.bf16.mxu0 %v2268_v52  ;;  %v2882_v45 = vld [vmem:[%s3525_s1 + $0x3f0] sm:$0xff]   ;;  %v229_v52 = vld [vmem:[%s3047_s7 + $0xe8] sm:$0xff]  ;;  %v207_v34 = vld [vmem:[%s3047_s7 + $0x38] sm:$0xff] }
  0x51   : > { %1843 = vmatprep.mubr.bf16.mxu1 %v2270_v53  ;;  %v2271_v53 = vcombine.low %v220_v48, %v228_v49  ;;  %v239_v48 = vld [vmem:[%s3047_s7 + $0x138] sm:$0xff] }
  0x52   : > { %2616 = vmatpush3.bf16.msra.mxu0 %v2851_v46  ;;  %v2883_v46 = vld [vmem:[%s3525_s1 + $0x330] sm:$0xff]   ;;  %v247_v49 = vld [vmem:[%s3047_s7 + $0x178] sm:$0xff] }
  0x53   : > { %2656 = vmatpush3.bf16.msra.mxu1 %v2852_v47  ;;  %2617 = vmatprep.subr.bf16.mxu0 %v2853_v56  ;;  %v2884_v47 = vld [vmem:[%s3525_s1 + $0x3b0] sm:$0xff]   ;;  %v2885_v56 = vld [vmem:[%s3525_s1 + $0x368] sm:$0xff]  }
  0x54   : > { %2657 = vmatprep.subr.bf16.mxu1 %v2854_v57  ;;  %v2886_v57 = vld [vmem:[%s3525_s1 + $0x3e8] sm:$0xff]  }
  0x55   : > { %1779 = vmatmul.mubr.bf16.gmra.mxu0 %v2267_v54  ;;  %v2274_v54 = vcombine.high %v221_v50, %v229_v52 }
  0x56   : > { %1844 = vmatmul.mubr.bf16.gmra.mxu1 %v2269_v55  ;;  %2618 = vmatpush3.bf16.msra.mxu0 %v2855_v58  ;;  %v2273_v55 = vcombine.low %v221_v50, %v229_v52  ;;  %v2887_v58 = vld [vmem:[%s3525_s1 + $0x328] sm:$0xff]  }
  0x57   : > { %2658 = vmatpush3.bf16.msra.mxu1 %v2856_v59  ;;  %2619 = vmatprep.subr.bf16.mxu0 %v2857_v60  ;;  %v2888_v59 = vld [vmem:[%s3525_s1 + $0x3a8] sm:$0xff]   ;;  %v2889_v60 = vld [vmem:[%s3525_s1 + $0x360] sm:$0xff]  }
  0x58   : > { %2659 = vmatprep.subr.bf16.mxu1 %v2858_v61  ;;  %1786 = vmatprep.mubr.bf16.mxu0 %v2284_v3  ;;  %v2890_v61 = vld [vmem:[%s3525_s1 + $0x3e0] sm:$0xff]   ;;  %v237_v3 = vld [vmem:[%s3047_s7 + $0x128] sm:$0xff] }
  0x59   : > { %1851 = vmatprep.mubr.bf16.mxu1 %v2286_v6  ;;  %v2290_v6 = vcombine.high %v237_v3, %v245_v4 }
  0x5a   : > { %2620 = vmatpush3.bf16.msra.mxu0 %v2859_v62  ;;  %v2891_v62 = vld [vmem:[%s3525_s1 + $0x320] sm:$0xff]  }
  0x5b   : > { %2660 = vmatpush3.bf16.msra.mxu1 %v2860_v63  ;;  %2621 = vmatprep.subr.bf16.mxu0 %v2861_v8  ;;  %v2892_v63 = vld [vmem:[%s3525_s1 + $0x3a0] sm:$0xff]   ;;  %v2893_v8 = vld [vmem:[%s3525_s1 + $0x358] sm:$0xff]  }
  0x5c   : > { %2661 = vmatprep.subr.bf16.mxu1 %v2862_v9  ;;  %v2894_v9 = vld [vmem:[%s3525_s1 + $0x3d8] sm:$0xff]  }
  0x5d   : > { %1787 = vmatmul.mubr.bf16.gmra.mxu0 %v2283_v5  ;;  %v2287_v5 = vcombine.low %v236_v0, %v244_v1 }
  0x5e   : > { %1852 = vmatmul.mubr.bf16.gmra.mxu1 %v2285_v7  ;;  %2622 = vmatpush3.bf16.msra.mxu0 %v2863_v10  ;;  %v2289_v7 = vcombine.low %v237_v3, %v245_v4  ;;  %v2895_v10 = vld [vmem:[%s3525_s1 + $0x318] sm:$0xff]  }
  0x5f   : > { %2662 = vmatpush3.bf16.msra.mxu1 %v2864_v11  ;;  %2623 = vmatprep.subr.bf16.mxu0 %v2865_v12  ;;  %v2896_v11 = vld [vmem:[%s3525_s1 + $0x398] sm:$0xff]   ;;  %v2897_v12 = vld [vmem:[%s3525_s1 + $0x350] sm:$0xff]  }
  0x60   : > { %2663 = vmatprep.subr.bf16.mxu1 %v2866_v13  ;;  %1794 = vmatprep.mubr.bf16.mxu0 %v2300_v18  ;;  %v2898_v13 = vld [vmem:[%s3525_s1 + $0x3d0] sm:$0xff]   ;;  %v253_v18 = vld [vmem:[%s3047_s7 + $0x1a8] sm:$0xff] }
  0x61   : > { %1859 = vmatprep.mubr.bf16.mxu1 %v2302_v22  ;;  %v2303_v22 = vcombine.low %v252_v16, %v260_v17 }
  0x62   : > { %2624 = vmatpush3.bf16.msra.mxu0 %v2867_v14  ;;  %v2899_v14 = vld [vmem:[%s3525_s1 + $0x310] sm:$0xff]  }
  0x63   : > { %2664 = vmatpush3.bf16.msra.mxu1 %v2868_v15  ;;  %2625 = vmatprep.subr.bf16.mxu0 %v2869_v24  ;;  %v2900_v15 = vld [vmem:[%s3525_s1 + $0x390] sm:$0xff]   ;;  %v2901_v24 = vld [vmem:[%s3525_s1 + $0x348] sm:$0xff]  }
  0x64   : > { %2665 = vmatprep.subr.bf16.mxu1 %v2870_v25  ;;  %v2902_v25 = vld [vmem:[%s3525_s1 + $0x3c8] sm:$0xff]  }
  0x65   : > { %1795 = vmatmul.mubr.bf16.gmra.mxu0 %v2299_v21  ;;  %v2306_v21 = vcombine.high %v253_v18, %v261_v19 }
  0x66   : > { %1860 = vmatmul.mubr.bf16.gmra.mxu1 %v2301_v23  ;;  %2626 = vmatpush3.bf16.msra.mxu0 %v2871_v26  ;;  %v2305_v23 = vcombine.low %v253_v18, %v261_v19  ;;  %v2903_v26 = vld [vmem:[%s3525_s1 + $0x308] sm:$0xff]  }
  0x67   : > { %2666 = vmatpush3.bf16.msra.mxu1 %v2872_v27  ;;  %2627 = vmatprep.subr.bf16.mxu0 %v2873_v28  ;;  %v2904_v27 = vld [vmem:[%s3525_s1 + $0x388] sm:$0xff]   ;;  %v2905_v28 = vld [vmem:[%s3525_s1 + $0x340] sm:$0xff]  }
  0x68   : > { %2667 = vmatprep.subr.bf16.mxu1 %v2874_v29  ;;  %1900 = vmatprep.mubr.bf16.mxu0 %v2256_v37  ;;  %v2906_v29 = vld [vmem:[%s3525_s1 + $0x3c0] sm:$0xff]   ;;  %v215_v37 = vld [vmem:[%s3047_s7 + $0x78] sm:$0xff] }
  0x69   : > { %1965 = vmatprep.mubr.bf16.mxu1 %v2258_v39  ;;  %v230_v39 = vld [vmem:[%s3047_s7 + $0xf0] sm:$0xff] }
  0x6a   : > { %2628 = vmatpush3.bf16.msra.mxu0 %v2875_v30  ;;  %v2907_v30 = vld [vmem:[%s3525_s1 + $0x300] sm:$0xff]  }
  0x6b   : > { %2668 = vmatpush3.bf16.msra.mxu1 %v2876_v31  ;;  %2693 = vmatprep.subr.bf16.mxu0 %v2877_v40  ;;  %v2908_v31 = vld [vmem:[%s3525_s1 + $0x380] sm:$0xff]   ;;  %v2261_v40 = vcombine.low %v207_v34, %v215_v37 }
  0x6c   : > { %2733 = vmatprep.subr.bf16.mxu1 %v2878_v41  ;;  %v2262_v41 = vcombine.high %v207_v34, %v215_v37 }
  0x6d   : > { %1901 = vmatmul.mubr.bf16.vlgmr.msra.gmra.mxu0 %v2255_v36  ;;  %v2260_v36 = vcombine.high %v206_v32, %v214_v33 }
  0x6e   : > { %1966 = vmatmul.mubr.bf16.vlgmr.msra.gmra.mxu1 %v2257_v38  ;;  %2694 = vmatpush3.bf16.msra.mxu0 %v2879_v42  ;;  %v222_v38 = vld [vmem:[%s3047_s7 + $0xb0] sm:$0xff] }
  0x6f   : > { %2734 = vmatpush3.bf16.msra.mxu1 %v2880_v43  ;;  %2695 = vmatprep.subr.bf16.mxu0 %v2881_v44  ;;  %v2276_v42 = vcombine.high %v222_v38, %v230_v39  ;;  %v223_v43 = vld [vmem:[%s3047_s7 + $0xb8] sm:$0xff]  ;;  %v2275_v50 = vcombine.low %v222_v38, %v230_v39 }
  0x70   : > { %2735 = vmatprep.subr.bf16.mxu1 %v2882_v45  ;;  %1908 = vmatprep.mubr.bf16.mxu0 %v2272_v51  ;;  %v231_v44 = vld [vmem:[%s3047_s7 + $0xf8] sm:$0xff] }
  0x71   : > { %1973 = vmatprep.mubr.bf16.mxu1 %v2274_v54  ;;  %v2278_v45 = vcombine.high %v223_v43, %v231_v44  ;;  %v2277_v51 = vcombine.low %v223_v43, %v231_v44  ;;  %v254_v54 = vld [vmem:[%s3047_s7 + $0x1b0] sm:$0xff] }
  0x72   : > { %2696 = vmatpush3.bf16.msra.mxu0 %v2883_v46  ;;  %v238_v46 = vld [vmem:[%s3047_s7 + $0x130] sm:$0xff] }
  0x73   : > { %2736 = vmatpush3.bf16.msra.mxu1 %v2884_v47  ;;  %2697 = vmatprep.subr.bf16.mxu0 %v2885_v56  ;;  %v246_v47 = vld [vmem:[%s3047_s7 + $0x170] sm:$0xff]  ;;  %v255_v56 = vld [vmem:[%s3047_s7 + $0x1b8] sm:$0xff] }
  0x74   : > { %2737 = vmatprep.subr.bf16.mxu1 %v2886_v57  ;;  %v2292_v52 = vcombine.high %v238_v46, %v246_v47  ;;  %v263_v57 = vld [vmem:[%s3047_s7 + $0x1f8] sm:$0xff] }
  0x75   : > { %1909 = vmatmul.mubr.bf16.gmra.mxu0 %v2271_v53  ;;  %v2294_v53 = vcombine.high %v239_v48, %v247_v49 }
  0x76   : > { %1974 = vmatmul.mubr.bf16.gmra.mxu1 %v2273_v55  ;;  %2698 = vmatpush3.bf16.msra.mxu0 %v2887_v58  ;;  %v262_v55 = vld [vmem:[%s3047_s7 + $0x1f0] sm:$0xff]  ;;  %v2291_v58 = vcombine.low %v238_v46, %v246_v47 }
  0x77   : > { %2738 = vmatpush3.bf16.msra.mxu1 %v2888_v59  ;;  %2699 = vmatprep.subr.bf16.mxu0 %v2889_v60  ;;  %v2293_v59 = vcombine.low %v239_v48, %v247_v49  ;;  %v2308_v60 = vcombine.high %v254_v54, %v262_v55 }
  0x78   : > { %2739 = vmatprep.subr.bf16.mxu1 %v2890_v61  ;;  %1916 = vmatprep.mubr.bf16.mxu0 %v2288_v2  ;;  %v2310_v61 = vcombine.high %v255_v56, %v263_v57 }
  0x79   : > { %1981 = vmatprep.mubr.bf16.mxu1 %v2290_v6 }
  0x7a   : > { %2700 = vmatpush3.bf16.msra.mxu0 %v2891_v62  ;;  %v2307_v62 = vcombine.low %v254_v54, %v262_v55 }
  0x7b   : > { %2740 = vmatpush3.bf16.msra.mxu1 %v2892_v63  ;;  %2701 = vmatprep.subr.bf16.mxu0 %v2893_v8  ;;  %v2309_v63 = vcombine.low %v255_v56, %v263_v57 }
  0x7c   : > { %2741 = vmatprep.subr.bf16.mxu1 %v2894_v9 }
  0x7d   : > { %1917 = vmatmul.mubr.bf16.gmra.mxu0 %v2287_v5 }
  0x7e   : > { %1982 = vmatmul.mubr.bf16.gmra.mxu1 %v2289_v7  ;;  %2702 = vmatpush3.bf16.msra.mxu0 %v2895_v10 }
  0x7f   : > { %2742 = vmatpush3.bf16.msra.mxu1 %v2896_v11  ;;  %2703 = vmatprep.subr.bf16.mxu0 %v2897_v12 }
  0x80   : > { %2743 = vmatprep.subr.bf16.mxu1 %v2898_v13  ;;  %1924 = vmatprep.mubr.bf16.mxu0 %v2304_v20 }
  0x81   : > { %1989 = vmatprep.mubr.bf16.mxu1 %v2306_v21 }
  0x82   : > { %2704 = vmatpush3.bf16.msra.mxu0 %v2899_v14 }
  0x83   : > { %2744 = vmatpush3.bf16.msra.mxu1 %v2900_v15  ;;  %2705 = vmatprep.subr.bf16.mxu0 %v2901_v24 }
  0x84   : > { %2745 = vmatprep.subr.bf16.mxu1 %v2902_v25 }
  0x85   : > { %1925 = vmatmul.mubr.bf16.gmra.mxu0 %v2303_v22 }
  0x86   : > { %1990 = vmatmul.mubr.bf16.gmra.mxu1 %v2305_v23  ;;  %2706 = vmatpush3.bf16.msra.mxu0 %v2903_v26 }
  0x87   : > { %2746 = vmatpush3.bf16.msra.mxu1 %v2904_v27  ;;  %2707 = vmatprep.subr.bf16.mxu0 %v2905_v28 }
  0x88   : > { %2747 = vmatprep.subr.bf16.mxu1 %v2906_v29  ;;  %2030 = vmatprep.mubr.bf16.mxu0 %v2260_v36 }
  0x89   : > { %2095 = vmatprep.mubr.bf16.mxu1 %v2262_v41 }
  0x8a   : > { %2708 = vmatpush3.bf16.msra.mxu0 %v2907_v30 }
  0x8b   : > { %2748 = vmatpush3.bf16.msra.mxu1 %v2908_v31 }
  0x8d   : > { %2031 = vmatmul.mubr.bf16.vlgmr.msra.gmra.mxu0 %v2259_v35 }
  0x8e   : > { %2096 = vmatmul.mubr.bf16.vlgmr.msra.gmra.mxu1 %v2261_v40  ;;  %2038 = vmatprep.mubr.bf16.mxu0 %v2276_v42 }
  0x8f   : > { %2103 = vmatprep.mubr.bf16.mxu1 %v2278_v45 }
  0x95   : > { %2039 = vmatmul.mubr.bf16.gmra.mxu0 %v2275_v50 }
  0x96   : > { %2104 = vmatmul.mubr.bf16.gmra.mxu1 %v2277_v51  ;;  %2046 = vmatprep.mubr.bf16.mxu0 %v2292_v52 }
  0x97   : > { %2111 = vmatprep.mubr.bf16.mxu1 %v2294_v53 }
  0x9d   : > { %2047 = vmatmul.mubr.bf16.gmra.mxu0 %v2291_v58 }
  0x9e   : > { %2112 = vmatmul.mubr.bf16.gmra.mxu1 %v2293_v59  ;;  %2054 = vmatprep.mubr.bf16.mxu0 %v2308_v60 }
  0x9f   : > { %2119 = vmatprep.mubr.bf16.mxu1 %v2310_v61 }
  0xa5   : > { %2055 = vmatmul.mubr.bf16.gmra.mxu0 %v2307_v62 }
  0xa6   : > { %2120 = vmatmul.mubr.bf16.gmra.mxu1 %v2309_v63 }
  0xed   : > { %v2469_v0 = vpop.f32.mrf.mxu0 }
  0xee   : > { %v2509_v1 = vpop.f32.mrf.mxu1 }
  0xef   : > { %v2470_v2 = vpop.f32.mrf.mxu0 }
  0xf0   : > { %v2471_v3 = vadd.f32 %v2470_v2, %v2469_v0  ;;  %v2510_v4 = vpop.f32.mrf.mxu1 }
  0xf1   : > { %v2511_v5 = vadd.f32 %v2510_v4, %v2509_v1  ;;  %v2472_v6 = vpop.f32.mrf.mxu0 }
  0xf2   : > { %v2512_v7 = vpop.f32.mrf.mxu1 }
  0xf3   : > { %v1708_v8 = vadd.f32 %v2511_v5, %v2471_v3  ;;  %v2473_v9 = vpop.f32.mrf.mxu0 }
  0xf4   : > { %v2474_v10 = vadd.f32 %v2473_v9, %v2472_v6  ;;  %v2513_v11 = vpop.f32.mrf.mxu1 }
  0xf5   : > { %v2514_v12 = vadd.f32 %v2513_v11, %v2512_v7  ;;  %v2475_v13 = vpop.f32.mrf.mxu0 }
  0xf6   : > { %v2515_v15 = vpop.f32.mrf.mxu1 }
  0xf7   : > { %v1711_v14 = vadd.f32 %v2514_v12, %v2474_v10  ;;  %v2476_v16 = vpop.f32.mrf.mxu0 }
  0xf8   : > { %v2477_v17 = vadd.f32 %v2476_v16, %v2475_v13  ;;  %v2516_v18 = vpop.f32.mrf.mxu1 }
  0xf9   : > { %v2517_v19 = vadd.f32 %v2516_v18, %v2515_v15  ;;  %v2478_v20 = vpop.f32.mrf.mxu0 }
  0xfa   : > { %v2518_v21 = vpop.f32.mrf.mxu1 }
  0xfb   : > { %v1716_v22 = vadd.f32 %v2517_v19, %v2477_v17  ;;  %v2479_v23 = vpop.f32.mrf.mxu0 }
  0xfc   : > { %v2480_v24 = vadd.f32 %v2479_v23, %v2478_v20  ;;  %v2519_v25 = vpop.f32.mrf.mxu1 }
  0xfd   : > { %v2520_v26 = vadd.f32 %v2519_v25, %v2518_v21  ;;  %v2481_v28 = vpop.f32.mrf.mxu0 }
  0xfe   : > { %v2521_v29 = vpop.f32.mrf.mxu1 }
  0xff   : > { %v1719_v27 = vadd.f32 %v2520_v26, %v2480_v24  ;;  %v2482_v30 = vpop.f32.mrf.mxu0 }
 0x100   : > { %v2522_v31 = vpop.f32.mrf.mxu1  ;;  %v2483_v32 = vadd.f32 %v2482_v30, %v2481_v28 }
 0x101   : > { %v2523_v33 = vadd.f32 %v2522_v31, %v2521_v29  ;;  %v2484_v34 = vpop.f32.mrf.mxu0 }
 0x102   : > { %v2524_v35 = vpop.f32.mrf.mxu1 }
 0x103   : > { %v1724_v36 = vadd.f32 %v2523_v33, %v2483_v32  ;;  %v2485_v37 = vpop.f32.mrf.mxu0 }
 0x104   : > { %v2525_v38 = vpop.f32.mrf.mxu1  ;;  %v2486_v39 = vadd.f32 %v2485_v37, %v2484_v34 }
 0x105   : > { %v2526_v40 = vadd.f32 %v2525_v38, %v2524_v35  ;;  %v2487_v42 = vpop.f32.mrf.mxu0 }
 0x106   : > { %v2527_v43 = vpop.f32.mrf.mxu1 }
 0x107   : > { %v1727_v41 = vadd.f32 %v2526_v40, %v2486_v39  ;;  %v2488_v44 = vpop.f32.mrf.mxu0 }
 0x108   : > { %v2489_v45 = vadd.f32 %v2488_v44, %v2487_v42  ;;  %v2528_v46 = vpop.f32.mrf.mxu1 }
 0x109   : > { %v2529_v47 = vadd.f32 %v2528_v46, %v2527_v43  ;;  %v2490_v48 = vpop.f32.mrf.mxu0 }
 0x10a   : > { %v2530_v49 = vpop.f32.mrf.mxu1 }
 0x10b   : > { %v3407_v50 = vadd.f32 %v2529_v47, %v2489_v45  ;;  %v2491_v51 = vpop.f32.mrf.mxu0 }
 0x10c   : > { %v2492_v52 = vadd.f32 %v2491_v51, %v2490_v48  ;;  %v2531_v53 = vpop.f32.mrf.mxu1 }
 0x10d   : > { %v2532_v54 = vadd.f32 %v2531_v53, %v2530_v49  ;;  %v2549_v55 = vpop.f32.mrf.mxu0 }
 0x10e   : > { %v2589_v57 = vpop.f32.mrf.mxu1 }
 0x10f   : > { %v3409_v56 = vadd.f32 %v2532_v54, %v2492_v52  ;;  %v2550_v58 = vpop.f32.mrf.mxu0 }
 0x110   : > { %v2551_v59 = vadd.f32 %v2550_v58, %v2549_v55  ;;  %v2590_v60 = vpop.f32.mrf.mxu1 }
 0x111   : > { %v2591_v61 = vadd.f32 %v2590_v60, %v2589_v57  ;;  %v2552_v62 = vpop.f32.mrf.mxu0 }
 0x112   : > { %v1773_v63 = vadd.f32 %v2551_v59, %v1708_v8  ;;  %v2592_v0 = vpop.f32.mrf.mxu1 }
 0x113   : > { %v2553_v1 = vpop.f32.mrf.mxu0 }
 0x114   : > { %v3411_v2 = vadd.f32 %v2591_v61, %v1773_v63  ;;  %v2554_v3 = vadd.f32 %v2553_v1, %v2552_v62  ;;  %v2593_v4 = vpop.f32.mrf.mxu1 }
 0x115   : > { %v2594_v5 = vadd.f32 %v2593_v4, %v2592_v0  ;;  %v2555_v7 = vpop.f32.mrf.mxu0 }
 0x116   : > { %v1776_v6 = vadd.f32 %v2554_v3, %v1711_v14  ;;  %v2595_v9 = vpop.f32.mrf.mxu1 }
 0x117   : > { %v2556_v11 = vpop.f32.mrf.mxu0 }
 0x118   : > { %v3413_v10 = vadd.f32 %v2594_v5, %v1776_v6  ;;  %v2596_v12 = vpop.f32.mrf.mxu1  ;;  %v2557_v13 = vadd.f32 %v2556_v11, %v2555_v7 }
 0x119   : > { %v2597_v15 = vadd.f32 %v2596_v12, %v2595_v9  ;;  %v2558_v16 = vpop.f32.mrf.mxu0 }
 0x11a   : > { %v2598_v17 = vpop.f32.mrf.mxu1  ;;  %v1781_v18 = vadd.f32 %v2557_v13, %v1716_v22 }
 0x11b   : > { %v2559_v8 = vpop.f32.mrf.mxu0 }
 0x11c   : > { %v2599_v19 = vpop.f32.mrf.mxu1  ;;  %v3415_v20 = vadd.f32 %v2597_v15, %v1781_v18  ;;  %v2560_v21 = vadd.f32 %v2559_v8, %v2558_v16 }
 0x11d   : > { %v2600_v23 = vadd.f32 %v2599_v19, %v2598_v17  ;;  %v2561_v25 = vpop.f32.mrf.mxu0 }
 0x11e   : > { %v1784_v24 = vadd.f32 %v2560_v21, %v1719_v27  ;;  %v2601_v14 = vpop.f32.mrf.mxu1 }
 0x11f   : > { %v2562_v28 = vpop.f32.mrf.mxu0 }
 0x120   : > { %v3417_v26 = vadd.f32 %v2600_v23, %v1784_v24  ;;  %v2563_v29 = vadd.f32 %v2562_v28, %v2561_v25  ;;  %v2602_v30 = vpop.f32.mrf.mxu1 }
 0x121   : > { %v2603_v31 = vadd.f32 %v2602_v30, %v2601_v14  ;;  %v2564_v32 = vpop.f32.mrf.mxu0 }
 0x122   : > { %v1789_v33 = vadd.f32 %v2563_v29, %v1724_v36  ;;  %v2604_v34 = vpop.f32.mrf.mxu1 }
 0x123   : > { %v2565_v35 = vpop.f32.mrf.mxu0 }
 0x124   : > { %v3419_v22 = vadd.f32 %v2603_v31, %v1789_v33  ;;  %v2566_v37 = vadd.f32 %v2565_v35, %v2564_v32  ;;  %v2605_v38 = vpop.f32.mrf.mxu1 }
 0x125   : > { %v2606_v39 = vadd.f32 %v2605_v38, %v2604_v34  ;;  %v3421_v42 = vpop.f32.mrf.mxu0 }
 0x126   : > { %v1792_v40 = vadd.f32 %v2566_v37, %v1727_v41  ;;  %v3423_v27 = vpop.f32.mrf.mxu1 }
 0x127   : > { %v3427_v44 = vpop.f32.mrf.mxu0 }
 0x128   : > { %v3425_v43 = vadd.f32 %v2606_v39, %v1792_v40  ;;  %v3429_v45 = vpop.f32.mrf.mxu1 }
 0x129   : > { %v3431_v46 = vpop.f32.mrf.mxu0 }
 0x12a   : > { %v3433_v36 = vpop.f32.mrf.mxu1 }
 0x12b   : > { %v3435_v47 = vpop.f32.mrf.mxu0 }
 0x12c   : > { %v3437_v48 = vpop.f32.mrf.mxu1 }
 0x12d   : > { %v2629_v49 = vpop.f32.mrf.mxu0 }
 0x12e   : > { %v2669_v41 = vpop.f32.mrf.mxu1 }
 0x12f   : > { %v2630_v51 = vpop.f32.mrf.mxu0 }
 0x130   : > { %v2670_v52 = vpop.f32.mrf.mxu1  ;;  %v2631_v18 = vadd.f32 %v2630_v51, %v2629_v49 }
 0x131   : > { %v2632_v53 = vpop.f32.mrf.mxu0  ;;  %v2671_v28 = vadd.f32 %v2670_v52, %v2669_v41 }
 0x132   : > { %v2672_v54 = vpop.f32.mrf.mxu1  ;;  %v1903_v24 = vadd.f32 %v2631_v18, %v3411_v2 }
 0x133   : > { %v2633_v55 = vpop.f32.mrf.mxu0 }
 0x134   : > { %v2673_v57 = vpop.f32.mrf.mxu1  ;;  %v2634_v25 = vadd.f32 %v2633_v55, %v2632_v53  ;;  %v1968_v32 = vadd.f32 %v2671_v28, %v1903_v24 }
 0x135   : > { %v2635_v58 = vpop.f32.mrf.mxu0  ;;  %v2674_v38 = vadd.f32 %v2673_v57, %v2672_v54 }
 0x136   : > { %v2675_v59 = vpop.f32.mrf.mxu1  ;;  %v1906_v33 = vadd.f32 %v2634_v25, %v3413_v10  ;;  %v3469_v10 = vld [vmem:[%s3526_s2] ss:$0 sm:$0xff] }
 0x137   : > { %v2636_v60 = vpop.f32.mrf.mxu0 }
 0x138   : > { %v2676_v61 = vpop.f32.mrf.mxu1  ;;  %v2637_v30 = vadd.f32 %v2636_v60, %v2635_v58  ;;  %v1971_v2 = vadd.f32 %v2674_v38, %v1906_v33 }
 0x139   : > { %v2638_v62 = vpop.f32.mrf.mxu0  ;;  %v2677_v52 = vadd.f32 %v2676_v61, %v2675_v59  ;;  %v2569_v59 = vadd.f32 %v3427_v44, %v3421_v42 }
 0x13a   : > { %v2678_v63 = vpop.f32.mrf.mxu1  ;;  %v1911_v49 = vadd.f32 %v2637_v30, %v3415_v20 }
 0x13b   : > { %v2639_v0 = vpop.f32.mrf.mxu0 }
 0x13c   : > { %v2679_v1 = vpop.f32.mrf.mxu1  ;;  %v2640_v53 = vadd.f32 %v2639_v0, %v2638_v62  ;;  %v1976_v57 = vadd.f32 %v2677_v52, %v1911_v49 }
 0x13d   : > { %v2641_v3 = vpop.f32.mrf.mxu0 }
 0x13e   : > { %v3439_v4 = vpop.f32.mrf.mxu1  ;;  %v1914_v20 = vadd.f32 %v2640_v53, %v3417_v26 }
 0x13f   : > { %v2642_v5 = vpop.f32.mrf.mxu0 }
 0x140   : > { %v3441_v6 = vpop.f32.mrf.mxu1  ;;  %v2643_v25 = vadd.f32 %v2642_v5, %v2641_v3 }
 0x141   : > { %v2644_v7 = vpop.f32.mrf.mxu0 }
 0x142   : > { %v3443_v9 = vpop.f32.mrf.mxu1 }
 0x143   : > { %v2645_v11 = vpop.f32.mrf.mxu0 }
 0x144   : > { %v3445_v12 = vpop.f32.mrf.mxu1  ;;  %v2646_v3 = vadd.f32 %v2645_v11, %v2644_v7 }
 0x145   : > { %v3447_v13 = vpop.f32.mrf.mxu0 }
 0x146   : > { %v3449_v15 = vpop.f32.mrf.mxu1 }
 0x147   : > { %v3451_v16 = vpop.f32.mrf.mxu0 }
 0x148   : > { %v3453_v17 = vpop.f32.mrf.mxu1 }
 0x149   : > { %v3455_v8 = vpop.f32.mrf.mxu0 }
 0x14a   : > { %v3457_v19 = vpop.f32.mrf.mxu1 }
 0x14b   : > { %v3459_v21 = vpop.f32.mrf.mxu0 }
 0x14c   : > { %v3461_v23 = vpop.f32.mrf.mxu1 }
 0x14d   : > { %3529 = vst [vmem:[#allocation2_spill] sm:$0xff] %v3461_v23  ;;  %v2709_v14 = vpop.f32.mrf.mxu0 }
 0x14e   : > { %v2749_v29 = vpop.f32.mrf.mxu1 }
 0x14f   : > { %v2710_v31 = vpop.f32.mrf.mxu0 }
 0x150   : > { %v2711_v34 = vadd.f32 %v2710_v31, %v2709_v14  ;;  %v2750_v35 = vpop.f32.mrf.mxu1 }
 0x151   : > { %v2712_v37 = vpop.f32.mrf.mxu0  ;;  %v2751_v51 = vadd.f32 %v2750_v35, %v2749_v29  ;;  %v3478_v29 = vld [vmem:[%s3527_s3] ss:$0 sm:$0xff] }
 0x152   : > { %v2033_v39 = vadd.f32 %v2711_v34, %v1968_v32  ;;  %v2752_v40 = vpop.f32.mrf.mxu1  ;;  %v1919_v34 = vadd.f32 %v2643_v25, %v3419_v22 }
 0x153   : > { %v2713_v23 = vpop.f32.mrf.mxu0 }
 0x154   : > { %v2714_v55 = vadd.f32 %v2713_v23, %v2712_v37  ;;  %v2753_v41 = vpop.f32.mrf.mxu1  ;;  %v2098_v58 = vadd.f32 %v2751_v51, %v2033_v39  ;;  %v2680_v23 = vadd.f32 %v2679_v1, %v2678_v63  ;;  %v1797_v37 = vadd.f32 %v2569_v59, %v3407_v50 }
 0x155   : > { %v2715_v60 = vpop.f32.mrf.mxu0  ;;  %v2754_v14 = vadd.f32 %v2753_v41, %v2752_v40  ;;  %v2572_v63 = vadd.f32 %v3435_v47, %v3431_v46  ;;  %v2683_v1 = vadd.f32 %v3441_v6, %v3439_v4  ;;  %v2609_v51 = vadd.f32 %v3429_v45, %v3423_v27 }
 0x156   : > { %v2036_v18 = vadd.f32 %v2714_v55, %v1971_v2  ;;  %v2755_v54 = vpop.f32.mrf.mxu1  ;;  %v2135_v61 = vmul.f32 %v3469_v10, %v2098_v58  ;;  %v1979_v33 = vadd.f32 %v2680_v23, %v1914_v20  ;;  %v1922_v50 = vadd.f32 %v2646_v3, %v3425_v43 }
 0x157   : > { %v2716_v24 = vpop.f32.mrf.mxu0  ;;  %v2649_v46 = vadd.f32 %v3451_v16, %v3447_v13  ;;  %v1984_v4 = vadd.f32 %v2683_v1, %v1919_v34  ;;  %v1862_v41 = vadd.f32 %v2609_v51, %v1797_v37  ;;  %v1800_v52 = vadd.f32 %v2572_v63, %v3409_v56 }
 0x158   : > { %v2717_v28 = vadd.f32 %v2716_v24, %v2715_v60  ;;  %v2756_v62 = vpop.f32.mrf.mxu1  ;;  %v2101_v30 = vadd.f32 %v2754_v14, %v2036_v18  ;;  %v2150_v38 = vadd.f32 %v3478_v29, %v2135_v61  ;;  %v2686_v58 = vadd.f32 %v3445_v12, %v3443_v9 }
 0x159   : > { %v2718_v0 = vpop.f32.mrf.mxu0  ;;  %v2757_v32 = vadd.f32 %v2756_v62, %v2755_v54  ;;  %v2612_v54 = vadd.f32 %v3437_v48, %v3433_v36  ;;  %v1927_v24 = vadd.f32 %v2649_v46, %v1862_v41  ;;  %v2652_v56 = vadd.f32 %v3459_v21, %v3455_v8 }
 0x15a   : > { %v2041_v31 = vadd.f32 %v2717_v28, %v1976_v57  ;;  %v2758_v26 = vpop.f32.mrf.mxu1  ;;  %v2136_v7 = vmul.f32 %v3469_v10, %v2101_v30  ;;  %v2158_v60 = vmax.f32 %v2150_v38, 0.0  ;;  %v1987_v57 = vadd.f32 %v2686_v58, %v1922_v50 }
 0x15b   : > { %v2719_v5 = vpop.f32.mrf.mxu0  ;;  %v2689_v62 = vadd.f32 %v3453_v17, %v3449_v15  ;;  %v3530_v15 = vld [vmem:[#allocation2_spill] sm:$0xff] }
 0x15c   : > { %v2106_v35 = vadd.f32 %v2757_v32, %v2041_v31  ;;  %v2720_v42 = vadd.f32 %v2719_v5, %v2718_v0  ;;  %v2759_v44 = vpop.f32.mrf.mxu1  ;;  %v2151_v43 = vadd.f32 %v3478_v29, %v2136_v7  ;;  %v1865_v0 = vadd.f32 %v2612_v54, %v1800_v52 }
 0x15d   : > { %v2721_v39 = vpop.f32.mrf.mxu0  ;;  %v2760_v22 = vadd.f32 %v2759_v44, %v2758_v26  ;;  %v1992_v31 = vadd.f32 %v2689_v62, %v1927_v24  ;;  %v2692_v17 = vadd.f32 %v3530_v15, %v3457_v19 }
 0x15e   : > { %v2137_v11 = vmul.f32 %v3469_v10, %v2106_v35  ;;  %v2044_v40 = vadd.f32 %v2720_v42, %v1979_v33  ;;  %v2761_v49 = vpop.f32.mrf.mxu1  ;;  %v2159_v23 = vmax.f32 %v2151_v43, 0.0  ;;  %v1930_v26 = vadd.f32 %v2652_v56, %v1865_v0 }
 0x15f   : > { %v2722_v47 = vpop.f32.mrf.mxu0 }
 0x160   : > { %v2152_v6 = vadd.f32 %v3478_v29, %v2137_v11  ;;  %v2109_v2 = vadd.f32 %v2760_v22, %v2044_v40  ;;  %v2723_v53 = vadd.f32 %v2722_v47, %v2721_v39  ;;  %v2762_v55 = vpop.f32.mrf.mxu1  ;;  %v1995_v1 = vadd.f32 %v2692_v17, %v1930_v26 }
 0x161   : > { %v2724_v27 = vpop.f32.mrf.mxu0  ;;  %v2763_v20 = vadd.f32 %v2762_v55, %v2761_v49 }
 0x162   : > { %v2160_v45 = vmax.f32 %v2152_v6, 0.0  ;;  %v2138_v13 = vmul.f32 %v3469_v10, %v2109_v2  ;;  %v2049_v16 = vadd.f32 %v2723_v53, %v1984_v4  ;;  %v2764_v18 = vpop.f32.mrf.mxu1 }
 0x163   : > { %v2725_v25 = vpop.f32.mrf.mxu0 }
 0x164   : > { %v2166_v9 = vmax.f32 %v2158_v60, %v2160_v45  ;;  %v2153_v12 = vadd.f32 %v3478_v29, %v2138_v13  ;;  %v2726_v14 = vadd.f32 %v2725_v25, %v2724_v27  ;;  %v2765_v28 = vpop.f32.mrf.mxu1  ;;  %v2114_v59 = vadd.f32 %v2763_v20, %v2049_v16 }
 0x165   : > { %v2727_v61 = vpop.f32.mrf.mxu0  ;;  %v2766_v8 = vadd.f32 %v2765_v28, %v2764_v18 }
 0x166   : > { %v2161_v36 = vmax.f32 %v2153_v12, 0.0  ;;  %v2052_v48 = vadd.f32 %v2726_v14, %v1987_v57  ;;  %v2767_v30 = vpop.f32.mrf.mxu1  ;;  %v2139_v33 = vmul.f32 %v3469_v10, %v2114_v59 }
 0x167   : > { %v2728_v32 = vpop.f32.mrf.mxu0 }
 0x168   : > { %v2167_v3 = vmax.f32 %v2159_v23, %v2161_v36  ;;  %v2729_v21 = vadd.f32 %v2728_v32, %v2727_v61  ;;  %v2768_v5 = vpop.f32.mrf.mxu1  ;;  %v2117_v35 = vadd.f32 %v2766_v8, %v2052_v48  ;;  %v2154_v11 = vadd.f32 %v3478_v29, %v2139_v33 }
 0x169   : > { %v2730_v34 = vpop.f32.mrf.mxu0  ;;  %v2769_v44 = vadd.f32 %v2768_v5, %v2767_v30 }
 0x16a   : > { %v2057_v42 = vadd.f32 %v2729_v21, %v1992_v31  ;;  %v2770_v37 = vpop.f32.mrf.mxu1  ;;  %v2140_v40 = vmul.f32 %v3469_v10, %v2117_v35  ;;  %v2162_v46 = vmax.f32 %v2154_v11, 0.0 }
 0x16b   : > { %v2731_v63 = vpop.f32.mrf.mxu0 }
 0x16c   : > { %v2122_v38 = vadd.f32 %v2769_v44, %v2057_v42  ;;  %v2732_v39 = vadd.f32 %v2731_v63, %v2730_v34  ;;  %v2771_v7 = vpop.f32.mrf.mxu1  ;;  %v2155_v47 = vadd.f32 %v3478_v29, %v2140_v40 }
 0x16d   : > { %v2772_v51 = vadd.f32 %v2771_v7, %v2770_v37 }
 0x16e   : > { %v2141_v22 = vmul.f32 %v3469_v10, %v2122_v38  ;;  %v2060_v49 = vadd.f32 %v2732_v39, %v1995_v1  ;;  %v2163_v55 = vmax.f32 %v2155_v47, 0.0 }
 0x170   : > { %v2156_v19 = vadd.f32 %v3478_v29, %v2141_v22  ;;  %v2125_v50 = vadd.f32 %v2772_v51, %v2060_v49 }
 0x172   : > { %v2164_v4 = vmax.f32 %v2156_v19, 0.0  ;;  %v2142_v6 = vmul.f32 %v3469_v10, %v2125_v50 }
 0x174   : > { %v2168_v2 = vmax.f32 %v2162_v46, %v2164_v4  ;;  %v2157_v53 = vadd.f32 %v3478_v29, %v2142_v6 }
 0x176   : > { %v2170_v41 = vmax.f32 %v2166_v9, %v2168_v2  ;;  %v2165_v52 = vmax.f32 %v2157_v53, 0.0 }
 0x178   : > { %v2169_v58 = vmax.f32 %v2163_v55, %v2165_v52 }
 0x17a   : > { %v2171_v60 = vmax.f32 %v2167_v3, %v2169_v58 }
 0x17c   : > { %v2451_v27 = vpack.c.bf16 %v2171_v60, %v2170_v41 }
 0x17e   : > { %2452 = vst [vmem:[%s197_s28] sm:$0xff] %v2451_v27  }
 0x17f PF: > { %s14_s15 = sadd.s32 1, %s2915_s15  }
 0x180   : > { %p11_p5 = scmp.ge.s32.totalorder %s14_s15, 4  }
 0x182   :  { %13 = sbr.rel (!%p11_p5) target bundleno = 1 (0x1), region = 66 }

// kernel: lightweight_bc_forward.5
= control target key start
LH: loop header
LB: loop body
LE: loop exit
PB: predicated region body
PF: predicated region fallthrough
CT: control target
= control target key end

     0   :  { %vm4563_vm0 = vmmov 0   ;;  %s6337_s1 = inlined_call_operand.vmem [shape: bf16[1152,128], index: 1, kind: input, shape index: {}]   ;;  %s6338_s0 = inlined_call_operand.vmem [shape: bf16[4,8,1152], index: 0, kind: input, shape index: {}]   ;;  %s6339_s4 = inlined_call_operand.vmem [shape: bf16[4,128,512], index: 4, kind: input, shape index: {}]   ;;  %s6340_s2 = inlined_call_operand.vmem [shape: f32[1,128], index: 2, kind: input, shape index: {}]   ;;  %s6341_s3 = inlined_call_operand.vmem [shape: f32[1,128], index: 3, kind: input, shape index: {}]   ;;  %s6342_s6 = inlined_call_operand.vmem [shape: bf16[512,128], index: 6, kind: input, shape index: {}]   ;;  %s6343_s8 = inlined_call_operand.vmem [shape: bf16[128,128], index: 8, kind: input, shape index: {}]   ;;  %s6344_s5 = inlined_call_operand.vmem [shape: f32[1,512], index: 5, kind: input, shape index: {}]   ;;  %s6345_s7 = inlined_call_operand.vmem [shape: f32[1,128], index: 7, kind: input, shape index: {}]   ;;  %s6346_s9 = inlined_call_operand.vmem [shape: f32[1,128], index: 9, kind: input, shape index: {}]   ;;  %s6347_s10 = inlined_call_operand.vmem [shape: f32[8,128], index: 10, kind: output, shape index: {}]  }
   0x1   :  { %v4623_v0 = vld [vmem:[%s6337_s1 + $0x78] sm:$0xff]   ;;  %v4646_v4 = vld [vmem:[%s6337_s1 + $0x70] sm:$0xff]   ;;  %v4670_v8 = vld [vmem:[%s6337_s1 + $0x68] sm:$0xff]  }
   0x2   :  { %v4628_v1 = vld [vmem:[%s6337_s1 + $0xf8] sm:$0xff]   ;;  %3598 = vmatprep.subr.bf16.mxu0 %v4623_v0  ;;  %v4652_v5 = vld [vmem:[%s6337_s1 + $0xf0] sm:$0xff]   ;;  %v4676_v9 = vld [vmem:[%s6337_s1 + $0xe8] sm:$0xff]  }
   0x3   :  { %v4634_v2 = vld [vmem:[%s6337_s1 + $0x38] sm:$0xff]   ;;  %3620 = vmatprep.subr.bf16.mxu1 %v4628_v1  ;;  %v4658_v6 = vld [vmem:[%s6337_s1 + $0x30] sm:$0xff]   ;;  %v4682_v10 = vld [vmem:[%s6337_s1 + $0x28] sm:$0xff]  }
   0x4   :  { %v4640_v3 = vld [vmem:[%s6337_s1 + $0xb8] sm:$0xff]   ;;  %3599 = vmatpush3.bf16.msra.mxu0 %v4634_v2  ;;  %v4664_v7 = vld [vmem:[%s6337_s1 + $0xb0] sm:$0xff]   ;;  %v4688_v11 = vld [vmem:[%s6337_s1 + $0xa8] sm:$0xff]  }
   0x5   :  { %3621 = vmatpush3.bf16.msra.mxu1 %v4640_v3  ;;  %3600 = vmatprep.subr.bf16.mxu0 %v4646_v4  ;;  %v4694_v12 = vld [vmem:[%s6337_s1 + $0x60] sm:$0xff]   ;;  %v4718_v16 = vld [vmem:[%s6337_s1 + $0x58] sm:$0xff]   ;;  %v4742_v20 = vld [vmem:[%s6337_s1 + $0x50] sm:$0xff]  }
   0x6   :  { %3622 = vmatprep.subr.bf16.mxu1 %v4652_v5  ;;  %v4700_v13 = vld [vmem:[%s6337_s1 + $0xe0] sm:$0xff]   ;;  %v4724_v17 = vld [vmem:[%s6337_s1 + $0xd8] sm:$0xff]   ;;  %v4748_v21 = vld [vmem:[%s6337_s1 + $0xd0] sm:$0xff]  }
   0x7   :  { %v4706_v14 = vld [vmem:[%s6337_s1 + $0x20] sm:$0xff]   ;;  %v4730_v18 = vld [vmem:[%s6337_s1 + $0x18] sm:$0xff]   ;;  %v4754_v22 = vld [vmem:[%s6337_s1 + $0x10] sm:$0xff]  }
   0x8   :  { %3601 = vmatpush3.bf16.msra.mxu0 %v4658_v6  ;;  %v4712_v15 = vld [vmem:[%s6337_s1 + $0xa0] sm:$0xff]   ;;  %v4736_v19 = vld [vmem:[%s6337_s1 + $0x98] sm:$0xff]   ;;  %v4760_v23 = vld [vmem:[%s6337_s1 + $0x90] sm:$0xff]  }
   0x9   :  { %3623 = vmatpush3.bf16.msra.mxu1 %v4664_v7  ;;  %3602 = vmatprep.subr.bf16.mxu0 %v4670_v8  ;;  %v4766_v24 = vld [vmem:[%s6337_s1 + $0x48] sm:$0xff]   ;;  %v4790_v28 = vld [vmem:[%s6337_s1 + $0x40] sm:$0xff]   ;;  %v4821_v38 = vld [vmem:[%s6337_s1 + $0x178] sm:$0xff]  }
   0xa   :  { %3624 = vmatprep.subr.bf16.mxu1 %v4676_v9  ;;  %v4772_v25 = vld [vmem:[%s6337_s1 + $0xc8] sm:$0xff]   ;;  %v4796_v29 = vld [vmem:[%s6337_s1 + $0xc0] sm:$0xff]   ;;  %v4826_v39 = vld [vmem:[%s6337_s1 + $0x1f8] sm:$0xff]  }
   0xb   :  { %v4778_v26 = vld [vmem:[%s6337_s1 + $0x8] sm:$0xff]   ;;  %v4802_v30 = vld [vmem:[%s6337_s1] sm:$0xff]   ;;  %v4831_v40 = vld [vmem:[%s6337_s1 + $0x138] sm:$0xff]  }
   0xc   :  { %3603 = vmatpush3.bf16.msra.mxu0 %v4682_v10  ;;  %v4784_v27 = vld [vmem:[%s6337_s1 + $0x88] sm:$0xff]   ;;  %v4808_v31 = vld [vmem:[%s6337_s1 + $0x80] sm:$0xff]   ;;  %v4836_v41 = vld [vmem:[%s6337_s1 + $0x1b8] sm:$0xff]  }
   0xd   :  { %3625 = vmatpush3.bf16.msra.mxu1 %v4688_v11  ;;  %3604 = vmatprep.subr.bf16.mxu0 %v4694_v12  ;;  %v38_v32 = vld [vmem:[%s6338_s0] sm:$0xff]  ;;  %v39_v33 = vld [vmem:[%s6338_s0 + $0x8] sm:$0xff]  ;;  %v4843_v42 = vld [vmem:[%s6337_s1 + $0x170] sm:$0xff]  }
   0xe   :  { %3626 = vmatprep.subr.bf16.mxu1 %v4700_v13  ;;  %v3206_v34 = vcombine.low %v38_v32, %v38_v32  ;;  %v3207_v35 = vcombine.high %v38_v32, %v38_v32  ;;  %v3208_v36 = vcombine.low %v39_v33, %v39_v33  ;;  %v3209_v37 = vcombine.high %v39_v33, %v39_v33  ;;  %v4850_v43 = vld [vmem:[%s6337_s1 + $0x1f0] sm:$0xff]   ;;  %v4867_v46 = vld [vmem:[%s6337_s1 + $0x168] sm:$0xff]   ;;  %v4891_v50 = vld [vmem:[%s6337_s1 + $0x160] sm:$0xff]  }
   0xf   :  { %v4856_v44 = vld [vmem:[%s6337_s1 + $0x130] sm:$0xff]   ;;  %v4874_v47 = vld [vmem:[%s6337_s1 + $0x1e8] sm:$0xff]   ;;  %v4898_v51 = vld [vmem:[%s6337_s1 + $0x1e0] sm:$0xff]  }
  0x10   :  { %3605 = vmatpush3.bf16.msra.mxu0 %v4706_v14  ;;  %683 = vmatprep.mubr.bf16.mxu0 %v3207_v35  ;;  %v4862_v45 = vld [vmem:[%s6337_s1 + $0x1b0] sm:$0xff]   ;;  %v4880_v48 = vld [vmem:[%s6337_s1 + $0x128] sm:$0xff]   ;;  %v4904_v52 = vld [vmem:[%s6337_s1 + $0x120] sm:$0xff]  }
  0x11   :  { %3627 = vmatpush3.bf16.msra.mxu1 %v4712_v15  ;;  %3606 = vmatprep.subr.bf16.mxu0 %v4718_v16  ;;  %v4886_v49 = vld [vmem:[%s6337_s1 + $0x1a8] sm:$0xff]   ;;  %v4910_v53 = vld [vmem:[%s6337_s1 + $0x1a0] sm:$0xff]   ;;  %v4915_v54 = vld [vmem:[%s6337_s1 + $0x158] sm:$0xff]  }
  0x12   :  { %3628 = vmatprep.subr.bf16.mxu1 %v4724_v17  ;;  %723 = vmatprep.mubr.bf16.mxu1 %v3209_v37  ;;  %6396 = vst [vmem:[#allocation2_spill] sm:$0xff] %v4910_v53  ;;  %v4922_v55 = vld [vmem:[%s6337_s1 + $0x1d8] sm:$0xff]   ;;  %v4939_v58 = vld [vmem:[%s6337_s1 + $0x150] sm:$0xff]   ;;  %v4963_v62 = vld [vmem:[%s6337_s1 + $0x148] sm:$0xff]  }
  0x13   :  { %6397 = vst [vmem:[#allocation3_spill] sm:$0xff] %v4922_v55  ;;  %v4928_v56 = vld [vmem:[%s6337_s1 + $0x118] sm:$0xff]   ;;  %v4946_v59 = vld [vmem:[%s6337_s1 + $0x1d0] sm:$0xff]   ;;  %v4970_v63 = vld [vmem:[%s6337_s1 + $0x1c8] sm:$0xff]  }
  0x14   :  { %3607 = vmatpush3.bf16.msra.mxu0 %v4730_v18  ;;  %v4934_v57 = vld [vmem:[%s6337_s1 + $0x198] sm:$0xff]   ;;  %6399 = vst [vmem:[#allocation5_spill] sm:$0xff] %v4946_v59  ;;  %v4952_v60 = vld [vmem:[%s6337_s1 + $0x110] sm:$0xff]   ;;  %6401 = vst [vmem:[#allocation7_spill] sm:$0xff] %v4970_v63 }
  0x15   :  { %3629 = vmatpush3.bf16.msra.mxu1 %v4736_v19  ;;  %3608 = vmatprep.subr.bf16.mxu0 %v4742_v20  ;;  %6398 = vst [vmem:[#allocation4_spill] sm:$0xff] %v4934_v57  ;;  %v4958_v61 = vld [vmem:[%s6337_s1 + $0x190] sm:$0xff]   ;;  %v4976_v32 = vld [vmem:[%s6337_s1 + $0x108] sm:$0xff]   ;;  %v4994_v35 = vld [vmem:[%s6337_s1 + $0x1c0] sm:$0xff]  }
  0x16   :  { %3630 = vmatprep.subr.bf16.mxu1 %v4748_v21  ;;  %6400 = vst [vmem:[#allocation6_spill] sm:$0xff] %v4958_v61  ;;  %v4982_v33 = vld [vmem:[%s6337_s1 + $0x188] sm:$0xff]   ;;  %6403 = vst [vmem:[#allocation9_spill] sm:$0xff] %v4994_v35  ;;  %v5006_v37 = vld [vmem:[%s6337_s1 + $0x180] sm:$0xff]  }
  0x17   :  { %6402 = vst [vmem:[#allocation8_spill] sm:$0xff] %v4982_v33 }
  0x18   :  { %3609 = vmatpush3.bf16.msra.mxu0 %v4754_v22 }
  0x19   :  { %3631 = vmatpush3.bf16.msra.mxu1 %v4760_v23  ;;  %3610 = vmatprep.subr.bf16.mxu0 %v4766_v24 }
  0x1a   :  { %3632 = vmatprep.subr.bf16.mxu1 %v4772_v25 }
  0x1c   :  { %3611 = vmatpush3.bf16.msra.mxu0 %v4778_v26 }
  0x1d   :  { %3633 = vmatpush3.bf16.msra.mxu1 %v4784_v27  ;;  %3612 = vmatprep.subr.bf16.mxu0 %v4790_v28 }
  0x1e   :  { %3634 = vmatprep.subr.bf16.mxu1 %v4796_v29 }
  0x20   :  { %3613 = vmatpush3.bf16.msra.mxu0 %v4802_v30 }
  0x21   :  { %3635 = vmatpush3.bf16.msra.mxu1 %v4808_v31  ;;  %3642 = vmatprep.subr.bf16.mxu0 %v4821_v38 }
  0x22   :  { %3664 = vmatprep.subr.bf16.mxu1 %v4826_v39 }
  0x23   :  { %684 = vmatmul.mubr.bf16.vlgmr.msra.gmra.mxu0 %v3206_v34  ;;  %v4987_v34 = vld [vmem:[%s6337_s1 + $0x140] sm:$0xff]  }
  0x24   :  { %724 = vmatmul.mubr.bf16.vlgmr.msra.gmra.mxu1 %v3208_v36  ;;  %3643 = vmatpush3.bf16.msra.mxu0 %v4831_v40  ;;  %v5000_v36 = vld [vmem:[%s6337_s1 + $0x100] sm:$0xff]  }
  0x25   :  { %3665 = vmatpush3.bf16.msra.mxu1 %v4836_v41  ;;  %3644 = vmatprep.subr.bf16.mxu0 %v4843_v42 }
  0x26   :  { %3666 = vmatprep.subr.bf16.mxu1 %v4850_v43 }
  0x28   :  { %3645 = vmatpush3.bf16.msra.mxu0 %v4856_v44 }
  0x29   :  { %3667 = vmatpush3.bf16.msra.mxu1 %v4862_v45  ;;  %3646 = vmatprep.subr.bf16.mxu0 %v4867_v46 }
  0x2a   :  { %3668 = vmatprep.subr.bf16.mxu1 %v4874_v47 }
  0x2c   :  { %3647 = vmatpush3.bf16.msra.mxu0 %v4880_v48 }
  0x2d   :  { %3669 = vmatpush3.bf16.msra.mxu1 %v4886_v49  ;;  %3648 = vmatprep.subr.bf16.mxu0 %v4891_v50 }
  0x2e   :  { %3670 = vmatprep.subr.bf16.mxu1 %v4898_v51 }
  0x30   :  { %3649 = vmatpush3.bf16.msra.mxu0 %v4904_v52 }
  0x31   :  { %3671 = vmatpush3.bf16.msra.mxu1 %v4910_v53  ;;  %3650 = vmatprep.subr.bf16.mxu0 %v4915_v54  ;;  %v6358_v53 = vmov 0.0  }
  0x32   :  { %3672 = vmatprep.subr.bf16.mxu1 %v4922_v55  ;;  %v5019_v55 = vld [vmem:[%s6337_s1 + $0x238] sm:$0xff]  }
  0x34   :  { %3651 = vmatpush3.bf16.msra.mxu0 %v4928_v56 }
  0x35   :  { %3673 = vmatpush3.bf16.msra.mxu1 %v4934_v57  ;;  %3652 = vmatprep.subr.bf16.mxu0 %v4939_v58 }
  0x36   :  { %3674 = vmatprep.subr.bf16.mxu1 %v4946_v59  ;;  %v41_v59 = vld [vmem:[%s6338_s0 + $0x18] sm:$0xff] }
  0x37   :  { %v3213_v57 = vcombine.high %v41_v59, %v41_v59 }
  0x38   :  { %3653 = vmatpush3.bf16.msra.mxu0 %v4952_v60 }
  0x39   :  { %3675 = vmatpush3.bf16.msra.mxu1 %v4958_v61  ;;  %3654 = vmatprep.subr.bf16.mxu0 %v4963_v62 }
  0x3a   :  { %3676 = vmatprep.subr.bf16.mxu1 %v4970_v63  ;;  %803 = vmatprep.mubr.bf16.mxu1 %v3213_v57 }
  0x3c   :  { %3655 = vmatpush3.bf16.msra.mxu0 %v4976_v32 }
  0x3d   :  { %3677 = vmatpush3.bf16.msra.mxu1 %v4982_v33  ;;  %3656 = vmatprep.subr.bf16.mxu0 %v4987_v34  ;;  %v40_v33 = vld [vmem:[%s6338_s0 + $0x10] sm:$0xff] }
  0x3e   :  { %3678 = vmatprep.subr.bf16.mxu1 %v4994_v35  ;;  %v3210_v63 = vcombine.low %v40_v33, %v40_v33  ;;  %v3211_v61 = vcombine.high %v40_v33, %v40_v33  ;;  %v3212_v35 = vcombine.low %v41_v59, %v41_v59  ;;  %v5028_v59 = vld [vmem:[%s6337_s1 + $0x230] sm:$0xff]  }
  0x40   :  { %3657 = vmatpush3.bf16.msra.mxu0 %v5000_v36  ;;  %763 = vmatprep.mubr.bf16.mxu0 %v3211_v61 }
  0x41   :  { %3679 = vmatpush3.bf16.msra.mxu1 %v5006_v37  ;;  %4039 = vmatprep.subr.bf16.mxu0 %v6358_v53 }
  0x42   :  { %3695 = vmatprep.subr.bf16.mxu1 %v4623_v0  ;;  %v5039_v0 = vld [vmem:[%s6337_s1 + $0x228] sm:$0xff]  }
  0x43   :  { %764 = vmatmul.mubr.bf16.vlgmr.msra.gmra.mxu0 %v3210_v63  ;;  %v4267_v63 = vld [vmem:[%s6339_s4 + $0x14c] ss:$16 sps:$4 sm:$0xff]  }
  0x44   :  { %804 = vmatmul.mubr.bf16.vlgmr.msra.gmra.mxu1 %v3212_v35  ;;  %4040 = vmatpush3.bf16.msra.mxu0 %v5019_v55  ;;  %v4265_v35 = vld [vmem:[%s6339_s4 + $0x148] ss:$16 sps:$4 sm:$0xff]  }
  0x45   :  { %3696 = vmatpush3.bf16.msra.mxu1 %v4634_v2  ;;  %4041 = vmatprep.subr.bf16.mxu0 %v6358_v53  ;;  %v3289_v2 = vld [vmem:[%s6338_s0 + $0x24] sm:$0xff] }
  0x46   :  { %3697 = vmatprep.subr.bf16.mxu1 %v4646_v4  ;;  %4055 = vmatprep.mubr.msk.bf16.mxu0 %vm4563_vm0, %v6358_v53  ;;  %v3295_v4 = vcombine.high %v3289_v2, %v3289_v2 }
  0x48   :  { %4042 = vmatpush3.bf16.msra.mxu0 %v5028_v59  ;;  %969 = vmatprep.mubr.bf16.mxu1 %v3295_v4  ;;  %v4268_v4 = vld [vmem:[%s6339_s4 + $0x120] ss:$16 sps:$4 sm:$0xff]  }
  0x49   :  { %3698 = vmatpush3.bf16.msra.mxu1 %v4658_v6  ;;  %4043 = vmatprep.subr.bf16.mxu0 %v6358_v53  ;;  %v5051_v6 = vld [vmem:[%s6337_s1 + $0x220] sm:$0xff]  }
  0x4a   :  { %3699 = vmatprep.subr.bf16.mxu1 %v4670_v8  ;;  %v5060_v8 = vld [vmem:[%s6337_s1 + $0x218] sm:$0xff]  }
  0x4c   :  { %4044 = vmatpush3.bf16.msra.mxu0 %v5039_v0 }
  0x4d   :  { %3700 = vmatpush3.bf16.msra.mxu1 %v4682_v10  ;;  %4045 = vmatprep.subr.bf16.mxu0 %v6358_v53  ;;  %v5069_v10 = vld [vmem:[%s6337_s1 + $0x210] sm:$0xff]  }
  0x4e   :  { %3701 = vmatprep.subr.bf16.mxu1 %v4694_v12  ;;  %v5078_v12 = vld [vmem:[%s6337_s1 + $0x208] sm:$0xff]  }
  0x50   :  { %4046 = vmatpush3.bf16.msra.mxu0 %v5051_v6 }
  0x51   :  { %3702 = vmatpush3.bf16.msra.mxu1 %v4706_v14  ;;  %4047 = vmatprep.subr.bf16.mxu0 %v6358_v53  ;;  %v5087_v14 = vld [vmem:[%s6337_s1 + $0x200] sm:$0xff]  }
  0x52   :  { %3703 = vmatprep.subr.bf16.mxu1 %v4718_v16  ;;  %v4222_v16 = vld [vmem:[%s6338_s0 + $0x20] ss:$0 sps:$4 sm:$0xff]  }
  0x54   :  { %4048 = vmatpush3.bf16.msra.mxu0 %v5060_v8 }
  0x55   :  { %3704 = vmatpush3.bf16.msra.mxu1 %v4730_v18  ;;  %4049 = vmatprep.subr.bf16.mxu0 %v6358_v53  ;;  %v3294_v18 = vcombine.low %v3289_v2, %v3289_v2  ;;  %v4273_v2 = vld [vmem:[%s6339_s4 + $0x12c] ss:$16 sps:$4 sm:$0xff]  }
  0x56   :  { %3705 = vmatprep.subr.bf16.mxu1 %v4742_v20  ;;  %v3290_v20 = vld [vmem:[%s6338_s0 + $0x2c] sm:$0xff] }
  0x58   :  { %4050 = vmatpush3.bf16.msra.mxu0 %v5069_v10 }
  0x59   :  { %3706 = vmatpush3.bf16.msra.mxu1 %v4754_v22  ;;  %4051 = vmatprep.subr.bf16.mxu0 %v6358_v53  ;;  %v3291_v22 = vld [vmem:[%s6338_s0 + $0x34] sm:$0xff] }
  0x5a   :  { %3707 = vmatprep.subr.bf16.mxu1 %v4766_v24  ;;  %v3297_v24 = vcombine.high %v3290_v20, %v3290_v20 }
  0x5c   :  { %4052 = vmatpush3.bf16.msra.mxu0 %v5078_v12 }
  0x5d   :  { %3708 = vmatpush3.bf16.msra.mxu1 %v4778_v26  ;;  %4053 = vmatprep.subr.bf16.mxu0 %v6358_v53  ;;  %v3299_v26 = vcombine.high %v3291_v22, %v3291_v22 }
  0x5e   :  { %3709 = vmatprep.subr.bf16.mxu1 %v4790_v28  ;;  %v4232_v28 = vld [vmem:[%s6339_s4 + $0x1e0] ss:$16 sps:$4 sm:$0xff]  }
  0x60   :  { %4054 = vmatpush3.bf16.msra.mxu0 %v5087_v14 }
  0x61   :  { %3710 = vmatpush3.bf16.msra.mxu1 %v4802_v30  ;;  %3717 = vmatprep.subr.bf16.mxu0 %v4628_v1  ;;  %v3296_v1 = vcombine.low %v3290_v20, %v3290_v20  ;;  %v4235_v30 = vld [vmem:[%s6339_s4 + $0x1e8] ss:$16 sps:$4 sm:$0xff]   ;;  %v4285_v20 = vld [vmem:[%s6339_s4 + $0xec] ss:$16 sps:$4 sm:$0xff]  }
  0x62   :  { %3739 = vmatprep.subr.bf16.mxu1 %v4821_v38  ;;  %v4238_v38 = vld [vmem:[%s6339_s4 + $0x1c0] ss:$16 sps:$4 sm:$0xff]  }
  0x63   :  { %4056 = vmatmul.mubr.bf16.vlgmr.msra.gmra.mxu0 %v4222_v16  ;;  %v6356_v16 = vmov 0  }
  0x64   :  { %970 = vmatmul.mubr.bf16.vlgmr.msra.gmra.mxu1 %v3294_v18  ;;  %3718 = vmatpush3.bf16.msra.mxu0 %v4640_v3  ;;  %v3298_v3 = vcombine.low %v3291_v22, %v3291_v22  ;;  %v4282_v18 = vld [vmem:[%s6339_s4 + $0xe4] ss:$16 sps:$4 sm:$0xff]  }
  0x65   :  { %3740 = vmatpush3.bf16.msra.mxu1 %v4831_v40  ;;  %3719 = vmatprep.subr.bf16.mxu0 %v4652_v5  ;;  %v3292_v5 = vld [vmem:[%s6338_s0 + $0x3c] sm:$0xff]  ;;  %v4241_v40 = vld [vmem:[%s6339_s4 + $0x1c8] ss:$16 sps:$4 sm:$0xff]  }
  0x66   :  { %3741 = vmatprep.subr.bf16.mxu1 %v4843_v42  ;;  %1009 = vmatprep.mubr.bf16.mxu0 %v3297_v24  ;;  %v4246_v42 = vld [vmem:[%s6339_s4 + $0x1a4] ss:$16 sps:$4 sm:$0xff]  }
  0x67   :  { %1049 = vmatprep.mubr.bf16.mxu1 %v3299_v26 }
  0x68   :  { %3720 = vmatpush3.bf16.msra.mxu0 %v4664_v7  ;;  %v3301_v7 = vcombine.high %v3292_v5, %v3292_v5 }
  0x69   :  { %3742 = vmatpush3.bf16.msra.mxu1 %v4856_v44  ;;  %3721 = vmatprep.subr.bf16.mxu0 %v4676_v9  ;;  %v6404_v9 = vld [vmem:[#allocation2_spill] sm:$0xff]  ;;  %v4249_v44 = vld [vmem:[%s6339_s4 + $0x1ac] ss:$16 sps:$4 sm:$0xff]  }
  0x6a   :  { %3743 = vmatprep.subr.bf16.mxu1 %v4867_v46  ;;  %v4252_v46 = vld [vmem:[%s6339_s4 + $0x184] ss:$16 sps:$4 sm:$0xff]  }
  0x6c   :  { %3722 = vmatpush3.bf16.msra.mxu0 %v4688_v11  ;;  %v6405_v11 = vld [vmem:[#allocation3_spill] sm:$0xff] }
  0x6d   :  { %3744 = vmatpush3.bf16.msra.mxu1 %v4880_v48  ;;  %3723 = vmatprep.subr.bf16.mxu0 %v4700_v13  ;;  %v6406_v13 = vld [vmem:[#allocation4_spill] sm:$0xff]  ;;  %v4255_v48 = vld [vmem:[%s6339_s4 + $0x18c] ss:$16 sps:$4 sm:$0xff]  }
  0x6e   :  { %3745 = vmatprep.subr.bf16.mxu1 %v4891_v50  ;;  %v4258_v50 = vld [vmem:[%s6339_s4 + $0x164] ss:$16 sps:$4 sm:$0xff]  }
  0x70   :  { %3724 = vmatpush3.bf16.msra.mxu0 %v4712_v15  ;;  %v6407_v15 = vld [vmem:[#allocation5_spill] sm:$0xff] }
  0x71   :  { %3746 = vmatpush3.bf16.msra.mxu1 %v4904_v52  ;;  %3725 = vmatprep.subr.bf16.mxu0 %v4724_v17  ;;  %v6408_v17 = vld [vmem:[#allocation6_spill] sm:$0xff] }
  0x72   :  { %3747 = vmatprep.subr.bf16.mxu1 %v4915_v54 }
  0x74   :  { %3726 = vmatpush3.bf16.msra.mxu0 %v4736_v19  ;;  %v6409_v19 = vld [vmem:[#allocation7_spill] sm:$0xff] }
  0x75   :  { %3748 = vmatpush3.bf16.msra.mxu1 %v4928_v56  ;;  %3727 = vmatprep.subr.bf16.mxu0 %v4748_v21  ;;  %v6410_v21 = vld [vmem:[#allocation8_spill] sm:$0xff]  ;;  %v4259_v56 = vld [vmem:[%s6339_s4 + $0x168] ss:$16 sps:$4 sm:$0xff]  }
  0x76   :  { %3749 = vmatprep.subr.bf16.mxu1 %v4939_v58 }
  0x78   :  { %3728 = vmatpush3.bf16.msra.mxu0 %v4760_v23  ;;  %v6411_v23 = vld [vmem:[#allocation9_spill] sm:$0xff] }
  0x79   :  { %3750 = vmatpush3.bf16.msra.mxu1 %v4952_v60  ;;  %3729 = vmatprep.subr.bf16.mxu0 %v4772_v25  ;;  %v3300_v25 = vcombine.low %v3292_v5, %v3292_v5 }
  0x7a   :  { %3751 = vmatprep.subr.bf16.mxu1 %v4963_v62  ;;  %v4264_v62 = vld [vmem:[%s6339_s4 + $0x144] ss:$16 sps:$4 sm:$0xff]  }
  0x7c   :  { %3730 = vmatpush3.bf16.msra.mxu0 %v4784_v27  ;;  %v4231_v27 = vld [vmem:[%s6338_s0 + $0x44] ss:$0 sps:$4 sm:$0xff]  }
  0x7d   :  { %3752 = vmatpush3.bf16.msra.mxu1 %v4976_v32  ;;  %3731 = vmatprep.subr.bf16.mxu0 %v4796_v29  ;;  %v4234_v29 = vld [vmem:[%s6339_s4 + $0x1e4] ss:$16 sps:$4 sm:$0xff]  }
  0x7e   :  { %3753 = vmatprep.subr.bf16.mxu1 %v4987_v34  ;;  %v4262_v34 = vld [vmem:[%s6339_s4 + $0x140] ss:$16 sps:$4 sm:$0xff]  }
  0x80   :  { %3732 = vmatpush3.bf16.msra.mxu0 %v4808_v31  ;;  %v4237_v31 = vld [vmem:[%s6339_s4 + $0x1ec] ss:$16 sps:$4 sm:$0xff]  }
  0x81   :  { %3754 = vmatpush3.bf16.msra.mxu1 %v5000_v36  ;;  %3761 = vmatprep.subr.bf16.mxu0 %v4826_v39  ;;  %v4240_v39 = vld [vmem:[%s6339_s4 + $0x1c4] ss:$16 sps:$4 sm:$0xff]  }
  0x82   :  { %4059 = vmatprep.subr.bf16.mxu1 %v6358_v53 }
  0x83   :  { %1010 = vmatmul.mubr.bf16.vlgmr.msra.gmra.mxu0 %v3296_v1 }
  0x84   :  { %1050 = vmatmul.mubr.bf16.vlgmr.msra.gmra.mxu1 %v3298_v3  ;;  %3762 = vmatpush3.bf16.msra.mxu0 %v4836_v41  ;;  %v4243_v41 = vld [vmem:[%s6339_s4 + $0x1cc] ss:$16 sps:$4 sm:$0xff]  }
  0x85   :  { %4060 = vmatpush3.bf16.msra.mxu1 %v5019_v55  ;;  %3763 = vmatprep.subr.bf16.mxu0 %v4850_v43  ;;  %v4244_v43 = vld [vmem:[%s6339_s4 + $0x1a0] ss:$16 sps:$4 sm:$0xff]  }
  0x86   :  { %4061 = vmatprep.subr.bf16.mxu1 %v6358_v53  ;;  %1089 = vmatprep.mubr.bf16.mxu0 %v3301_v7  ;;  %v4256_v55 = vld [vmem:[%s6339_s4 + $0x160] ss:$16 sps:$4 sm:$0xff]  }
  0x87   :  { %4075 = vmatprep.mubr.msk.bf16.mxu1 %vm4563_vm0, %v6358_v53 }
  0x88   :  { %3764 = vmatpush3.bf16.msra.mxu0 %v4862_v45  ;;  %v4247_v45 = vld [vmem:[%s6339_s4 + $0x1a8] ss:$16 sps:$4 sm:$0xff]  }
  0x89   :  { %4062 = vmatpush3.bf16.msra.mxu1 %v5028_v59  ;;  %3765 = vmatprep.subr.bf16.mxu0 %v4874_v47  ;;  %v4250_v47 = vld [vmem:[%s6339_s4 + $0x180] ss:$16 sps:$4 sm:$0xff]  }
  0x8a   :  { %4063 = vmatprep.subr.bf16.mxu1 %v6358_v53 }
  0x8c   :  { %3766 = vmatpush3.bf16.msra.mxu0 %v4886_v49  ;;  %v4253_v49 = vld [vmem:[%s6339_s4 + $0x188] ss:$16 sps:$4 sm:$0xff]  }
  0x8d   :  { %4064 = vmatpush3.bf16.msra.mxu1 %v5039_v0  ;;  %3767 = vmatprep.subr.bf16.mxu0 %v4898_v51  ;;  %v4261_v51 = vld [vmem:[%s6339_s4 + $0x16c] ss:$16 sps:$4 sm:$0xff]   ;;  %v4270_v0 = vld [vmem:[%s6339_s4 + $0x124] ss:$16 sps:$4 sm:$0xff]  }
  0x8e   :  { %4065 = vmatprep.subr.bf16.mxu1 %v6358_v53 }
  0x90   :  { %3768 = vmatpush3.bf16.msra.mxu0 %v6404_v9 }
  0x91   :  { %4066 = vmatpush3.bf16.msra.mxu1 %v5051_v6  ;;  %3769 = vmatprep.subr.bf16.mxu0 %v6405_v11  ;;  %v4271_v6 = vld [vmem:[%s6339_s4 + $0x128] ss:$16 sps:$4 sm:$0xff]  }
  0x92   :  { %4067 = vmatprep.subr.bf16.mxu1 %v6358_v53 }
  0x94   :  { %3770 = vmatpush3.bf16.msra.mxu0 %v6406_v13 }
  0x95   :  { %4068 = vmatpush3.bf16.msra.mxu1 %v5060_v8  ;;  %3771 = vmatprep.subr.bf16.mxu0 %v6407_v15  ;;  %v4274_v8 = vld [vmem:[%s6339_s4 + $0x100] ss:$16 sps:$4 sm:$0xff]  }
  0x96   :  { %4069 = vmatprep.subr.bf16.mxu1 %v6358_v53 }
  0x98   :  { %3772 = vmatpush3.bf16.msra.mxu0 %v6408_v17 }
  0x99   :  { %4070 = vmatpush3.bf16.msra.mxu1 %v5069_v10  ;;  %3773 = vmatprep.subr.bf16.mxu0 %v6409_v19  ;;  %v4276_v10 = vld [vmem:[%s6339_s4 + $0x104] ss:$16 sps:$4 sm:$0xff]  }
  0x9a   :  { %4071 = vmatprep.subr.bf16.mxu1 %v6358_v53 }
  0x9c   :  { %3774 = vmatpush3.bf16.msra.mxu0 %v6410_v21 }
  0x9d   :  { %4072 = vmatpush3.bf16.msra.mxu1 %v5078_v12  ;;  %3775 = vmatprep.subr.bf16.mxu0 %v6411_v23  ;;  %v4277_v12 = vld [vmem:[%s6339_s4 + $0x108] ss:$16 sps:$4 sm:$0xff]  }
  0x9e   :  { %4073 = vmatprep.subr.bf16.mxu1 %v6358_v53  ;;  %v5776_v53 = vld [vmem:[%s6337_s1 + $0x188] sm:$0xff]  }
  0x9f   :  { %6433 = vst [vmem:[#allocation23_spill] sm:$0xff] %v5776_v53 }
  0xa0   :  { %3776 = vmatpush3.bf16.msra.mxu0 %v5006_v37 }
  0xa1   :  { %4074 = vmatpush3.bf16.msra.mxu1 %v5087_v14  ;;  %1334 = vmatprep.subr.bf16.mxu0 %v4234_v29  ;;  %v4279_v14 = vld [vmem:[%s6339_s4 + $0x10c] ss:$16 sps:$4 sm:$0xff]  }
  0xa2   :  { %1375 = vmatprep.subr.bf16.mxu1 %v4237_v31 }
  0xa3   :  { %1090 = vmatmul.mubr.bf16.vlgmr.msra.gmra.mxu0 %v3300_v25 }
  0xa4   :  { %4076 = vmatmul.mubr.bf16.vlgmr.msra.gmra.mxu1 %v4231_v27  ;;  %1335 = vmatpush1.bf16.msra.mxu0 %v4232_v28 }
  0xa5   :  { %1376 = vmatpush1.bf16.msra.mxu1 %v4235_v30  ;;  %1336 = vmatprep.subr.bf16.mxu0 %v4240_v39 }
  0xa6   :  { %1377 = vmatprep.subr.bf16.mxu1 %v4243_v41  ;;  %1366 = vmatprep.mubr.bf16.mxu0 %v6356_v16 }
  0xa7   :  { %1407 = vmatprep.mubr.bf16.mxu1 %v6356_v16 }
  0xa8   :  { %1337 = vmatpush1.bf16.msra.mxu0 %v4238_v38 }
  0xa9   :  { %1378 = vmatpush1.bf16.msra.mxu1 %v4241_v40  ;;  %1338 = vmatprep.subr.bf16.mxu0 %v4246_v42 }
  0xaa   :  { %1379 = vmatprep.subr.bf16.mxu1 %v4249_v44 }
  0xac   :  { %1339 = vmatpush1.bf16.msra.mxu0 %v4244_v43 }
  0xad   :  { %1380 = vmatpush1.bf16.msra.mxu1 %v4247_v45  ;;  %1340 = vmatprep.subr.bf16.mxu0 %v4252_v46 }
  0xae   :  { %1381 = vmatprep.subr.bf16.mxu1 %v4255_v48 }
  0xb0   :  { %1341 = vmatpush1.bf16.msra.mxu0 %v4250_v47 }
  0xb1   :  { %1382 = vmatpush1.bf16.msra.mxu1 %v4253_v49  ;;  %1342 = vmatprep.subr.bf16.mxu0 %v4258_v50 }
  0xb2   :  { %1383 = vmatprep.subr.bf16.mxu1 %v4261_v51 }
  0xb4   :  { %1343 = vmatpush1.bf16.msra.mxu0 %v4256_v55 }
  0xb5   :  { %1384 = vmatpush1.bf16.msra.mxu1 %v4259_v56  ;;  %1344 = vmatprep.subr.bf16.mxu0 %v4264_v62 }
  0xb6   :  { %1385 = vmatprep.subr.bf16.mxu1 %v4267_v63 }
  0xb8   :  { %1345 = vmatpush1.bf16.msra.mxu0 %v4262_v34  ;;  %v5289_v34 = vld [vmem:[%s6341_s3] ss:$0 sm:$0xff] }
  0xb9   :  { %1386 = vmatpush1.bf16.msra.mxu1 %v4265_v35  ;;  %1346 = vmatprep.subr.bf16.mxu0 %v4270_v0 }
  0xba   :  { %1387 = vmatprep.subr.bf16.mxu1 %v4273_v2  ;;  %v4288_v2 = vld [vmem:[%s6339_s4 + $0xc4] ss:$16 sps:$4 sm:$0xff]  }
  0xbc   :  { %1347 = vmatpush1.bf16.msra.mxu0 %v4268_v4  ;;  %v4291_v4 = vld [vmem:[%s6339_s4 + $0xcc] ss:$16 sps:$4 sm:$0xff]  }
  0xbd   :  { %1388 = vmatpush1.bf16.msra.mxu1 %v4271_v6  ;;  %1348 = vmatprep.subr.bf16.mxu0 %v4276_v10  ;;  %v4286_v6 = vld [vmem:[%s6339_s4 + $0xc0] ss:$16 sps:$4 sm:$0xff]   ;;  %v4294_v10 = vld [vmem:[%s6339_s4 + $0xa4] ss:$16 sps:$4 sm:$0xff]  }
  0xbe   :  { %1389 = vmatprep.subr.bf16.mxu1 %v4279_v14  ;;  %v4292_v14 = vld [vmem:[%s6339_s4 + $0xa0] ss:$16 sps:$4 sm:$0xff]  }
  0xc0   :  { %1349 = vmatpush1.bf16.msra.mxu0 %v4274_v8  ;;  %v4289_v8 = vld [vmem:[%s6339_s4 + $0xc8] ss:$16 sps:$4 sm:$0xff]  }
  0xc1   :  { %1390 = vmatpush1.bf16.msra.mxu1 %v4277_v12  ;;  %1576 = vmatprep.subr.bf16.mxu0 %v4282_v18  ;;  %v4297_v12 = vld [vmem:[%s6339_s4 + $0xac] ss:$16 sps:$4 sm:$0xff]   ;;  %v4295_v18 = vld [vmem:[%s6339_s4 + $0xa8] ss:$16 sps:$4 sm:$0xff]  }
  0xc2   :  { %1617 = vmatprep.subr.bf16.mxu1 %v4285_v20  ;;  %v4300_v20 = vld [vmem:[%s6339_s4 + $0x84] ss:$16 sps:$4 sm:$0xff]  }
  0xe3   :  { %v3614_v52 = vpop.f32.mrf.mxu0 }
  0xe4   :  { %v3636_v54 = vpop.f32.mrf.mxu1 }
  0xe5   :  { %v3615_v57 = vpop.f32.mrf.mxu0 }
  0xe6   :  { %v3637_v58 = vpop.f32.mrf.mxu1  ;;  %v3616_v60 = vadd.f32 %v3615_v57, %v3614_v52 }
  0xe7   :  { %v3638_v61 = vadd.f32 %v3637_v58, %v3636_v54  ;;  %v3617_v32 = vpop.f32.mrf.mxu0 }
  0xe8   :  { %v3639_v33 = vpop.f32.mrf.mxu1  ;;  %v5283_v32 = vld [vmem:[%s6340_s2] ss:$0 sm:$0xff] }
  0xe9   :  { %v726_v36 = vadd.f32 %v3638_v61, %v3616_v60  ;;  %v3618_v37 = vpop.f32.mrf.mxu0 }
  0xea   :  { %v3640_v59 = vpop.f32.mrf.mxu1  ;;  %v4280_v37 = vld [vmem:[%s6339_s4 + $0xe0] ss:$16 sps:$4 sm:$0xff]  }
  0xeb   :  { %v4283_v59 = vld [vmem:[%s6339_s4 + $0xe8] ss:$16 sps:$4 sm:$0xff]  }
 0x103   :  { %v3658_v22 = vpop.f32.mrf.mxu0 }
 0x104   :  { %v3680_v24 = vpop.f32.mrf.mxu1 }
 0x105   :  { %v3659_v26 = vpop.f32.mrf.mxu0 }
 0x106   :  { %v3681_v1 = vpop.f32.mrf.mxu1  ;;  %v3660_v3 = vadd.f32 %v3659_v26, %v3658_v22  ;;  %v4303_v22 = vld [vmem:[%s6339_s4 + $0x8c] ss:$16 sps:$4 sm:$0xff]   ;;  %v4301_v26 = vld [vmem:[%s6339_s4 + $0x88] ss:$16 sps:$4 sm:$0xff]  }
 0x107   :  { %v3682_v5 = vadd.f32 %v3681_v1, %v3680_v24  ;;  %v3661_v7 = vpop.f32.mrf.mxu0  ;;  %v4298_v24 = vld [vmem:[%s6339_s4 + $0x80] ss:$16 sps:$4 sm:$0xff]   ;;  %v4306_v1 = vld [vmem:[%s6339_s4 + $0x64] ss:$16 sps:$4 sm:$0xff]  }
 0x108   :  { %v3683_v9 = vpop.f32.mrf.mxu1  ;;  %v766_v11 = vadd.f32 %v3660_v3, %v726_v36  ;;  %v4309_v3 = vld [vmem:[%s6339_s4 + $0x6c] ss:$16 sps:$4 sm:$0xff]   ;;  %v4307_v7 = vld [vmem:[%s6339_s4 + $0x68] ss:$16 sps:$4 sm:$0xff]  }
 0x109   :  { %v3662_v13 = vpop.f32.mrf.mxu0  ;;  %v4312_v9 = vld [vmem:[%s6339_s4 + $0x44] ss:$16 sps:$4 sm:$0xff]  }
 0x10a   :  { %v3684_v15 = vpop.f32.mrf.mxu1  ;;  %v806_v17 = vadd.f32 %v3682_v5, %v766_v11  ;;  %v4304_v5 = vld [vmem:[%s6339_s4 + $0x60] ss:$16 sps:$4 sm:$0xff]   ;;  %v4315_v11 = vld [vmem:[%s6339_s4 + $0x4c] ss:$16 sps:$4 sm:$0xff]  }
 0x10b   :  { %v4310_v13 = vld [vmem:[%s6339_s4 + $0x40] ss:$16 sps:$4 sm:$0xff]   ;;  %v4313_v15 = vld [vmem:[%s6339_s4 + $0x48] ss:$16 sps:$4 sm:$0xff]  }
 0x123   :  { %v845_v19 = vpop.f32.mrf.mxu0 }
 0x124   :  { %v3711_v21 = vpop.f32.mrf.mxu1  ;;  %v5278_v23 = vadd.f32 %v845_v19, %v806_v17  ;;  %v4318_v19 = vld [vmem:[%s6339_s4 + $0x24] ss:$16 sps:$4 sm:$0xff]  }
 0x125   :  { %v4057_v25 = vpop.f32.mrf.mxu0 }
 0x126   :  { %v3712_v27 = vpop.f32.mrf.mxu1  ;;  %v857_v17 = vmul.f32 %v5283_v32, %v5278_v23  ;;  %v4316_v25 = vld [vmem:[%s6339_s4 + $0x20] ss:$16 sps:$4 sm:$0xff]   ;;  %v4319_v23 = vld [vmem:[%s6339_s4 + $0x28] ss:$16 sps:$4 sm:$0xff]  }
 0x127   :  { %v848_v28 = vpop.f32.mrf.mxu0  ;;  %v3713_v47 = vadd.f32 %v3712_v27, %v3711_v21  ;;  %v4321_v21 = vld [vmem:[%s6339_s4 + $0x2c] ss:$16 sps:$4 sm:$0xff]  }
 0x128   :  { %v3714_v29 = vpop.f32.mrf.mxu1  ;;  %v864_v27 = vadd.f32 %v5289_v34, %v857_v17  ;;  %v4324_v28 = vld [vmem:[%s6339_s4 + $0x4] ss:$16 sps:$4 sm:$0xff]  }
 0x129   :  { %v4058_v30 = vpop.f32.mrf.mxu0  ;;  %v4327_v29 = vld [vmem:[%s6339_s4 + $0xc] ss:$16 sps:$4 sm:$0xff]   ;;  %v5650_v17 = vld [vmem:[%s6337_s1 + $0x130] sm:$0xff]  }
 0x12a   :  { %v3715_v31 = vpop.f32.mrf.mxu1  ;;  %v4322_v30 = vld [vmem:[%s6339_s4] ss:$16 sps:$4 sm:$0xff]   ;;  %6412 = vst [vmem:[#allocation2_spill] sm:$0xff] %v5650_v17 }
 0x12b   :  { %v4325_v31 = vld [vmem:[%s6339_s4 + $0x8] ss:$16 sps:$4 sm:$0xff]  }
 0x143   :  { %v3733_v38 = vpop.f32.mrf.mxu0 }
 0x144   :  { %v3755_v39 = vpop.f32.mrf.mxu1 }
 0x145   :  { %v3734_v40 = vpop.f32.mrf.mxu0 }
 0x146   :  { %v3756_v41 = vpop.f32.mrf.mxu1  ;;  %v3735_v46 = vadd.f32 %v3734_v40, %v3733_v38  ;;  %v865_v38 = vmax.f32 %v864_v27, 0.0  ;;  %v5395_v40 = vld [vmem:[%s6338_s0 + $0x50] sm:$0xff]  ;;  %v5680_v27 = vld [vmem:[%s6337_s1 + $0x1a8] sm:$0xff]  }
 0x147   :  { %v3736_v42 = vpop.f32.mrf.mxu0  ;;  %v3757_v49 = vadd.f32 %v3756_v41, %v3755_v39  ;;  %v5390_v39 = vld [vmem:[%s6338_s0 + $0x48] sm:$0xff]  ;;  %6417 = vst [vmem:[#allocation7_spill] sm:$0xff] %v5680_v27 }
 0x148   :  { %v3758_v43 = vpop.f32.mrf.mxu1  ;;  %v1012_v48 = vadd.f32 %v3735_v46, %v3713_v47  ;;  %v866_v41 = vpack.c.bf16 %v865_v38, %v865_v38  ;;  %v5400_v42 = vld [vmem:[%s6337_s1 + $0x78] sm:$0xff]  }
 0x149   :  { %v3737_v44 = vpop.f32.mrf.mxu0  ;;  %v5406_v43 = vld [vmem:[%s6337_s1 + $0xf8] sm:$0xff]  }
 0x14a   :  { %v3759_v45 = vpop.f32.mrf.mxu1  ;;  %v1052_v55 = vadd.f32 %v3757_v49, %v1012_v48  ;;  %v3405_v44 = vcombine.high %v5390_v39, %v5390_v39  ;;  %v5416_v46 = vld [vmem:[%s6337_s1 + $0x38] sm:$0xff]   ;;  %v5428_v48 = vld [vmem:[%s6337_s1 + $0x70] sm:$0xff]  }
 0x14b   :  { %v3407_v45 = vcombine.high %v5395_v40, %v5395_v40  ;;  %v5422_v47 = vld [vmem:[%s6337_s1 + $0xb8] sm:$0xff]   ;;  %v5434_v49 = vld [vmem:[%s6337_s1 + $0xf0] sm:$0xff]  }
 0x14c   :  { %v5710_v38 = vld [vmem:[%s6337_s1 + $0x158] sm:$0xff]  }
 0x14d   :  { %6422 = vst [vmem:[#allocation12_spill] sm:$0xff] %v5710_v38 }
 0x163   :  { %v3777_v50 = vpop.f32.mrf.mxu0 }
 0x164   :  { %v1131_v51 = vpop.f32.mrf.mxu1 }
 0x165   :  { %v3778_v52 = vpop.f32.mrf.mxu0 }
 0x166   :  { %v4077_v54 = vpop.f32.mrf.mxu1  ;;  %v3779_v56 = vadd.f32 %v3778_v52, %v3777_v50  ;;  %v5440_v50 = vld [vmem:[%s6337_s1 + $0x30] sm:$0xff]   ;;  %v5452_v52 = vld [vmem:[%s6337_s1 + $0x68] sm:$0xff]  }
 0x167   :  { %v3780_v57 = vpop.f32.mrf.mxu0  ;;  %v5458_v54 = vld [vmem:[%s6337_s1 + $0xe8] sm:$0xff]  }
 0x168   :  { %v1134_v58 = vpop.f32.mrf.mxu1  ;;  %v1092_v60 = vadd.f32 %v3779_v56, %v1052_v55  ;;  %v5464_v55 = vld [vmem:[%s6337_s1 + $0x28] sm:$0xff]   ;;  %v5476_v57 = vld [vmem:[%s6337_s1 + $0x60] sm:$0xff]  }
 0x169   :  { %v3781_v61 = vpop.f32.mrf.mxu0  ;;  %v5470_v56 = vld [vmem:[%s6337_s1 + $0xa8] sm:$0xff]   ;;  %v5482_v58 = vld [vmem:[%s6337_s1 + $0xe0] sm:$0xff]  }
 0x16a   :  { %v4078_v62 = vpop.f32.mrf.mxu1  ;;  %v1132_v63 = vadd.f32 %v1131_v51, %v1092_v60  ;;  %v5446_v51 = vld [vmem:[%s6337_s1 + $0xb0] sm:$0xff]   ;;  %v5488_v60 = vld [vmem:[%s6337_s1 + $0x20] sm:$0xff]  }
 0x16b   :  { %v5494_v61 = vld [vmem:[%s6337_s1 + $0xa0] sm:$0xff]   ;;  %v5500_v62 = vld [vmem:[%s6337_s1 + $0x58] sm:$0xff]  }
 0x16c   :  { %v1137_v33 = vmul.f32 %v5283_v32, %v1132_v63  ;;  %v5506_v63 = vld [vmem:[%s6337_s1 + $0xd8] sm:$0xff]  }
 0x16e   :  { %v1138_v35 = vadd.f32 %v5289_v34, %v1137_v33  ;;  %v5512_v33 = vld [vmem:[%s6337_s1 + $0x18] sm:$0xff]  }
 0x170   :  { %v1139_v36 = vmax.f32 %v1138_v35, 0.0  ;;  %v5518_v35 = vld [vmem:[%s6337_s1 + $0x98] sm:$0xff]  }
 0x172   :  { %v1140_v0 = vpack.c.bf16 %v1139_v36, %v1139_v36  ;;  %v5524_v36 = vld [vmem:[%s6337_s1 + $0x50] sm:$0xff]  }
 0x174   :  { %1367 = vmatmul.mubr.bf16.vlgmr.msra.gmra.mxu0 %v1140_v0  ;;  %1408 = vmatmul.mubr.bf16.vlgmr.msra.gmra.mxu1 %v1140_v0  ;;  %v5542_v0 = vld [vmem:[%s6337_s1 + $0x90] sm:$0xff]  }
 0x175   :  { %1577 = vmatpush1.bf16.msra.mxu0 %v4280_v37  ;;  %1618 = vmatpush1.bf16.msra.mxu1 %v4283_v59  ;;  %v5530_v37 = vld [vmem:[%s6337_s1 + $0xd0] sm:$0xff]  }
 0x176   :  { %1578 = vmatprep.subr.bf16.mxu0 %v4288_v2  ;;  %1619 = vmatprep.subr.bf16.mxu1 %v4291_v4  ;;  %v5536_v59 = vld [vmem:[%s6337_s1 + $0x10] sm:$0xff]   ;;  %v5548_v2 = vld [vmem:[%s6337_s1 + $0x48] sm:$0xff]  }
 0x177   :  { %1608 = vmatprep.mubr.bf16.mxu0 %v6356_v16  ;;  %1649 = vmatprep.mubr.bf16.mxu1 %v6356_v16  ;;  %v5554_v4 = vld [vmem:[%s6337_s1 + $0xc8] sm:$0xff]  }
 0x178   :  { %v5770_v16 = vld [vmem:[%s6337_s1 + $0x108] sm:$0xff]  }
 0x179   :  { %1579 = vmatpush1.bf16.msra.mxu0 %v4286_v6  ;;  %1620 = vmatpush1.bf16.msra.mxu1 %v4289_v8  ;;  %v5560_v6 = vld [vmem:[%s6337_s1 + $0x8] sm:$0xff]   ;;  %6432 = vst [vmem:[#allocation22_spill] sm:$0xff] %v5770_v16 }
 0x17a   :  { %1580 = vmatprep.subr.bf16.mxu0 %v4294_v10  ;;  %1621 = vmatprep.subr.bf16.mxu1 %v4297_v12  ;;  %v5566_v8 = vld [vmem:[%s6337_s1 + $0x88] sm:$0xff]   ;;  %v5572_v10 = vld [vmem:[%s6337_s1 + $0x40] sm:$0xff]  }
 0x17b   :  { %v5578_v12 = vld [vmem:[%s6337_s1 + $0xc0] sm:$0xff]  }
 0x17d   :  { %1581 = vmatpush1.bf16.msra.mxu0 %v4292_v14  ;;  %1622 = vmatpush1.bf16.msra.mxu1 %v4295_v18  ;;  %v3404_v14 = vcombine.low %v5390_v39, %v5390_v39  ;;  %v3406_v18 = vcombine.low %v5395_v40, %v5395_v40  ;;  %v5716_v39 = vld [vmem:[%s6337_s1 + $0x1d8] sm:$0xff]  }
 0x17e   :  { %1582 = vmatprep.subr.bf16.mxu0 %v4300_v20  ;;  %1623 = vmatprep.subr.bf16.mxu1 %v4303_v22  ;;  %v5588_v20 = vld [vmem:[%s6338_s0 + $0x58] sm:$0xff]  ;;  %v5593_v22 = vld [vmem:[%s6338_s0 + $0x60] sm:$0xff]  ;;  %6423 = vst [vmem:[#allocation13_spill] sm:$0xff] %v5716_v39 }
 0x17f   :  { %v5722_v40 = vld [vmem:[%s6337_s1 + $0x118] sm:$0xff]  }
 0x180   :  { %6424 = vst [vmem:[#allocation14_spill] sm:$0xff] %v5722_v40 }
 0x181   :  { %1583 = vmatpush1.bf16.msra.mxu0 %v4298_v24  ;;  %1624 = vmatpush1.bf16.msra.mxu1 %v4301_v26  ;;  %v5598_v24 = vld [vmem:[%s6337_s1] sm:$0xff]  }
 0x182   :  { %1584 = vmatprep.subr.bf16.mxu0 %v4306_v1  ;;  %1625 = vmatprep.subr.bf16.mxu1 %v4309_v3  ;;  %v5604_v26 = vld [vmem:[%s6337_s1 + $0x80] sm:$0xff]   ;;  %v5610_v1 = vld [vmem:[%s6337_s1 + $0x178] sm:$0xff]  }
 0x183   :  { %v5616_v3 = vld [vmem:[%s6337_s1 + $0x1f8] sm:$0xff]  }
 0x185   :  { %1585 = vmatpush1.bf16.msra.mxu0 %v4304_v5  ;;  %1626 = vmatpush1.bf16.msra.mxu1 %v4307_v7  ;;  %v3409_v5 = vcombine.high %v5588_v20, %v5588_v20  ;;  %v3411_v7 = vcombine.high %v5593_v22, %v5593_v22 }
 0x186   :  { %1586 = vmatprep.subr.bf16.mxu0 %v4312_v9  ;;  %1627 = vmatprep.subr.bf16.mxu1 %v4315_v11  ;;  %v5626_v9 = vld [vmem:[%s6337_s1 + $0x138] sm:$0xff]  }
 0x187   :  { %v5632_v11 = vld [vmem:[%s6337_s1 + $0x1b8] sm:$0xff]  }
 0x189   :  { %1587 = vmatpush1.bf16.msra.mxu0 %v4310_v13  ;;  %1628 = vmatpush1.bf16.msra.mxu1 %v4313_v15  ;;  %v5638_v13 = vld [vmem:[%s6337_s1 + $0x170] sm:$0xff]  }
 0x18a   :  { %1588 = vmatprep.subr.bf16.mxu0 %v4318_v19  ;;  %1629 = vmatprep.subr.bf16.mxu1 %v4321_v21  ;;  %v5644_v15 = vld [vmem:[%s6337_s1 + $0x1f0] sm:$0xff]   ;;  %v5662_v21 = vld [vmem:[%s6337_s1 + $0x168] sm:$0xff]  }
 0x18b   :  { %v5656_v19 = vld [vmem:[%s6337_s1 + $0x1b0] sm:$0xff]   ;;  %6414 = vst [vmem:[#allocation4_spill] sm:$0xff] %v5662_v21 }
 0x18c   :  { %6413 = vst [vmem:[#allocation3_spill] sm:$0xff] %v5656_v19 }
 0x18d   :  { %1589 = vmatpush1.bf16.msra.mxu0 %v4316_v25  ;;  %1630 = vmatpush1.bf16.msra.mxu1 %v4319_v23  ;;  %v5668_v25 = vld [vmem:[%s6337_s1 + $0x1e8] sm:$0xff]  }
 0x18e   :  { %1590 = vmatprep.subr.bf16.mxu0 %v4324_v28  ;;  %1631 = vmatprep.subr.bf16.mxu1 %v4327_v29  ;;  %6415 = vst [vmem:[#allocation5_spill] sm:$0xff] %v5668_v25  ;;  %v5674_v23 = vld [vmem:[%s6337_s1 + $0x128] sm:$0xff]   ;;  %v5686_v28 = vld [vmem:[%s6337_s1 + $0x160] sm:$0xff]  }
 0x18f   :  { %6416 = vst [vmem:[#allocation6_spill] sm:$0xff] %v5674_v23  ;;  %6418 = vst [vmem:[#allocation8_spill] sm:$0xff] %v5686_v28  ;;  %v5692_v29 = vld [vmem:[%s6337_s1 + $0x1e0] sm:$0xff]  }
 0x190   :  { %6419 = vst [vmem:[#allocation9_spill] sm:$0xff] %v5692_v29 }
 0x191   :  { %1591 = vmatpush1.bf16.msra.mxu0 %v4322_v30  ;;  %1632 = vmatpush1.bf16.msra.mxu1 %v4325_v31  ;;  %v5698_v30 = vld [vmem:[%s6337_s1 + $0x120] sm:$0xff]  }
 0x192   :  { %3792 = vmatprep.subr.bf16.mxu0 %v5400_v42  ;;  %3814 = vmatprep.subr.bf16.mxu1 %v5406_v43  ;;  %6420 = vst [vmem:[#allocation10_spill] sm:$0xff] %v5698_v30  ;;  %v5704_v31 = vld [vmem:[%s6337_s1 + $0x1a0] sm:$0xff]  }
 0x193   :  { %6421 = vst [vmem:[#allocation11_spill] sm:$0xff] %v5704_v31 }
 0x194   :  { %1609 = vmatmul.mubr.bf16.vlgmr.msra.gmra.mxu0 %v866_v41  ;;  %1650 = vmatmul.mubr.bf16.vlgmr.msra.gmra.mxu1 %v866_v41  ;;  %v5728_v41 = vld [vmem:[%s6337_s1 + $0x198] sm:$0xff]  }
 0x195   :  { %3793 = vmatpush3.bf16.msra.mxu0 %v5416_v46  ;;  %3815 = vmatpush3.bf16.msra.mxu1 %v5422_v47  ;;  %6425 = vst [vmem:[#allocation15_spill] sm:$0xff] %v5728_v41 }
 0x196   :  { %3794 = vmatprep.subr.bf16.mxu0 %v5428_v48  ;;  %3816 = vmatprep.subr.bf16.mxu1 %v5434_v49 }
 0x197   :  { %1728 = vmatprep.mubr.bf16.mxu0 %v3405_v44  ;;  %1768 = vmatprep.mubr.bf16.mxu1 %v3407_v45  ;;  %v5734_v44 = vld [vmem:[%s6337_s1 + $0x150] sm:$0xff]  }
 0x198   :  { %6426 = vst [vmem:[#allocation16_spill] sm:$0xff] %v5734_v44  ;;  %v5740_v45 = vld [vmem:[%s6337_s1 + $0x1d0] sm:$0xff]  }
 0x199   :  { %3795 = vmatpush3.bf16.msra.mxu0 %v5440_v50  ;;  %3817 = vmatpush3.bf16.msra.mxu1 %v5446_v51  ;;  %6427 = vst [vmem:[#allocation17_spill] sm:$0xff] %v5740_v45 }
 0x19a   :  { %3796 = vmatprep.subr.bf16.mxu0 %v5452_v52  ;;  %3818 = vmatprep.subr.bf16.mxu1 %v5458_v54 }
 0x19d   :  { %3797 = vmatpush3.bf16.msra.mxu0 %v5464_v55  ;;  %3819 = vmatpush3.bf16.msra.mxu1 %v5470_v56 }
 0x19e   :  { %3798 = vmatprep.subr.bf16.mxu0 %v5476_v57  ;;  %3820 = vmatprep.subr.bf16.mxu1 %v5482_v58 }
 0x1a1   :  { %3799 = vmatpush3.bf16.msra.mxu0 %v5488_v60  ;;  %3821 = vmatpush3.bf16.msra.mxu1 %v5494_v61 }
 0x1a2   :  { %3800 = vmatprep.subr.bf16.mxu0 %v5500_v62  ;;  %3822 = vmatprep.subr.bf16.mxu1 %v5506_v63 }
 0x1a5   :  { %3801 = vmatpush3.bf16.msra.mxu0 %v5512_v33  ;;  %3823 = vmatpush3.bf16.msra.mxu1 %v5518_v35 }
 0x1a6   :  { %3802 = vmatprep.subr.bf16.mxu0 %v5524_v36  ;;  %3824 = vmatprep.subr.bf16.mxu1 %v5530_v37 }
 0x1a9   :  { %3803 = vmatpush3.bf16.msra.mxu0 %v5536_v59  ;;  %3825 = vmatpush3.bf16.msra.mxu1 %v5542_v0 }
 0x1aa   :  { %3804 = vmatprep.subr.bf16.mxu0 %v5548_v2  ;;  %3826 = vmatprep.subr.bf16.mxu1 %v5554_v4 }
 0x1ad   :  { %3805 = vmatpush3.bf16.msra.mxu0 %v5560_v6  ;;  %3827 = vmatpush3.bf16.msra.mxu1 %v5566_v8 }
 0x1ae   :  { %3806 = vmatprep.subr.bf16.mxu0 %v5572_v10  ;;  %3828 = vmatprep.subr.bf16.mxu1 %v5578_v12 }
 0x1b1   :  { %3807 = vmatpush3.bf16.msra.mxu0 %v5598_v24  ;;  %3829 = vmatpush3.bf16.msra.mxu1 %v5604_v26 }
 0x1b2   :  { %3836 = vmatprep.subr.bf16.mxu0 %v5610_v1  ;;  %3858 = vmatprep.subr.bf16.mxu1 %v5616_v3 }
 0x1b4   :  { %1729 = vmatmul.mubr.bf16.vlgmr.msra.gmra.mxu0 %v3404_v14  ;;  %1769 = vmatmul.mubr.bf16.vlgmr.msra.gmra.mxu1 %v3406_v18  ;;  %v5746_v14 = vld [vmem:[%s6337_s1 + $0x110] sm:$0xff]  }
 0x1b5   :  { %3837 = vmatpush3.bf16.msra.mxu0 %v5626_v9  ;;  %3859 = vmatpush3.bf16.msra.mxu1 %v5632_v11  ;;  %6428 = vst [vmem:[#allocation18_spill] sm:$0xff] %v5746_v14  ;;  %v5752_v18 = vld [vmem:[%s6337_s1 + $0x190] sm:$0xff]  }
 0x1b6   :  { %3838 = vmatprep.subr.bf16.mxu0 %v5638_v13  ;;  %3860 = vmatprep.subr.bf16.mxu1 %v5644_v15  ;;  %6429 = vst [vmem:[#allocation19_spill] sm:$0xff] %v5752_v18 }
 0x1b7   :  { %1808 = vmatprep.mubr.bf16.mxu0 %v3409_v5  ;;  %1848 = vmatprep.mubr.bf16.mxu1 %v3411_v7  ;;  %v5758_v5 = vld [vmem:[%s6337_s1 + $0x148] sm:$0xff]  }
 0x1b8   :  { %6430 = vst [vmem:[#allocation20_spill] sm:$0xff] %v5758_v5  ;;  %v5764_v7 = vld [vmem:[%s6337_s1 + $0x1c8] sm:$0xff]  }
 0x1b9   :  { %3839 = vmatpush3.bf16.msra.mxu0 %v5650_v17  ;;  %3861 = vmatpush3.bf16.msra.mxu1 %v5656_v19  ;;  %6431 = vst [vmem:[#allocation21_spill] sm:$0xff] %v5764_v7 }
 0x1ba   :  { %3840 = vmatprep.subr.bf16.mxu0 %v5662_v21  ;;  %3862 = vmatprep.subr.bf16.mxu1 %v5668_v25 }
 0x1bd   :  { %3841 = vmatpush3.bf16.msra.mxu0 %v5674_v23  ;;  %3863 = vmatpush3.bf16.msra.mxu1 %v5680_v27 }
 0x1be   :  { %3842 = vmatprep.subr.bf16.mxu0 %v5686_v28  ;;  %3864 = vmatprep.subr.bf16.mxu1 %v5692_v29 }
 0x1c1   :  { %3843 = vmatpush3.bf16.msra.mxu0 %v5698_v30  ;;  %3865 = vmatpush3.bf16.msra.mxu1 %v5704_v31 }
 0x1c2   :  { %3844 = vmatprep.subr.bf16.mxu0 %v5710_v38  ;;  %3866 = vmatprep.subr.bf16.mxu1 %v5716_v39  ;;  %v4379_v39 = vld [vmem:[%s6339_s4 + $0x200] ss:$16 sps:$4 sm:$0xff]  }
 0x1c5   :  { %3845 = vmatpush3.bf16.msra.mxu0 %v5722_v40  ;;  %3867 = vmatpush3.bf16.msra.mxu1 %v5728_v41  ;;  %v4381_v41 = vld [vmem:[%s6339_s4 + $0x204] ss:$16 sps:$4 sm:$0xff]   ;;  %v4384_v40 = vld [vmem:[%s6339_s4 + $0x20c] ss:$16 sps:$4 sm:$0xff]  }
 0x1c6   :  { %3846 = vmatprep.subr.bf16.mxu0 %v5734_v44  ;;  %3868 = vmatprep.subr.bf16.mxu1 %v5740_v45  ;;  %v4375_v45 = vld [vmem:[%s6339_s4 + $0x224] ss:$16 sps:$4 sm:$0xff]  }
 0x1c9   :  { %3847 = vmatpush3.bf16.msra.mxu0 %v5746_v14  ;;  %3869 = vmatpush3.bf16.msra.mxu1 %v5752_v18  ;;  %v5798_v18 = vld [vmem:[%s6337_s1 + $0x100] sm:$0xff]   ;;  %v4346_v14 = vld [vmem:[%s6339_s4 + $0x2c8] ss:$16 sps:$4 sm:$0xff]  }
 0x1ca   :  { %3848 = vmatprep.subr.bf16.mxu0 %v5758_v5  ;;  %3870 = vmatprep.subr.bf16.mxu1 %v5764_v7  ;;  %v5782_v5 = vld [vmem:[%s6337_s1 + $0x140] sm:$0xff]   ;;  %6436 = vst [vmem:[#allocation26_spill] sm:$0xff] %v5798_v18 }
 0x1cb   :  { %6434 = vst [vmem:[#allocation24_spill] sm:$0xff] %v5782_v5  ;;  %v5788_v7 = vld [vmem:[%s6337_s1 + $0x1c0] sm:$0xff]  }
 0x1cc   :  { %6435 = vst [vmem:[#allocation25_spill] sm:$0xff] %v5788_v7 }
 0x1cd   :  { %3849 = vmatpush3.bf16.msra.mxu0 %v5770_v16  ;;  %3871 = vmatpush3.bf16.msra.mxu1 %v5776_v53  ;;  %v3408_v16 = vcombine.low %v5588_v20, %v5588_v20  ;;  %v3410_v53 = vcombine.low %v5593_v22, %v5593_v22  ;;  %v5811_v20 = vld [vmem:[%s6337_s1 + $0x238] sm:$0xff]   ;;  %v6440_v22 = vmov 0  }
 0x1ce   :  { %3850 = vmatprep.subr.bf16.mxu0 %v5782_v5  ;;  %3872 = vmatprep.subr.bf16.mxu1 %v5788_v7  ;;  %v5804_v5 = vld [vmem:[%s6337_s1 + $0x180] sm:$0xff]   ;;  %v6438_v7 = vmov 0.0   ;;  %6439 = vst [vmem:[#allocation28_spill] sm:$0xff] %v5811_v20 }
 0x1cf   :  { %6437 = vst [vmem:[#allocation27_spill] sm:$0xff] %v5804_v5 }
 0x1d1   :  { %3851 = vmatpush3.bf16.msra.mxu0 %v5798_v18  ;;  %3873 = vmatpush3.bf16.msra.mxu1 %v5804_v5  ;;  %v5821_v5 = vld [vmem:[%s6337_s1 + $0x230] sm:$0xff]   ;;  %v4342_v18 = vld [vmem:[%s6339_s4 + $0x2ec] ss:$16 sps:$4 sm:$0xff]  }
 0x1d2   :  { %4079 = vmatprep.subr.bf16.mxu0 %v6438_v7  ;;  %6441 = vst [vmem:[#allocation29_spill] sm:$0xff] %v5821_v5 }
 0x1d4   :  { %1809 = vmatmul.mubr.bf16.vlgmr.msra.gmra.mxu0 %v3408_v16  ;;  %1849 = vmatmul.mubr.bf16.vlgmr.msra.gmra.mxu1 %v3410_v53  ;;  %v5828_v53 = vld [vmem:[%s6337_s1 + $0x228] sm:$0xff]   ;;  %v5835_v16 = vld [vmem:[%s6337_s1 + $0x220] sm:$0xff]  }
 0x1d5   :  { %4080 = vmatpush3.bf16.msra.mxu0 %v5811_v20  ;;  %4095 = vmatprep.mubr.msk.bf16.mxu0 %vm4563_vm0, %v6438_v7  ;;  %6442 = vst [vmem:[#allocation30_spill] sm:$0xff] %v5828_v53  ;;  %6443 = vst [vmem:[#allocation31_spill] sm:$0xff] %v5835_v16  ;;  %v5866_v20 = vld [vmem:[%s6337_s1 + $0x200] sm:$0xff]  }
 0x1d6   :  { %4081 = vmatprep.subr.bf16.mxu0 %v6438_v7  ;;  %2125 = vmatprep.mubr.bf16.mxu1 %v6440_v22  ;;  %6447 = vst [vmem:[#allocation35_spill] sm:$0xff] %v5866_v20 }
 0x1d9   :  { %4082 = vmatpush3.bf16.msra.mxu0 %v5821_v5  ;;  %v5842_v5 = vld [vmem:[%s6337_s1 + $0x218] sm:$0xff]  }
 0x1da   :  { %4083 = vmatprep.subr.bf16.mxu0 %v6438_v7  ;;  %6444 = vst [vmem:[#allocation32_spill] sm:$0xff] %v5842_v5 }
 0x1dd   :  { %4084 = vmatpush3.bf16.msra.mxu0 %v5828_v53  ;;  %v5849_v53 = vld [vmem:[%s6337_s1 + $0x210] sm:$0xff]  }
 0x1de   :  { %4085 = vmatprep.subr.bf16.mxu0 %v6438_v7  ;;  %6445 = vst [vmem:[#allocation33_spill] sm:$0xff] %v5849_v53 }
 0x1e1   :  { %4086 = vmatpush3.bf16.msra.mxu0 %v5835_v16  ;;  %v5856_v16 = vld [vmem:[%s6337_s1 + $0x208] sm:$0xff]  }
 0x1e2   :  { %4087 = vmatprep.subr.bf16.mxu0 %v6438_v7  ;;  %6446 = vst [vmem:[#allocation34_spill] sm:$0xff] %v5856_v16 }
 0x1e5   :  { %4088 = vmatpush3.bf16.msra.mxu0 %v5842_v5  ;;  %v4336_v5 = vld [vmem:[%s6338_s0 + $0x68] ss:$0 sps:$4 sm:$0xff]  }
 0x1e6   :  { %4089 = vmatprep.subr.bf16.mxu0 %v6438_v7 }
 0x1e9   :  { %4090 = vmatpush3.bf16.msra.mxu0 %v5849_v53  ;;  %v4339_v53 = vld [vmem:[%s6339_s4 + $0x2e4] ss:$16 sps:$4 sm:$0xff]  }
 0x1ea   :  { %4091 = vmatprep.subr.bf16.mxu0 %v6438_v7  ;;  %2093 = vmatprep.subr.bf16.mxu1 %v4339_v53  ;;  %v4351_v53 = vld [vmem:[%s6339_s4 + $0x2a4] ss:$16 sps:$4 sm:$0xff]  }
 0x1ed   :  { %4092 = vmatpush3.bf16.msra.mxu0 %v5856_v16  ;;  %v4337_v16 = vld [vmem:[%s6339_s4 + $0x2e0] ss:$16 sps:$4 sm:$0xff]  }
 0x1ee   :  { %4093 = vmatprep.subr.bf16.mxu0 %v6438_v7  ;;  %v4340_v7 = vld [vmem:[%s6339_s4 + $0x2e8] ss:$16 sps:$4 sm:$0xff]   ;;  %2094 = vmatpush1.bf16.msra.mxu1 %v4337_v16  ;;  %v4349_v16 = vld [vmem:[%s6339_s4 + $0x2a0] ss:$16 sps:$4 sm:$0xff]  }
 0x1f1   :  { %4094 = vmatpush3.bf16.msra.mxu0 %v5866_v20  ;;  %v4348_v20 = vld [vmem:[%s6339_s4 + $0x2cc] ss:$16 sps:$4 sm:$0xff]  }
 0x1f2   :  { %2134 = vmatprep.subr.bf16.mxu0 %v4342_v18  ;;  %v4354_v18 = vld [vmem:[%s6339_s4 + $0x2ac] ss:$16 sps:$4 sm:$0xff]  }
 0x1f4   :  { %4096 = vmatmul.mubr.bf16.vlgmr.msra.gmra.mxu0 %v4336_v5  ;;  %v4345_v5 = vld [vmem:[%s6339_s4 + $0x2c4] ss:$16 sps:$4 sm:$0xff]  }
 0x1f5   :  { %2166 = vmatprep.mubr.bf16.mxu0 %v6440_v22  ;;  %v4343_v22 = vld [vmem:[%s6339_s4 + $0x2c0] ss:$16 sps:$4 sm:$0xff]   ;;  %2135 = vmatpush1.bf16.msra.mxu0 %v4340_v7  ;;  %v4352_v7 = vld [vmem:[%s6339_s4 + $0x2a8] ss:$16 sps:$4 sm:$0xff]  }
 0x1f6   :  { %2095 = vmatprep.subr.bf16.mxu1 %v4345_v5  ;;  %2136 = vmatprep.subr.bf16.mxu0 %v4348_v20  ;;  %v4357_v5 = vld [vmem:[%s6339_s4 + $0x284] ss:$16 sps:$4 sm:$0xff]   ;;  %v4360_v20 = vld [vmem:[%s6339_s4 + $0x28c] ss:$16 sps:$4 sm:$0xff]  }
 0x1f7   :  { %2096 = vmatpush1.bf16.msra.mxu1 %v4343_v22  ;;  %v4355_v22 = vld [vmem:[%s6339_s4 + $0x280] ss:$16 sps:$4 sm:$0xff]  }
 0x1f8   :  { %2097 = vmatprep.subr.bf16.mxu1 %v4351_v53  ;;  %v4363_v53 = vld [vmem:[%s6339_s4 + $0x264] ss:$16 sps:$4 sm:$0xff]  }
 0x1f9   :  { %2137 = vmatpush1.bf16.msra.mxu0 %v4346_v14  ;;  %v4358_v14 = vld [vmem:[%s6339_s4 + $0x288] ss:$16 sps:$4 sm:$0xff]  }
 0x1fa   :  { %2138 = vmatprep.subr.bf16.mxu0 %v4354_v18  ;;  %v4366_v18 = vld [vmem:[%s6339_s4 + $0x26c] ss:$16 sps:$4 sm:$0xff]  }
 0x1fb   :  { %2098 = vmatpush1.bf16.msra.mxu1 %v4349_v16  ;;  %v4361_v16 = vld [vmem:[%s6339_s4 + $0x260] ss:$16 sps:$4 sm:$0xff]  }
 0x1fc   :  { %2099 = vmatprep.subr.bf16.mxu1 %v4357_v5  ;;  %v4369_v5 = vld [vmem:[%s6339_s4 + $0x244] ss:$16 sps:$4 sm:$0xff]  }
 0x1fd   :  { %2139 = vmatpush1.bf16.msra.mxu0 %v4352_v7  ;;  %v4364_v7 = vld [vmem:[%s6339_s4 + $0x268] ss:$16 sps:$4 sm:$0xff]  }
 0x1fe   :  { %2140 = vmatprep.subr.bf16.mxu0 %v4360_v20  ;;  %v4372_v20 = vld [vmem:[%s6339_s4 + $0x24c] ss:$16 sps:$4 sm:$0xff]  }
 0x1ff   :  { %2100 = vmatpush1.bf16.msra.mxu1 %v4355_v22  ;;  %v4367_v22 = vld [vmem:[%s6339_s4 + $0x240] ss:$16 sps:$4 sm:$0xff]  }
 0x200   :  { %2101 = vmatprep.subr.bf16.mxu1 %v4363_v53 }
 0x201   :  { %2141 = vmatpush1.bf16.msra.mxu0 %v4358_v14  ;;  %v4370_v14 = vld [vmem:[%s6339_s4 + $0x248] ss:$16 sps:$4 sm:$0xff]  }
 0x202   :  { %2142 = vmatprep.subr.bf16.mxu0 %v4366_v18 }
 0x203   :  { %2102 = vmatpush1.bf16.msra.mxu1 %v4361_v16  ;;  %v4378_v16 = vld [vmem:[%s6339_s4 + $0x22c] ss:$16 sps:$4 sm:$0xff]  }
 0x204   :  { %2103 = vmatprep.subr.bf16.mxu1 %v4369_v5  ;;  %v4376_v5 = vld [vmem:[%s6339_s4 + $0x228] ss:$16 sps:$4 sm:$0xff]  }
 0x205   :  { %2143 = vmatpush1.bf16.msra.mxu0 %v4364_v7  ;;  %v4373_v7 = vld [vmem:[%s6339_s4 + $0x220] ss:$16 sps:$4 sm:$0xff]  }
 0x206   :  { %2144 = vmatprep.subr.bf16.mxu0 %v4372_v20 }
 0x207   :  { %2104 = vmatpush1.bf16.msra.mxu1 %v4367_v22 }
 0x208   :  { %2105 = vmatprep.subr.bf16.mxu1 %v4375_v45  ;;  %v4382_v45 = vld [vmem:[%s6339_s4 + $0x208] ss:$16 sps:$4 sm:$0xff]  }
 0x209   :  { %2145 = vmatpush1.bf16.msra.mxu0 %v4370_v14 }
 0x20a   :  { %2146 = vmatprep.subr.bf16.mxu0 %v4378_v16 }
 0x20b   :  { %2106 = vmatpush1.bf16.msra.mxu1 %v4373_v7 }
 0x20c   :  { %2107 = vmatprep.subr.bf16.mxu1 %v4381_v41 }
 0x20d   :  { %2147 = vmatpush1.bf16.msra.mxu0 %v4376_v5 }
 0x20e   :  { %2148 = vmatprep.subr.bf16.mxu0 %v4384_v40 }
 0x20f   :  { %2108 = vmatpush1.bf16.msra.mxu1 %v4379_v39 }
 0x210   :  { %3889 = vmatprep.subr.bf16.mxu1 %v5400_v42 }
 0x211   :  { %2149 = vmatpush1.bf16.msra.mxu0 %v4382_v45 }
 0x212   :  { %3911 = vmatprep.subr.bf16.mxu0 %v5406_v43 }
 0x234   :  { %v1368_v53 = vpop.f32.mrf.mxu0  ;;  %v1409_v18 = vpop.f32.mrf.mxu1 }
 0x236   :  { %v1370_v20 = vpop.f32.mrf.mxu0  ;;  %v1411_v22 = vpop.f32.mrf.mxu1 }
 0x238   :  { %v1372_v14 = vpop.f32.mrf.mxu0  ;;  %v1413_v44 = vpop.f32.mrf.mxu1 }
 0x23a   :  { %v1373_v16 = vpop.f32.mrf.mxu0  ;;  %v1414_v7 = vpop.f32.mrf.mxu1 }
 0x254   :  { %v1610_v44 = vpop.f32.mrf.mxu0  ;;  %v1651_v5 = vpop.f32.mrf.mxu1 }
 0x255   :  { %v5968_v14 = vadd.f32 %v1610_v44, %v1368_v53  ;;  %v5970_v38 = vadd.f32 %v1651_v5, %v1409_v18 }
 0x256   :  { %v1612_v31 = vpop.f32.mrf.mxu0  ;;  %v1653_v30 = vpop.f32.mrf.mxu1 }
 0x257   :  { %6448 = vst [vmem:[#allocation36_spill] sm:$0xff] %v5968_v14  ;;  %6449 = vst [vmem:[#allocation37_spill] sm:$0xff] %v5970_v38  ;;  %v5972_v29 = vadd.f32 %v1612_v31, %v1370_v20  ;;  %v5974_v16 = vadd.f32 %v1653_v30, %v1411_v22 }
 0x258   :  { %v1614_v41 = vpop.f32.mrf.mxu0  ;;  %v1655_v40 = vpop.f32.mrf.mxu1 }
 0x259   :  { %6450 = vst [vmem:[#allocation38_spill] sm:$0xff] %v5972_v29  ;;  %6451 = vst [vmem:[#allocation39_spill] sm:$0xff] %v5974_v16 }
 0x25a   :  { %v1615_v39 = vpop.f32.mrf.mxu0  ;;  %v1656_v45 = vpop.f32.mrf.mxu1 }
 0x274   :  { %v3808_v7 = vpop.f32.mrf.mxu0  ;;  %v3830_v42 = vpop.f32.mrf.mxu1 }
 0x276   :  { %v3809_v28 = vpop.f32.mrf.mxu0  ;;  %v3831_v43 = vpop.f32.mrf.mxu1 }
 0x277   :  { %v3810_v41 = vadd.f32 %v3809_v28, %v3808_v7  ;;  %v3832_v40 = vadd.f32 %v3831_v43, %v3830_v42  ;;  %v3477_v28 = vld [vmem:[%s6338_s0 + $0x6c] sm:$0xff]  ;;  %v6486_v7 = vld [vmem:[#allocation34_spill] sm:$0xff] }
 0x278   :  { %v3811_v27 = vpop.f32.mrf.mxu0  ;;  %v3833_v23 = vpop.f32.mrf.mxu1  ;;  %v4393_v42 = vld [vmem:[%s6338_s0 + $0x8c] ss:$0 sps:$4 sm:$0xff]  }
 0x279   :  { %v1771_v45 = vadd.f32 %v3832_v40, %v3810_v41  ;;  %v6487_v43 = vld [vmem:[#allocation35_spill] sm:$0xff]  ;;  %v4400_v40 = vld [vmem:[%s6339_s4 + $0x3c0] ss:$16 sps:$4 sm:$0xff]  }
 0x27a   :  { %v3812_v53 = vpop.f32.mrf.mxu0  ;;  %v3834_v44 = vpop.f32.mrf.mxu1  ;;  %v4405_v41 = vld [vmem:[%s6339_s4 + $0x3cc] ss:$16 sps:$4 sm:$0xff]  }
 0x294   :  { %v3852_v18 = vpop.f32.mrf.mxu0  ;;  %v3874_v5 = vpop.f32.mrf.mxu1 }
 0x296   :  { %v3853_v38 = vpop.f32.mrf.mxu0  ;;  %v3875_v14 = vpop.f32.mrf.mxu1 }
 0x297   :  { %v3854_v39 = vadd.f32 %v3853_v38, %v3852_v18  ;;  %v3876_v29 = vadd.f32 %v3875_v14, %v3874_v5  ;;  %v3478_v38 = vld [vmem:[%s6338_s0 + $0x74] sm:$0xff]  ;;  %v4394_v18 = vld [vmem:[%s6339_s4 + $0x3e0] ss:$16 sps:$4 sm:$0xff]  }
 0x298   :  { %v3855_v31 = vpop.f32.mrf.mxu0  ;;  %v3877_v20 = vpop.f32.mrf.mxu1  ;;  %v4396_v5 = vld [vmem:[%s6339_s4 + $0x3e4] ss:$16 sps:$4 sm:$0xff]  }
 0x299   :  { %v1811_v16 = vadd.f32 %v3854_v39, %v1771_v45  ;;  %v4397_v20 = vld [vmem:[%s6339_s4 + $0x3e8] ss:$16 sps:$4 sm:$0xff]   ;;  %v4408_v45 = vld [vmem:[%s6339_s4 + $0x3a4] ss:$16 sps:$4 sm:$0xff]  }
 0x29a   :  { %v3856_v30 = vpop.f32.mrf.mxu0  ;;  %v3878_v22 = vpop.f32.mrf.mxu1  ;;  %v4403_v39 = vld [vmem:[%s6339_s4 + $0x3c8] ss:$16 sps:$4 sm:$0xff]  }
 0x29b   :  { %v1851_v25 = vadd.f32 %v3876_v29, %v1811_v16  ;;  %v3483_v29 = vcombine.high %v3477_v28, %v3477_v28  ;;  %v3485_v16 = vcombine.high %v3478_v38, %v3478_v38  ;;  %v4399_v30 = vld [vmem:[%s6339_s4 + $0x3ec] ss:$16 sps:$4 sm:$0xff]   ;;  %v4402_v22 = vld [vmem:[%s6339_s4 + $0x3c4] ss:$16 sps:$4 sm:$0xff]  }
 0x2b4   :  { %v1890_v21 = vpop.f32.mrf.mxu0 }
 0x2b5   :  { %v1891_v27 = vadd.f32 %v1890_v21, %v1851_v25  ;;  %v6484_v21 = vld [vmem:[#allocation32_spill] sm:$0xff]  ;;  %v6485_v25 = vld [vmem:[#allocation33_spill] sm:$0xff] }
 0x2b6   :  { %v4097_v23 = vpop.f32.mrf.mxu0 }
 0x2b7   :  { %v1896_v53 = vmul.f32 %v5283_v32, %v1891_v27  ;;  %v3482_v32 = vcombine.low %v3477_v28, %v3477_v28  ;;  %v4411_v27 = vld [vmem:[%s6339_s4 + $0x3ac] ss:$16 sps:$4 sm:$0xff]   ;;  %v4406_v23 = vld [vmem:[%s6339_s4 + $0x3a0] ss:$16 sps:$4 sm:$0xff]  }
 0x2b8   :  { %v1893_v44 = vpop.f32.mrf.mxu0  ;;  %v4412_v28 = vld [vmem:[%s6339_s4 + $0x380] ss:$16 sps:$4 sm:$0xff]  }
 0x2b9   :  { %v1897_v19 = vadd.f32 %v5289_v34, %v1896_v53  ;;  %v3484_v34 = vcombine.low %v3478_v38, %v3478_v38  ;;  %v4409_v53 = vld [vmem:[%s6339_s4 + $0x3a8] ss:$16 sps:$4 sm:$0xff]   ;;  %v4414_v44 = vld [vmem:[%s6339_s4 + $0x384] ss:$16 sps:$4 sm:$0xff]  }
 0x2ba   :  { %v4098_v17 = vpop.f32.mrf.mxu0  ;;  %v4415_v38 = vld [vmem:[%s6339_s4 + $0x388] ss:$16 sps:$4 sm:$0xff]  }
 0x2bb   :  { %v1898_v31 = vmax.f32 %v1897_v19, 0.0  ;;  %v6482_v17 = vld [vmem:[#allocation30_spill] sm:$0xff]  ;;  %v6483_v19 = vld [vmem:[#allocation31_spill] sm:$0xff] }
 0x2bd   :  { %v1899_v14 = vpack.c.bf16 %v1898_v31, %v1898_v31  ;;  %v4417_v31 = vld [vmem:[%s6339_s4 + $0x38c] ss:$16 sps:$4 sm:$0xff]  }
 0x2bf   :  { %2126 = vmatmul.mubr.bf16.vlgmr.msra.gmra.mxu1 %v1899_v14  ;;  %2167 = vmatmul.mubr.bf16.vlgmr.msra.gmra.mxu0 %v1899_v14  ;;  %v4420_v14 = vld [vmem:[%s6339_s4 + $0x364] ss:$16 sps:$4 sm:$0xff]  }
 0x2c0   :  { %3890 = vmatpush3.bf16.msra.mxu1 %v5416_v46  ;;  %3912 = vmatpush3.bf16.msra.mxu0 %v5422_v47  ;;  %v3479_v46 = vld [vmem:[%s6338_s0 + $0x7c] sm:$0xff]  ;;  %v3480_v47 = vld [vmem:[%s6338_s0 + $0x84] sm:$0xff] }
 0x2c1   :  { %3891 = vmatprep.subr.bf16.mxu1 %v5428_v48  ;;  %3913 = vmatprep.subr.bf16.mxu0 %v5434_v49  ;;  %v3487_v48 = vcombine.high %v3479_v46, %v3479_v46  ;;  %v3489_v49 = vcombine.high %v3480_v47, %v3480_v47 }
 0x2c2   :  { %2249 = vmatprep.mubr.bf16.mxu1 %v3483_v29  ;;  %2289 = vmatprep.mubr.bf16.mxu0 %v3485_v16  ;;  %v4423_v29 = vld [vmem:[%s6339_s4 + $0x36c] ss:$16 sps:$4 sm:$0xff]   ;;  %v4418_v16 = vld [vmem:[%s6339_s4 + $0x360] ss:$16 sps:$4 sm:$0xff]  }
 0x2c4   :  { %3892 = vmatpush3.bf16.msra.mxu1 %v5440_v50  ;;  %3914 = vmatpush3.bf16.msra.mxu0 %v5446_v51  ;;  %v6452_v50 = vld [vmem:[#allocation2_spill] sm:$0xff]  ;;  %v6453_v51 = vld [vmem:[#allocation3_spill] sm:$0xff] }
 0x2c5   :  { %3893 = vmatprep.subr.bf16.mxu1 %v5452_v52  ;;  %3915 = vmatprep.subr.bf16.mxu0 %v5458_v54  ;;  %v6454_v52 = vld [vmem:[#allocation4_spill] sm:$0xff]  ;;  %v6455_v54 = vld [vmem:[#allocation5_spill] sm:$0xff] }
 0x2c8   :  { %3894 = vmatpush3.bf16.msra.mxu1 %v5464_v55  ;;  %3916 = vmatpush3.bf16.msra.mxu0 %v5470_v56  ;;  %v6456_v55 = vld [vmem:[#allocation6_spill] sm:$0xff]  ;;  %v6457_v56 = vld [vmem:[#allocation7_spill] sm:$0xff] }
 0x2c9   :  { %3895 = vmatprep.subr.bf16.mxu1 %v5476_v57  ;;  %3917 = vmatprep.subr.bf16.mxu0 %v5482_v58  ;;  %v6458_v57 = vld [vmem:[#allocation8_spill] sm:$0xff]  ;;  %v6459_v58 = vld [vmem:[#allocation9_spill] sm:$0xff] }
 0x2cc   :  { %3896 = vmatpush3.bf16.msra.mxu1 %v5488_v60  ;;  %3918 = vmatpush3.bf16.msra.mxu0 %v5494_v61  ;;  %v6460_v60 = vld [vmem:[#allocation10_spill] sm:$0xff]  ;;  %v6461_v61 = vld [vmem:[#allocation11_spill] sm:$0xff] }
 0x2cd   :  { %3897 = vmatprep.subr.bf16.mxu1 %v5500_v62  ;;  %3919 = vmatprep.subr.bf16.mxu0 %v5506_v63  ;;  %v6462_v62 = vld [vmem:[#allocation12_spill] sm:$0xff]  ;;  %v6463_v63 = vld [vmem:[#allocation13_spill] sm:$0xff] }
 0x2d0   :  { %3898 = vmatpush3.bf16.msra.mxu1 %v5512_v33  ;;  %3920 = vmatpush3.bf16.msra.mxu0 %v5518_v35  ;;  %v6464_v33 = vld [vmem:[#allocation14_spill] sm:$0xff]  ;;  %v6465_v35 = vld [vmem:[#allocation15_spill] sm:$0xff] }
 0x2d1   :  { %3899 = vmatprep.subr.bf16.mxu1 %v5524_v36  ;;  %3921 = vmatprep.subr.bf16.mxu0 %v5530_v37  ;;  %v6466_v36 = vld [vmem:[#allocation16_spill] sm:$0xff]  ;;  %v6467_v37 = vld [vmem:[#allocation17_spill] sm:$0xff] }
 0x2d4   :  { %3900 = vmatpush3.bf16.msra.mxu1 %v5536_v59  ;;  %3922 = vmatpush3.bf16.msra.mxu0 %v5542_v0  ;;  %v6468_v59 = vld [vmem:[#allocation18_spill] sm:$0xff]  ;;  %v6469_v0 = vld [vmem:[#allocation19_spill] sm:$0xff] }
 0x2d5   :  { %3901 = vmatprep.subr.bf16.mxu1 %v5548_v2  ;;  %3923 = vmatprep.subr.bf16.mxu0 %v5554_v4  ;;  %v6470_v2 = vld [vmem:[#allocation20_spill] sm:$0xff]  ;;  %v6471_v4 = vld [vmem:[#allocation21_spill] sm:$0xff] }
 0x2d8   :  { %3902 = vmatpush3.bf16.msra.mxu1 %v5560_v6  ;;  %3924 = vmatpush3.bf16.msra.mxu0 %v5566_v8  ;;  %v6472_v6 = vld [vmem:[#allocation22_spill] sm:$0xff]  ;;  %v6473_v8 = vld [vmem:[#allocation23_spill] sm:$0xff] }
 0x2d9   :  { %3903 = vmatprep.subr.bf16.mxu1 %v5572_v10  ;;  %3925 = vmatprep.subr.bf16.mxu0 %v5578_v12  ;;  %v6474_v10 = vld [vmem:[#allocation24_spill] sm:$0xff]  ;;  %v6475_v12 = vld [vmem:[#allocation25_spill] sm:$0xff] }
 0x2dc   :  { %3904 = vmatpush3.bf16.msra.mxu1 %v5598_v24  ;;  %3926 = vmatpush3.bf16.msra.mxu0 %v5604_v26  ;;  %v3486_v24 = vcombine.low %v3479_v46, %v3479_v46  ;;  %v3488_v26 = vcombine.low %v3480_v47, %v3480_v47  ;;  %v4429_v46 = vld [vmem:[%s6339_s4 + $0x34c] ss:$16 sps:$4 sm:$0xff]   ;;  %v4424_v47 = vld [vmem:[%s6339_s4 + $0x340] ss:$16 sps:$4 sm:$0xff]  }
 0x2dd   :  { %3933 = vmatprep.subr.bf16.mxu1 %v5610_v1  ;;  %3955 = vmatprep.subr.bf16.mxu0 %v5616_v3  ;;  %v6476_v1 = vld [vmem:[#allocation26_spill] sm:$0xff]  ;;  %v6477_v3 = vld [vmem:[#allocation27_spill] sm:$0xff] }
 0x2df   :  { %2250 = vmatmul.mubr.bf16.vlgmr.msra.gmra.mxu1 %v3482_v32  ;;  %2290 = vmatmul.mubr.bf16.vlgmr.msra.gmra.mxu0 %v3484_v34  ;;  %v4421_v32 = vld [vmem:[%s6339_s4 + $0x368] ss:$16 sps:$4 sm:$0xff]   ;;  %v4426_v34 = vld [vmem:[%s6339_s4 + $0x344] ss:$16 sps:$4 sm:$0xff]  }
 0x2e0   :  { %3934 = vmatpush3.bf16.msra.mxu1 %v5626_v9  ;;  %3956 = vmatpush3.bf16.msra.mxu0 %v5632_v11  ;;  %v6478_v9 = vmov 0.0   ;;  %v6479_v11 = vld [vmem:[#allocation28_spill] sm:$0xff] }
 0x2e1   :  { %3935 = vmatprep.subr.bf16.mxu1 %v5638_v13  ;;  %3957 = vmatprep.subr.bf16.mxu0 %v5644_v15  ;;  %v6480_v13 = vmov 0   ;;  %v6481_v15 = vld [vmem:[#allocation29_spill] sm:$0xff] }
 0x2e2   :  { %2329 = vmatprep.mubr.bf16.mxu1 %v3487_v48  ;;  %2369 = vmatprep.mubr.bf16.mxu0 %v3489_v49  ;;  %v4427_v48 = vld [vmem:[%s6339_s4 + $0x348] ss:$16 sps:$4 sm:$0xff]   ;;  %v4432_v49 = vld [vmem:[%s6339_s4 + $0x324] ss:$16 sps:$4 sm:$0xff]  }
 0x2e4   :  { %3936 = vmatpush3.bf16.msra.mxu1 %v6452_v50  ;;  %3958 = vmatpush3.bf16.msra.mxu0 %v6453_v51  ;;  %v4435_v50 = vld [vmem:[%s6339_s4 + $0x32c] ss:$16 sps:$4 sm:$0xff]   ;;  %v4430_v51 = vld [vmem:[%s6339_s4 + $0x320] ss:$16 sps:$4 sm:$0xff]  }
 0x2e5   :  { %3937 = vmatprep.subr.bf16.mxu1 %v6454_v52  ;;  %3959 = vmatprep.subr.bf16.mxu0 %v6455_v54  ;;  %v4433_v52 = vld [vmem:[%s6339_s4 + $0x328] ss:$16 sps:$4 sm:$0xff]   ;;  %v4438_v54 = vld [vmem:[%s6339_s4 + $0x304] ss:$16 sps:$4 sm:$0xff]  }
 0x2e8   :  { %3938 = vmatpush3.bf16.msra.mxu1 %v6456_v55  ;;  %3960 = vmatpush3.bf16.msra.mxu0 %v6457_v56  ;;  %v4441_v55 = vld [vmem:[%s6339_s4 + $0x30c] ss:$16 sps:$4 sm:$0xff]   ;;  %v4436_v56 = vld [vmem:[%s6339_s4 + $0x300] ss:$16 sps:$4 sm:$0xff]  }
 0x2e9   :  { %3939 = vmatprep.subr.bf16.mxu1 %v6458_v57  ;;  %3961 = vmatprep.subr.bf16.mxu0 %v6459_v58  ;;  %v4439_v57 = vld [vmem:[%s6339_s4 + $0x308] ss:$16 sps:$4 sm:$0xff]  }
 0x2ea   :  { %v4442_v58 = vld [vmem:[%s6342_s6 + $0x78] sm:$0xff]  }
 0x2ec   :  { %3940 = vmatpush3.bf16.msra.mxu1 %v6460_v60  ;;  %3962 = vmatpush3.bf16.msra.mxu0 %v6461_v61  ;;  %v4443_v60 = vld [vmem:[%s6342_s6 + $0xf8] sm:$0xff]  }
 0x2ed   :  { %3941 = vmatprep.subr.bf16.mxu1 %v6462_v62  ;;  %3963 = vmatprep.subr.bf16.mxu0 %v6463_v63  ;;  %v6488_v63 = vld [vmem:[#allocation36_spill] sm:$0xff] }
 0x2f0   :  { %3942 = vmatpush3.bf16.msra.mxu1 %v6464_v33  ;;  %3964 = vmatpush3.bf16.msra.mxu0 %v6465_v35  ;;  %v6489_v35 = vld [vmem:[#allocation37_spill] sm:$0xff] }
 0x2f1   :  { %3943 = vmatprep.subr.bf16.mxu1 %v6466_v36  ;;  %3965 = vmatprep.subr.bf16.mxu0 %v6467_v37 }
 0x2f4   :  { %3944 = vmatpush3.bf16.msra.mxu1 %v6468_v59  ;;  %3966 = vmatpush3.bf16.msra.mxu0 %v6469_v0  ;;  %v6490_v0 = vld [vmem:[#allocation38_spill] sm:$0xff] }
 0x2f5   :  { %3945 = vmatprep.subr.bf16.mxu1 %v6470_v2  ;;  %3967 = vmatprep.subr.bf16.mxu0 %v6471_v4  ;;  %v6491_v4 = vld [vmem:[#allocation39_spill] sm:$0xff] }
 0x2f8   :  { %3946 = vmatpush3.bf16.msra.mxu1 %v6472_v6  ;;  %3968 = vmatpush3.bf16.msra.mxu0 %v6473_v8 }
 0x2f9   :  { %3947 = vmatprep.subr.bf16.mxu1 %v6474_v10  ;;  %3969 = vmatprep.subr.bf16.mxu0 %v6475_v12 }
 0x2fc   :  { %3948 = vmatpush3.bf16.msra.mxu1 %v6476_v1  ;;  %3970 = vmatpush3.bf16.msra.mxu0 %v6477_v3 }
 0x2fd   :  { %4099 = vmatprep.subr.bf16.mxu1 %v6478_v9  ;;  %2614 = vmatprep.subr.bf16.mxu0 %v4396_v5 }
 0x2ff   :  { %2330 = vmatmul.mubr.bf16.vlgmr.msra.gmra.mxu1 %v3486_v24  ;;  %2370 = vmatmul.mubr.bf16.vlgmr.msra.gmra.mxu0 %v3488_v26 }
 0x300   :  { %4100 = vmatpush3.bf16.msra.mxu1 %v6479_v11  ;;  %4115 = vmatprep.mubr.msk.bf16.mxu1 %vm4563_vm0, %v6478_v9 }
 0x301   :  { %4101 = vmatprep.subr.bf16.mxu1 %v6478_v9  ;;  %2646 = vmatprep.mubr.bf16.mxu0 %v6480_v13 }
 0x302   :  { %2615 = vmatpush1.bf16.msra.mxu0 %v4394_v18 }
 0x303   :  { %2616 = vmatprep.subr.bf16.mxu0 %v4402_v22 }
 0x304   :  { %4102 = vmatpush3.bf16.msra.mxu1 %v6481_v15 }
 0x305   :  { %4103 = vmatprep.subr.bf16.mxu1 %v6478_v9 }
 0x306   :  { %2617 = vmatpush1.bf16.msra.mxu0 %v4400_v40 }
 0x307   :  { %2618 = vmatprep.subr.bf16.mxu0 %v4408_v45 }
 0x308   :  { %4104 = vmatpush3.bf16.msra.mxu1 %v6482_v17 }
 0x309   :  { %4105 = vmatprep.subr.bf16.mxu1 %v6478_v9 }
 0x30a   :  { %2619 = vmatpush1.bf16.msra.mxu0 %v4406_v23 }
 0x30b   :  { %2620 = vmatprep.subr.bf16.mxu0 %v4414_v44 }
 0x30c   :  { %4106 = vmatpush3.bf16.msra.mxu1 %v6483_v19 }
 0x30d   :  { %4107 = vmatprep.subr.bf16.mxu1 %v6478_v9 }
 0x30e   :  { %2621 = vmatpush1.bf16.msra.mxu0 %v4412_v28 }
 0x30f   :  { %2622 = vmatprep.subr.bf16.mxu0 %v4420_v14  ;;  %v4561_v14 = vld [vmem:[%s6341_s3] ss:$0 sm:$0xff] }
 0x310   :  { %4108 = vmatpush3.bf16.msra.mxu1 %v6484_v21 }
 0x311   :  { %4109 = vmatprep.subr.bf16.mxu1 %v6478_v9 }
 0x312   :  { %2623 = vmatpush1.bf16.msra.mxu0 %v4418_v16 }
 0x313   :  { %2624 = vmatprep.subr.bf16.mxu0 %v4426_v34  ;;  %v4444_v34 = vld [vmem:[%s6342_s6 + $0x38] sm:$0xff]  }
 0x314   :  { %4110 = vmatpush3.bf16.msra.mxu1 %v6485_v25 }
 0x315   :  { %4111 = vmatprep.subr.bf16.mxu1 %v6478_v9 }
 0x316   :  { %2625 = vmatpush1.bf16.msra.mxu0 %v4424_v47 }
 0x317   :  { %2626 = vmatprep.subr.bf16.mxu0 %v4432_v49  ;;  %v4447_v49 = vld [vmem:[%s6342_s6 + $0xf0] sm:$0xff]  }
 0x318   :  { %4112 = vmatpush3.bf16.msra.mxu1 %v6486_v7 }
 0x319   :  { %4113 = vmatprep.subr.bf16.mxu1 %v6478_v9 }
 0x31a   :  { %2627 = vmatpush1.bf16.msra.mxu0 %v4430_v51  ;;  %v4449_v51 = vld [vmem:[%s6342_s6 + $0xb0] sm:$0xff]  }
 0x31b   :  { %2628 = vmatprep.subr.bf16.mxu0 %v4438_v54  ;;  %v4451_v54 = vld [vmem:[%s6342_s6 + $0xe8] sm:$0xff]  }
 0x31c   :  { %4114 = vmatpush3.bf16.msra.mxu1 %v6487_v43 }
 0x31d   :  { %2655 = vmatprep.subr.bf16.mxu1 %v4399_v30 }
 0x31e   :  { %2629 = vmatpush1.bf16.msra.mxu0 %v4436_v56  ;;  %v4453_v56 = vld [vmem:[%s6342_s6 + $0xa8] sm:$0xff]  }
 0x31f   :  { %4116 = vmatmul.mubr.bf16.vlgmr.msra.gmra.mxu1 %v4393_v42  ;;  %3986 = vmatprep.subr.bf16.mxu0 %v4442_v58  ;;  %v4455_v58 = vld [vmem:[%s6342_s6 + $0xe0] sm:$0xff]  }
 0x320   :  { %2687 = vmatprep.mubr.bf16.mxu1 %v6480_v13  ;;  %2656 = vmatpush1.bf16.msra.mxu1 %v4397_v20 }
 0x321   :  { %2657 = vmatprep.subr.bf16.mxu1 %v4405_v41 }
 0x324   :  { %2658 = vmatpush1.bf16.msra.mxu1 %v4403_v39 }
 0x325   :  { %2659 = vmatprep.subr.bf16.mxu1 %v4411_v27 }
 0x328   :  { %2660 = vmatpush1.bf16.msra.mxu1 %v4409_v53 }
 0x329   :  { %2661 = vmatprep.subr.bf16.mxu1 %v4417_v31  ;;  %v4560_v31 = vld [vmem:[%s6340_s2] ss:$0 sm:$0xff] }
 0x32c   :  { %2662 = vmatpush1.bf16.msra.mxu1 %v4415_v38 }
 0x32d   :  { %2663 = vmatprep.subr.bf16.mxu1 %v4423_v29 }
 0x330   :  { %2664 = vmatpush1.bf16.msra.mxu1 %v4421_v32 }
 0x331   :  { %2665 = vmatprep.subr.bf16.mxu1 %v4429_v46  ;;  %v4445_v46 = vld [vmem:[%s6342_s6 + $0xb8] sm:$0xff]  }
 0x334   :  { %2666 = vmatpush1.bf16.msra.mxu1 %v4427_v48  ;;  %v4446_v48 = vld [vmem:[%s6342_s6 + $0x70] sm:$0xff]  }
 0x335   :  { %2667 = vmatprep.subr.bf16.mxu1 %v4435_v50  ;;  %v4448_v50 = vld [vmem:[%s6342_s6 + $0x30] sm:$0xff]  }
 0x338   :  { %2668 = vmatpush1.bf16.msra.mxu1 %v4433_v52  ;;  %v4450_v52 = vld [vmem:[%s6342_s6 + $0x68] sm:$0xff]  }
 0x339   :  { %2669 = vmatprep.subr.bf16.mxu1 %v4441_v55  ;;  %v4452_v55 = vld [vmem:[%s6342_s6 + $0x28] sm:$0xff]  }
 0x33c   :  { %2670 = vmatpush1.bf16.msra.mxu1 %v4439_v57  ;;  %v4454_v57 = vld [vmem:[%s6342_s6 + $0x60] sm:$0xff]  }
 0x33d   :  { %4008 = vmatprep.subr.bf16.mxu1 %v4443_v60  ;;  %v4456_v60 = vld [vmem:[%s6342_s6 + $0x20] sm:$0xff]  }
 0x37f   :  { %v2127_v61 = vpop.f32.mrf.mxu1  ;;  %v2168_v62 = vpop.f32.mrf.mxu0 }
 0x380   :  { %v6178_v33 = vadd.f32 %v2127_v61, %v6488_v63  ;;  %v6181_v36 = vadd.f32 %v2168_v62, %v6489_v35  ;;  %v4457_v61 = vld [vmem:[%s6342_s6 + $0xa0] sm:$0xff]   ;;  %v4458_v62 = vld [vmem:[%s6342_s6 + $0x58] sm:$0xff]  }
 0x381   :  { %v2129_v37 = vpop.f32.mrf.mxu1  ;;  %v2170_v59 = vpop.f32.mrf.mxu0  ;;  %v4459_v63 = vld [vmem:[%s6342_s6 + $0xd8] sm:$0xff]  }
 0x382   :  { %v6184_v2 = vadd.f32 %v2129_v37, %v6490_v0  ;;  %v6187_v6 = vadd.f32 %v2170_v59, %v6491_v4  ;;  %v4460_v35 = vld [vmem:[%s6342_s6 + $0x18] sm:$0xff]   ;;  %v4462_v59 = vld [vmem:[%s6342_s6 + $0x50] sm:$0xff]  }
 0x383   :  { %v2131_v8 = vpop.f32.mrf.mxu1  ;;  %v2172_v10 = vpop.f32.mrf.mxu0  ;;  %v4461_v37 = vld [vmem:[%s6342_s6 + $0x98] sm:$0xff]   ;;  %v4463_v0 = vld [vmem:[%s6342_s6 + $0xd0] sm:$0xff]  }
 0x384   :  { %v4464_v4 = vld [vmem:[%s6342_s6 + $0x10] sm:$0xff]   ;;  %v4466_v10 = vld [vmem:[%s6342_s6 + $0x48] sm:$0xff]  }
 0x385   :  { %v2132_v12 = vpop.f32.mrf.mxu1  ;;  %v2173_v24 = vpop.f32.mrf.mxu0  ;;  %v4465_v8 = vld [vmem:[%s6342_s6 + $0x90] sm:$0xff]  }
 0x386   :  { %v4467_v12 = vld [vmem:[%s6342_s6 + $0xc8] sm:$0xff]  }
 0x387   :  { %v4468_v24 = vld [vmem:[%s6342_s6 + $0x8] sm:$0xff]  }
 0x39f   :  { %v3905_v26 = vpop.f32.mrf.mxu1  ;;  %v3927_v1 = vpop.f32.mrf.mxu0 }
 0x3a1   :  { %v3906_v3 = vpop.f32.mrf.mxu1  ;;  %v3928_v11 = vpop.f32.mrf.mxu0 }
 0x3a2   :  { %v3907_v30 = vadd.f32 %v3906_v3, %v3905_v26  ;;  %v3929_v22 = vadd.f32 %v3928_v11, %v3927_v1  ;;  %v4469_v26 = vld [vmem:[%s6342_s6 + $0x88] sm:$0xff]   ;;  %v4470_v1 = vld [vmem:[%s6342_s6 + $0x40] sm:$0xff]  }
 0x3a3   :  { %v3908_v13 = vpop.f32.mrf.mxu1  ;;  %v3930_v15 = vpop.f32.mrf.mxu0  ;;  %v4471_v3 = vld [vmem:[%s6342_s6 + $0xc0] sm:$0xff]  }
 0x3a4   :  { %v2292_v40 = vadd.f32 %v3929_v22, %v3907_v30  ;;  %v4472_v11 = vld [vmem:[%s6342_s6] sm:$0xff]   ;;  %v2702_v15 = vlaneseq }
 0x3a5   :  { %v3909_v17 = vpop.f32.mrf.mxu1  ;;  %v3931_v19 = vpop.f32.mrf.mxu0  ;;  %v4473_v13 = vld [vmem:[%s6342_s6 + $0x80] sm:$0xff]  }
 0x3a6   :  { %v2703_v17 = vshrl.u32 %v2702_v15, 7 }
 0x3a8   :  { %v2704_v19 = vsub.s32 0, %v2703_v17 }
 0x3bf   :  { %v3949_v21 = vpop.f32.mrf.mxu1  ;;  %v3971_v25 = vpop.f32.mrf.mxu0 }
 0x3c1   :  { %v3950_v7 = vpop.f32.mrf.mxu1  ;;  %v3972_v42 = vpop.f32.mrf.mxu0 }
 0x3c2   :  { %v3951_v41 = vadd.f32 %v3950_v7, %v3949_v21  ;;  %v3973_v45 = vadd.f32 %v3972_v42, %v3971_v25  ;;  %v2712_v21 = vsub.s32 2, %v2703_v17  ;;  %v2700_v25 = vld [vmem:[%s6344_s5] sm:$0xf]  ;;  %v2708_v7 = vsub.s32 1, %v2703_v17 }
 0x3c3   :  { %v3952_v43 = vpop.f32.mrf.mxu1  ;;  %v3974_v18 = vpop.f32.mrf.mxu0  ;;  %v2716_v42 = vsub.s32 3, %v2703_v17 }
 0x3c4   :  { %v2332_v39 = vadd.f32 %v3951_v41, %v2292_v40  ;;  %v2705_v43 = vrot.slane %v2700_v25, %v2704_v19  ;;  %v2713_v18 = vrot.slane %v2700_v25, %v2712_v21  ;;  %v2709_v41 = vrot.slane %v2700_v25, %v2708_v7 }
 0x3c5   :  { %v3953_v5 = vpop.f32.mrf.mxu1  ;;  %v3975_v20 = vpop.f32.mrf.mxu0  ;;  %v2717_v40 = vrot.slane %v2700_v25, %v2716_v42  ;;  %v3191_v25 = vand.u32 127, %v2702_v15 }
 0x3c6   :  { %v2372_v27 = vadd.f32 %v3973_v45, %v2332_v39 }
 0x3c7   :  { %vm3192_vm1 = vcmp.eq.s32.totalorder %v3191_v25, 0 }
 0x3df   :  { %v2411_v23 = vpop.f32.mrf.mxu1 }
 0x3e0   :  { %v2412_v53 = vadd.f32 %v2411_v23, %v2372_v27 }
 0x3e1   :  { %v4117_v44 = vpop.f32.mrf.mxu1 }
 0x3e2   :  { %v2417_v28 = vmul.f32 %v4560_v31, %v2412_v53 }
 0x3e3   :  { %v2414_v38 = vpop.f32.mrf.mxu1 }
 0x3e4   :  { %v2418_v29 = vadd.f32 %v4561_v14, %v2417_v28 }
 0x3e5   :  { %v4118_v16 = vpop.f32.mrf.mxu1 }
 0x3e6   :  { %v2419_v32 = vmax.f32 %v2418_v29, 0.0 }
 0x3e8   :  { %v2420_v47 = vpack.c.bf16 %v2419_v32, %v2419_v32 }
 0x3ea   :  { %2647 = vmatmul.mubr.bf16.vlgmr.msra.gmra.mxu0 %v2420_v47  ;;  %2688 = vmatmul.mubr.bf16.vlgmr.msra.gmra.mxu1 %v2420_v47 }
 0x3eb   :  { %3987 = vmatpush3.bf16.msra.mxu0 %v4444_v34  ;;  %4009 = vmatpush3.bf16.msra.mxu1 %v4445_v46 }
 0x3ec   :  { %3988 = vmatprep.subr.bf16.mxu0 %v4446_v48  ;;  %4010 = vmatprep.subr.bf16.mxu1 %v4447_v49  ;;  %v4474_v48 = vld [vmem:[%s6343_s8 + $0x38] sm:$0xff]  }
 0x3ef   :  { %3989 = vmatpush3.bf16.msra.mxu0 %v4448_v50  ;;  %4011 = vmatpush3.bf16.msra.mxu1 %v4449_v51  ;;  %v4476_v50 = vld [vmem:[%s6343_s8 + $0x28] sm:$0xff]   ;;  %v4477_v51 = vld [vmem:[%s6343_s8 + $0x20] sm:$0xff]  }
 0x3f0   :  { %3990 = vmatprep.subr.bf16.mxu0 %v4450_v52  ;;  %4012 = vmatprep.subr.bf16.mxu1 %v4451_v54  ;;  %v4478_v52 = vld [vmem:[%s6343_s8 + $0x18] sm:$0xff]   ;;  %v4479_v54 = vld [vmem:[%s6343_s8 + $0x10] sm:$0xff]  }
 0x3f3   :  { %3991 = vmatpush3.bf16.msra.mxu0 %v4452_v55  ;;  %4013 = vmatpush3.bf16.msra.mxu1 %v4453_v56  ;;  %v4480_v55 = vld [vmem:[%s6343_s8 + $0x8] sm:$0xff]   ;;  %v4481_v56 = vld [vmem:[%s6343_s8] sm:$0xff]  }
 0x3f4   :  { %3992 = vmatprep.subr.bf16.mxu0 %v4454_v57  ;;  %4014 = vmatprep.subr.bf16.mxu1 %v4455_v58 }
 0x3f7   :  { %3993 = vmatpush3.bf16.msra.mxu0 %v4456_v60  ;;  %4015 = vmatpush3.bf16.msra.mxu1 %v4457_v61  ;;  %v3555_v60 = vld [vmem:[%s6345_s7] ss:$0 sm:$0xff] }
 0x3f8   :  { %3994 = vmatprep.subr.bf16.mxu0 %v4458_v62  ;;  %4016 = vmatprep.subr.bf16.mxu1 %v4459_v63 }
 0x3fb   :  { %3995 = vmatpush3.bf16.msra.mxu0 %v4460_v35  ;;  %4017 = vmatpush3.bf16.msra.mxu1 %v4461_v37 }
 0x3fc   :  { %3996 = vmatprep.subr.bf16.mxu0 %v4462_v59  ;;  %4018 = vmatprep.subr.bf16.mxu1 %v4463_v0 }
 0x3ff   :  { %3997 = vmatpush3.bf16.msra.mxu0 %v4464_v4  ;;  %4019 = vmatpush3.bf16.msra.mxu1 %v4465_v8 }
 0x400   :  { %3998 = vmatprep.subr.bf16.mxu0 %v4466_v10  ;;  %4020 = vmatprep.subr.bf16.mxu1 %v4467_v12 }
 0x403   :  { %3999 = vmatpush3.bf16.msra.mxu0 %v4468_v24  ;;  %4021 = vmatpush3.bf16.msra.mxu1 %v4469_v26  ;;  %v3588_v24 = vld [vmem:[%s6346_s9] ss:$0 sm:$0xff] }
 0x404   :  { %4000 = vmatprep.subr.bf16.mxu0 %v4470_v1  ;;  %4022 = vmatprep.subr.bf16.mxu1 %v4471_v3 }
 0x407   :  { %4001 = vmatpush3.bf16.msra.mxu0 %v4472_v11  ;;  %4023 = vmatpush3.bf16.msra.mxu1 %v4473_v13 }
 0x408   :  { %4119 = vmatprep.subr.bf16.mxu0 %v6478_v9 }
 0x4aa   :  { %v2648_v5 = vpop.f32.mrf.mxu0  ;;  %v2689_v20 = vpop.f32.mrf.mxu1 }
 0x4ab   :  { %v2696_v30 = vadd.f32 %v2648_v5, %v6178_v33  ;;  %v2698_v22 = vadd.f32 %v2689_v20, %v6181_v36 }
 0x4ac   :  { %v2650_v39 = vpop.f32.mrf.mxu0  ;;  %v2691_v45 = vpop.f32.mrf.mxu1 }
 0x4ad   :  { %v2722_v27 = vadd.f32 %v2705_v43, %v2696_v30  ;;  %v2724_v23 = vadd.f32 %v2713_v18, %v2698_v22  ;;  %v2697_v53 = vadd.f32 %v2650_v39, %v6184_v2  ;;  %v2699_v44 = vadd.f32 %v2691_v45, %v6187_v6  ;;  %v4475_v6 = vld [vmem:[%s6343_s8 + $0x30] sm:$0xff]  }
 0x4ae   :  { %v2652_v31 = vpop.f32.mrf.mxu0  ;;  %v2693_v28 = vpop.f32.mrf.mxu1 }
 0x4af   :  { %v2723_v38 = vadd.f32 %v2709_v41, %v2697_v53  ;;  %v2725_v14 = vadd.f32 %v2717_v40, %v2699_v44  ;;  %v2726_v29 = vmax.f32 %v2722_v27, 0.0  ;;  %v2728_v16 = vmax.f32 %v2724_v23, 0.0 }
 0x4b0   :  { %v2653_v32 = vpop.f32.mrf.mxu0  ;;  %v2694_v33 = vpop.f32.mrf.mxu1 }
 0x4b1   :  { %v2727_v34 = vmax.f32 %v2723_v38, 0.0  ;;  %v2729_v36 = vmax.f32 %v2725_v14, 0.0  ;;  %v2730_v49 = vpack.c.bf16 %v2726_v29, %v2726_v29  ;;  %v2732_v2 = vpack.c.bf16 %v2728_v16, %v2728_v16 }
 0x4b3   :  { %v2731_v46 = vpack.c.bf16 %v2727_v34, %v2727_v34  ;;  %v2733_v47 = vpack.c.bf16 %v2729_v36, %v2729_v36 }
 0x4b5   :  { %3029 = vmatprep.mubr.bf16.mxu0 %v2731_v46  ;;  %3069 = vmatprep.mubr.bf16.mxu1 %v2733_v47 }
 0x4b6   :  { %3030 = vmatmul.mubr.bf16.vlgmr.msra.gmra.mxu0 %v2730_v49  ;;  %3070 = vmatmul.mubr.bf16.vlgmr.msra.gmra.mxu1 %v2732_v2 }
 0x4b7   :  { %4120 = vmatpush3.bf16.msra.mxu0 %v4474_v48  ;;  %4135 = vmatprep.mubr.msk.bf16.mxu0 %vm4563_vm0, %v6478_v9 }
 0x4b8   :  { %4121 = vmatprep.subr.bf16.mxu0 %v6478_v9 }
 0x4bb   :  { %4122 = vmatpush3.bf16.msra.mxu0 %v4475_v6 }
 0x4bc   :  { %4123 = vmatprep.subr.bf16.mxu0 %v6478_v9 }
 0x4bf   :  { %4124 = vmatpush3.bf16.msra.mxu0 %v4476_v50 }
 0x4c0   :  { %4125 = vmatprep.subr.bf16.mxu0 %v6478_v9 }
 0x4c3   :  { %4126 = vmatpush3.bf16.msra.mxu0 %v4477_v51 }
 0x4c4   :  { %4127 = vmatprep.subr.bf16.mxu0 %v6478_v9 }
 0x4c7   :  { %4128 = vmatpush3.bf16.msra.mxu0 %v4478_v52 }
 0x4c8   :  { %4129 = vmatprep.subr.bf16.mxu0 %v6478_v9 }
 0x4cb   :  { %4130 = vmatpush3.bf16.msra.mxu0 %v4479_v54 }
 0x4cc   :  { %4131 = vmatprep.subr.bf16.mxu0 %v6478_v9 }
 0x4cf   :  { %4132 = vmatpush3.bf16.msra.mxu0 %v4480_v55 }
 0x4d0   :  { %4133 = vmatprep.subr.bf16.mxu0 %v6478_v9 }
 0x4d3   :  { %4134 = vmatpush3.bf16.msra.mxu0 %v4481_v56 }
 0x576   :  { %v4002_v57 = vpop.f32.mrf.mxu0  ;;  %v4024_v58 = vpop.f32.mrf.mxu1 }
 0x578   :  { %v4003_v61 = vpop.f32.mrf.mxu0  ;;  %v4025_v62 = vpop.f32.mrf.mxu1 }
 0x579   :  { %v4004_v63 = vadd.f32 %v4003_v61, %v4002_v57  ;;  %v4026_v0 = vadd.f32 %v4025_v62, %v4024_v58 }
 0x57a   :  { %v4005_v35 = vpop.f32.mrf.mxu0  ;;  %v4027_v37 = vpop.f32.mrf.mxu1 }
 0x57b   :  { %v3032_v59 = vadd.f32 %v4004_v63, %v3555_v60 }
 0x57c   :  { %v4006_v4 = vpop.f32.mrf.mxu0  ;;  %v4028_v9 = vpop.f32.mrf.mxu1 }
 0x57d   :  { %v3072_v8 = vadd.f32 %v4026_v0, %v3032_v59 }
 0x57f   :  { %v3077_v10 = vmax.f32 %v3072_v8, 0.0 }
 0x581   :  { %v3078_v12 = vpack.c.bf16 %v3077_v10, %v3077_v10 }
 0x583   :  { %4136 = vmatmul.mubr.bf16.vlgmr.msra.gmra.mxu0 %v3078_v12 }
 0x643   :  { %v3184_v26 = vpop.f32.mrf.mxu0 }
 0x644   :  { %v3185_v1 = vadd.f32 %v3588_v24, %v3184_v26 }
 0x645   :  { %v4137_v3 = vpop.f32.mrf.mxu0 }
 0x646   :  { %v3597_v11 = vmul.f32 -1.442695, %v3185_v1 }
 0x647   :  { %v3187_v13 = vpop.f32.mrf.mxu0 }
 0x648   :  { %4482 = vpow2.f32 %v3597_v11 }
 0x649   :  { %v4138_v17 = vpop.f32.mrf.mxu0  ;;  %4484 = vtanh.f32 %v3185_v1 }
 0x655   :  { %v4483_v19 = vpop.eup %4482 }
 0x656   :  { %v3197_v21 = vadd.f32 1.0, %v4483_v19  ;;  %v4485_v7 = vpop.eup %4484 }
 0x658   :  { %4486 = vrcp.f32 %v3197_v21 }
 0x665   :  { %v4487_v42 = vpop.eup %4486 }
 0x666   :  { %v3200_v43 = vsel %vm3192_vm1, %v4485_v7, %v4487_v42 }
 0x667   :  { %3201 = vst [vmem:[%s6347_s10] sm:$0xff] %v3200_v43 }

</bundles_post_ra>
